<compile_context>
chip_gen: v7x
topology: tpu7x:2x2x1
jax: 0.10.0
libtpu: 0.0.40
codegen_flags: <defaults>
</compile_context>

<pallas_src>
import functools
from math import log2

import jax
import jax.numpy as jnp
from jax import lax
from jax.experimental import pallas as pl
from jax.experimental.pallas import tpu as pltpu


# ------------------------------------------------------------------ parameter folding

def eca_kernel_size(channels: int, gamma: int = 2, b: int = 1) -> int:
    t = int(abs((log2(channels) + b) / gamma))
    return t if t % 2 else t + 1


def make_band_matrix(w: jnp.ndarray, channels: int) -> jnp.ndarray:
    """ECA Conv1d weight (k,) -> (C, C) band matrix B with  mean @ B == conv1d(mean, w, pad=k//2)."""
    k = w.shape[0]
    pad = k // 2
    band = jnp.zeros((channels, channels), jnp.float32)
    for j in range(k):
        band = band + w[j] * jnp.eye(channels, k=pad - j, dtype=jnp.float32)
    return band


def build_eca_pool_matrix(eca_w, channels, h_in, w_in):
    """(w_in*C, C) matrix: row-sum(act) @ P == mean(act) @ band  (GAP + ECA conv fused)."""
    band = make_band_matrix(eca_w, channels)                       # (C, C)
    return jnp.tile(band, (w_in, 1)) / float(h_in * w_in)          # row x*C+c -> band[c,:]/HW


def build_tile_matrix(channels, width):
    """(C, width*C) 0/1 matrix duplicating a per-channel row vector across the width."""
    return jnp.tile(jnp.eye(channels, dtype=jnp.float32), (1, width))


def build_folded_conv_weights(conv_w, w_in, w_out, stride, dtype):
    """Fold the 3 dx taps AND the width zero-padding of a 3x3 'same' conv into 3
    (w_in*C_in, w_out*C_out) matrices (one per kernel row dy)."""
    c_out, c_in = conv_w.shape[0], conv_w.shape[1]
    w = jnp.transpose(conv_w, (2, 3, 1, 0)).astype(jnp.float32)    # (dy, dx, ci, co)
    xi = jnp.arange(w_in)[None, :, None]                           # unpadded input column
    xo = jnp.arange(w_out)[None, None, :]                          # output column
    dx = jnp.arange(3)[:, None, None]
    sel = (xi == xo * stride + dx - 1).astype(jnp.float32)         # (3, w_in, w_out); OOB -> 0 pad
    wbig = jnp.einsum("dio,ydkc->yikoc", sel, w)                   # (3, w_in, ci, w_out, co)
    return wbig.reshape(3, w_in * c_in, w_out * c_out).astype(dtype)


def build_bn_rows(gamma, beta, mean, var, w_out, eps):
    """Fold eval-mode BN into lane-tiled (1, w_out*C) scale / bias rows."""
    scale = gamma / jnp.sqrt(var + eps)
    bias = beta - mean * scale
    return (jnp.tile(scale, w_out).reshape(1, -1).astype(jnp.float32),
            jnp.tile(bias, w_out).reshape(1, -1).astype(jnp.float32))


# ------------------------------------------------------------------ the fused kernel

def _fused_eca_conv_kernel(x_ref, p1_ref, t1_ref, w1_ref, s1_ref, b1_ref,
                           p2_ref, t2_ref, w2_ref, s2_ref, b2_ref,
                           o_ref, xpad1_ref, xpad2_ref,
                           *, H, W, C_in, Hout1, Wout1, C_mid, Hout2, Wout2, C_out, stride):
    mm_dtype = w1_ref.dtype   # bf16 for the conv matmuls

    # Row zero-padding: rewrite boundary rows every step (safe under megacore 'parallel').
    xpad1_ref[pl.ds(0, 1), :] = jnp.zeros((1, W * C_in), xpad1_ref.dtype)
    xpad1_ref[pl.ds(H + 1, 1), :] = jnp.zeros((1, W * C_in), xpad1_ref.dtype)
    xpad2_ref[pl.ds(0, 1), :] = jnp.zeros((1, Wout1 * C_mid), xpad2_ref.dtype)
    xpad2_ref[pl.ds(Hout1 + 1, 1), :] = jnp.zeros((1, Wout1 * C_mid), xpad2_ref.dtype)

    def conv3x3(xpad_ref, w_ref, hout):
        """3x3 'same' conv as 3 matmuls: sublane dy-slice @ (dx+pad)-folded weights."""
        acc = None
        for dy in range(3):
            if stride == 1:
                rows = xpad_ref[pl.ds(dy, hout), :]
            else:
                rows = xpad_ref[pl.ds(dy, hout, stride), :]
            part = jnp.dot(rows.astype(mm_dtype), w_ref[dy],
                           preferred_element_type=jnp.float32)
            acc = part if acc is None else acc + part
        return acc

    # ---------------- layer 1: ECA1 -> conv1 -> BN1 -> ReLU ----------------
    x = x_ref[0]                                                   # (H, W*C_in) f32
    rs1 = jnp.sum(x, axis=0, keepdims=True)                        # (1, W*C_in)
    logit1 = jnp.dot(rs1, p1_ref[...], preferred_element_type=jnp.float32)        # (1, C_in)
    gate1 = jax.nn.sigmoid(jnp.dot(logit1, t1_ref[...],
                                   preferred_element_type=jnp.float32))           # (1, W*C_in)
    xg1 = x * gate1                                                # f32 elementwise (v5e-friendly)
    xpad1_ref[pl.ds(1, H), :] = xg1                                # interior of row-padded scratch

    acc1 = conv3x3(xpad1_ref, w1_ref, Hout1)                       # (Hout1, Wout1*C_mid) f32
    out1 = jnp.maximum(acc1 * s1_ref[...] + b1_ref[...], 0.0)      # BN1 + ReLU, stays in VMEM

    # ---------------- layer 2: ECA2 -> conv2 -> BN2 -> ReLU ----------------
    rs2 = jnp.sum(out1, axis=0, keepdims=True)                     # (1, Wout1*C_mid)
    logit2 = jnp.dot(rs2, p2_ref[...], preferred_element_type=jnp.float32)        # (1, C_mid)
    gate2 = jax.nn.sigmoid(jnp.dot(logit2, t2_ref[...],
                                   preferred_element_type=jnp.float32))           # (1, Wout1*C_mid)
    out1g = out1 * gate2
    xpad2_ref[pl.ds(1, Hout1), :] = out1g

    acc2 = conv3x3(xpad2_ref, w2_ref, Hout2)                       # (Hout2, Wout2*C_out) f32
    o_ref[0] = jnp.maximum(acc2 * s2_ref[...] + b2_ref[...], 0.0)  # 512-lane-dense store


# ------------------------------------------------------------------ wrapper

def efficient_conv_block(x_nchw, params, stride=1, eps=1e-5, matmul_dtype=jnp.bfloat16):
    """EfficientConvBlock forward.  Input NCHW (PyTorch convention)."""
    N, C_in, H, W = x_nchw.shape
    C_mid = params["conv1_w"].shape[0]
    C_out = params["conv2_w"].shape[0]
    Hout1 = (H + 2 - 3) // stride + 1
    Wout1 = (W + 2 - 3) // stride + 1
    Hout2 = (Hout1 + 2 - 3) // stride + 1
    Wout2 = (Wout1 + 2 - 3) // stride + 1

    # NCHW -> (N, H, W*C_in) lane-dense activation slab (reshape is free).
    x_flat = jnp.transpose(x_nchw, (0, 2, 3, 1)).reshape(N, H, W * C_in)

    # Constant operands (in a real model these are weight-derived and cached across calls).
    p1 = build_eca_pool_matrix(params["eca1_w"], C_in, H, W)                 # (W*C_in, C_in)
    t1 = build_tile_matrix(C_in, W)                                          # (C_in, W*C_in)
    w1 = build_folded_conv_weights(params["conv1_w"], W, Wout1, stride, matmul_dtype)
    s1, b1 = build_bn_rows(params["bn1_gamma"], params["bn1_beta"],
                           params["bn1_mean"], params["bn1_var"], Wout1, eps)

    p2 = build_eca_pool_matrix(params["eca2_w"], C_mid, Hout1, Wout1)        # (Wout1*C_mid, C_mid)
    t2 = build_tile_matrix(C_mid, Wout1)                                     # (C_mid, Wout1*C_mid)
    w2 = build_folded_conv_weights(params["conv2_w"], Wout1, Wout2, stride, matmul_dtype)
    s2, b2 = build_bn_rows(params["bn2_gamma"], params["bn2_beta"],
                           params["bn2_mean"], params["bn2_var"], Wout2, eps)

    kernel = functools.partial(
        _fused_eca_conv_kernel,
        H=H, W=W, C_in=C_in, Hout1=Hout1, Wout1=Wout1, C_mid=C_mid,
        Hout2=Hout2, Wout2=Wout2, C_out=C_out, stride=stride)

    out_flat = pl.pallas_call(
        kernel,
        out_shape=jax.ShapeDtypeStruct((N, Hout2, Wout2 * C_out), jnp.float32),
        grid_spec=pltpu.PrefetchScalarGridSpec(
            num_scalar_prefetch=0,
            grid=(N,),
            in_specs=[
                pl.BlockSpec((1, H, W * C_in), lambda n: (n, 0, 0)),           # x
                pl.BlockSpec((W * C_in, C_in), lambda n: (0, 0)),              # p1
                pl.BlockSpec((C_in, W * C_in), lambda n: (0, 0)),              # t1
                pl.BlockSpec((3, W * C_in, Wout1 * C_mid), lambda n: (0, 0, 0)),   # w1
                pl.BlockSpec((1, Wout1 * C_mid), lambda n: (0, 0)),            # bn1 scale
                pl.BlockSpec((1, Wout1 * C_mid), lambda n: (0, 0)),            # bn1 bias
                pl.BlockSpec((Wout1 * C_mid, C_mid), lambda n: (0, 0)),        # p2
                pl.BlockSpec((C_mid, Wout1 * C_mid), lambda n: (0, 0)),        # t2
                pl.BlockSpec((3, Wout1 * C_mid, Wout2 * C_out), lambda n: (0, 0, 0)),  # w2
                pl.BlockSpec((1, Wout2 * C_out), lambda n: (0, 0)),            # bn2 scale
                pl.BlockSpec((1, Wout2 * C_out), lambda n: (0, 0)),            # bn2 bias
            ],
            out_specs=pl.BlockSpec((1, Hout2, Wout2 * C_out), lambda n: (n, 0, 0)),
            scratch_shapes=[
                pltpu.VMEM((H + 2, W * C_in), jnp.float32),          # row-padded gated input
                pltpu.VMEM((Hout1 + 2, Wout1 * C_mid), jnp.float32), # row-padded gated layer-1 act
            ],
        ),
        compiler_params=pltpu.CompilerParams(dimension_semantics=("parallel",)),
    )(x_flat, p1, t1, w1, s1, b1, p2, t2, w2, s2, b2)

    # (N, Hout, Wout*C_out) -> NCHW
    return jnp.transpose(out_flat.reshape(N, Hout2, Wout2, C_out), (0, 3, 1, 2))


# ------------------------------------------------------------------ pure-JAX reference

def _ref_eca(x_nhwc, w):
    C = x_nhwc.shape[-1]
    k = w.shape[0]
    pad = k // 2
    mean = jnp.mean(x_nhwc, axis=(1, 2))                       # (N, C)
    mp = jnp.pad(mean, ((0, 0), (pad, pad)))
    y = sum(w[j] * mp[:, j:j + C] for j in range(k))
    return x_nhwc * jax.nn.sigmoid(y)[:, None, None, :]


def _ref_layer(x_nhwc, eca_w, conv_w_torch, g, b, m, v, stride=1, eps=1e-5):
    x = _ref_eca(x_nhwc, eca_w)
    w_hwio = jnp.transpose(conv_w_torch, (2, 3, 1, 0))
    y = lax.conv_general_dilated(x, w_hwio, (stride, stride), ((1, 1), (1, 1)),
                                 dimension_numbers=("NHWC", "HWIO", "NHWC"))
    y = (y - m) / jnp.sqrt(v + eps) * g + b
    return jnp.maximum(y, 0.0)


def _ref_block(x_nchw, params, stride=1):
    x = jnp.transpose(x_nchw, (0, 2, 3, 1))
    y = _ref_layer(x, params["eca1_w"], params["conv1_w"], params["bn1_gamma"],
                   params["bn1_beta"], params["bn1_mean"], params["bn1_var"], stride)
    y = _ref_layer(y, params["eca2_w"], params["conv2_w"], params["bn2_gamma"],
                   params["bn2_beta"], params["bn2_mean"], params["bn2_var"], stride)
    return jnp.transpose(y, (0, 3, 1, 2))


# ------------------------------------------------------------------ main

if __name__ == "__main__":
    N, IN_CH, HH, WW = 2, 4, 16, 16
    OUT_CH = 32
    MID = 64
    STRIDE = 1

    key = jax.random.PRNGKey(0)
    ks = jax.random.split(key, 12)

    k1 = eca_kernel_size(IN_CH)   # = 1
    k2 = eca_kernel_size(MID)     # = 3

    params = {
        "eca1_w":    0.5 * jax.random.normal(ks[0], (k1,), jnp.float32),
        "conv1_w":   0.2 * jax.random.normal(ks[1], (MID, IN_CH, 3, 3), jnp.float32),
        "bn1_gamma": jax.random.uniform(ks[2], (MID,), jnp.float32, 0.5, 1.5),
        "bn1_beta":  0.1 * jax.random.normal(ks[3], (MID,), jnp.float32),
        "bn1_mean":  0.1 * jax.random.normal(ks[4], (MID,), jnp.float32),
        "bn1_var":   jax.random.uniform(ks[5], (MID,), jnp.float32, 0.5, 1.5),
        "eca2_w":    0.5 * jax.random.normal(ks[6], (k2,), jnp.float32),
        "conv2_w":   0.1 * jax.random.normal(ks[7], (OUT_CH, MID, 3, 3), jnp.float32),
        "bn2_gamma": jax.random.uniform(ks[8], (OUT_CH,), jnp.float32, 0.5, 1.5),
        "bn2_beta":  0.1 * jax.random.normal(ks[9], (OUT_CH,), jnp.float32),
        "bn2_mean":  0.1 * jax.random.normal(ks[10], (OUT_CH,), jnp.float32),
        "bn2_var":   jax.random.uniform(ks[11], (OUT_CH,), jnp.float32, 0.5, 1.5),
    }

    x = jax.random.normal(jax.random.PRNGKey(42), (N, IN_CH, HH, WW), jnp.float32)

    out = jax.block_until_ready(efficient_conv_block(x, params, stride=STRIDE))
    ref = jax.block_until_ready(_ref_block(x, params, stride=STRIDE))

    assert out.shape == (N, OUT_CH, HH, WW), out.shape
    # bf16 conv-matmul inputs with f32 accumulation: expected max abs error ~3e-2 at these
    # magnitudes (outputs O(1)); 1e-1 gives a wide safety margin while still catching bugs.
    err = float(jnp.max(jnp.abs(out - ref)))
    assert err < 1e-1, err

    print("KERNEL_OK")
</pallas_src>

<mosaic_0001>
module attributes {stable_mosaic.version = 11 : i64} {
  func.func @_fused_eca_conv_kernel(%arg0: i32, %arg1: memref<1x16x64xf32, #tpu.memory_space<vmem>>, %arg2: memref<64x4xf32, #tpu.memory_space<vmem>>, %arg3: memref<4x64xf32, #tpu.memory_space<vmem>>, %arg4: memref<3x64x1024xbf16, #tpu.memory_space<vmem>>, %arg5: memref<1x1024xf32, #tpu.memory_space<vmem>>, %arg6: memref<1x1024xf32, #tpu.memory_space<vmem>>, %arg7: memref<1024x64xf32, #tpu.memory_space<vmem>>, %arg8: memref<64x1024xf32, #tpu.memory_space<vmem>>, %arg9: memref<3x1024x512xbf16, #tpu.memory_space<vmem>>, %arg10: memref<1x512xf32, #tpu.memory_space<vmem>>, %arg11: memref<1x512xf32, #tpu.memory_space<vmem>>, %arg12: memref<1x16x512xf32, #tpu.memory_space<vmem>>, %arg13: memref<18x64xf32, #tpu.memory_space<vmem>>, %arg14: memref<18x1024xf32, #tpu.memory_space<vmem>>) attributes {dimension_semantics = [#tpu.dimension_semantics<parallel>], iteration_bounds = array<i64: 2>, scalar_prefetch = 0 : i64, scratch_operands = 2 : i64, tpu.core_type = #tpu.core_type<tc>, window_params = [{transform_indices = @transform_0, window_bounds = array<i64: 1, 16, 64>}, {pipeline_mode = #tpu.pipeline_mode<synchronous>, transform_indices = @transform_1, window_bounds = array<i64: 64, 4>}, {pipeline_mode = #tpu.pipeline_mode<synchronous>, transform_indices = @transform_2, window_bounds = array<i64: 4, 64>}, {pipeline_mode = #tpu.pipeline_mode<synchronous>, transform_indices = @transform_3, window_bounds = array<i64: 3, 64, 1024>}, {pipeline_mode = #tpu.pipeline_mode<synchronous>, transform_indices = @transform_4, window_bounds = array<i64: 1, 1024>}, {pipeline_mode = #tpu.pipeline_mode<synchronous>, transform_indices = @transform_5, window_bounds = array<i64: 1, 1024>}, {pipeline_mode = #tpu.pipeline_mode<synchronous>, transform_indices = @transform_6, window_bounds = array<i64: 1024, 64>}, {pipeline_mode = #tpu.pipeline_mode<synchronous>, transform_indices = @transform_7, window_bounds = array<i64: 64, 1024>}, {pipeline_mode = #tpu.pipeline_mode<synchronous>, transform_indices = @transform_8, window_bounds = array<i64: 3, 1024, 512>}, {pipeline_mode = #tpu.pipeline_mode<synchronous>, transform_indices = @transform_9, window_bounds = array<i64: 1, 512>}, {pipeline_mode = #tpu.pipeline_mode<synchronous>, transform_indices = @transform_10, window_bounds = array<i64: 1, 512>}, {transform_indices = @transform_11, window_bounds = array<i64: 1, 16, 512>}]} {
    %cst = arith.constant 0.000000e+00 : f32
    %0 = vector.broadcast %cst : f32 to vector<1x64xf32>
    %c0 = arith.constant 0 : index
    %c0_0 = arith.constant 0 : index
    %1 = vector.load %arg13[%c0, %c0_0] : memref<18x64xf32, #tpu.memory_space<vmem>>, vector<1x64xf32>
    tpu.vector_store %arg13[%c0, %c0_0], %0 {strides = array<i32>} : memref<18x64xf32, #tpu.memory_space<vmem>>, vector<1x64xf32>,
    %cst_1 = arith.constant 0.000000e+00 : f32
    %2 = vector.broadcast %cst_1 : f32 to vector<1x64xf32>
    %c17 = arith.constant 17 : index
    %c0_2 = arith.constant 0 : index
    %3 = vector.load %arg13[%c17, %c0_2] : memref<18x64xf32, #tpu.memory_space<vmem>>, vector<1x64xf32>
    tpu.vector_store %arg13[%c17, %c0_2], %2 {strides = array<i32>} : memref<18x64xf32, #tpu.memory_space<vmem>>, vector<1x64xf32>,
    %cst_3 = arith.constant 0.000000e+00 : f32
    %4 = vector.broadcast %cst_3 : f32 to vector<1x1024xf32>
    %c0_4 = arith.constant 0 : index
    %c0_5 = arith.constant 0 : index
    %5 = vector.load %arg14[%c0_4, %c0_5] : memref<18x1024xf32, #tpu.memory_space<vmem>>, vector<1x1024xf32>
    tpu.vector_store %arg14[%c0_4, %c0_5], %4 {strides = array<i32>} : memref<18x1024xf32, #tpu.memory_space<vmem>>, vector<1x1024xf32>,
    %cst_6 = arith.constant 0.000000e+00 : f32
    %6 = vector.broadcast %cst_6 : f32 to vector<1x1024xf32>
    %c17_7 = arith.constant 17 : index
    %c0_8 = arith.constant 0 : index
    %7 = vector.load %arg14[%c17_7, %c0_8] : memref<18x1024xf32, #tpu.memory_space<vmem>>, vector<1x1024xf32>
    tpu.vector_store %arg14[%c17_7, %c0_8], %6 {strides = array<i32>} : memref<18x1024xf32, #tpu.memory_space<vmem>>, vector<1x1024xf32>,
    %c0_9 = arith.constant 0 : index
    %c0_10 = arith.constant 0 : index
    %c0_11 = arith.constant 0 : index
    %8 = vector.load %arg1[%c0_9, %c0_10, %c0_11] : memref<1x16x64xf32, #tpu.memory_space<vmem>>, vector<1x16x64xf32>
    %9 = vector.shape_cast %8 : vector<1x16x64xf32> to vector<16x64xf32>
    %cst_12 = arith.constant dense<0.000000e+00> : vector<64xf32>
    %10 = vector.multi_reduction <add>, %9, %cst_12 [0] : vector<16x64xf32> to vector<64xf32>
    %11 = vector.shape_cast %10 : vector<64xf32> to vector<1x64xf32>
    %c0_13 = arith.constant 0 : index
    %c0_14 = arith.constant 0 : index
    %12 = vector.load %arg2[%c0_13, %c0_14] : memref<64x4xf32, #tpu.memory_space<vmem>>, vector<64x4xf32>
    %cst_15 = arith.constant dense<0.000000e+00> : vector<1x4xf32>
    %13 = tpu.matmul %11, %12, %cst_15 {dimension_numbers = #tpu.dot_dimension_numbers<[1], [0], [0], [1], [0, 0, 1, 1], [], []>} : vector<1x64xf32>, vector<64x4xf32>, vector<1x4xf32> -> vector<1x4xf32>
    %c0_16 = arith.constant 0 : index
    %c0_17 = arith.constant 0 : index
    %14 = vector.load %arg3[%c0_16, %c0_17] : memref<4x64xf32, #tpu.memory_space<vmem>>, vector<4x64xf32>
    %cst_18 = arith.constant dense<0.000000e+00> : vector<1x64xf32>
    %15 = tpu.matmul %13, %14, %cst_18 {dimension_numbers = #tpu.dot_dimension_numbers<[1], [0], [0], [1], [0, 0, 1, 1], [], []>} : vector<1x4xf32>, vector<4x64xf32>, vector<1x64xf32> -> vector<1x64xf32>
    %16 = arith.negf %15 : vector<1x64xf32>
    %17 = math.exp %16 : vector<1x64xf32>
    %cst_19 = arith.constant 1.000000e+00 : f32
    %18 = vector.broadcast %cst_19 : f32 to vector<1x64xf32>
    %19 = arith.addf %18, %17 : vector<1x64xf32>
    %20 = arith.divf %18, %19 : vector<1x64xf32>
    %21 = vector.broadcast %20 : vector<1x64xf32> to vector<16x64xf32>
    %22 = arith.mulf %9, %21 : vector<16x64xf32>
    %c1 = arith.constant 1 : index
    %c0_20 = arith.constant 0 : index
    %23 = vector.load %arg13[%c1, %c0_20] : memref<18x64xf32, #tpu.memory_space<vmem>>, vector<16x64xf32>
    tpu.vector_store %arg13[%c1, %c0_20], %22 {strides = array<i32>} : memref<18x64xf32, #tpu.memory_space<vmem>>, vector<16x64xf32>,
    %c0_21 = arith.constant 0 : index
    %c0_22 = arith.constant 0 : index
    %24 = vector.load %arg13[%c0_21, %c0_22] : memref<18x64xf32, #tpu.memory_space<vmem>>, vector<16x64xf32>
    %25 = arith.truncf %24 : vector<16x64xf32> to vector<16x64xbf16>
    %c0_23 = arith.constant 0 : index
    %c0_24 = arith.constant 0 : index
    %c0_25 = arith.constant 0 : index
    %26 = vector.load %arg4[%c0_23, %c0_24, %c0_25] : memref<3x64x1024xbf16, #tpu.memory_space<vmem>>, vector<1x64x1024xbf16>
    %27 = vector.shape_cast %26 : vector<1x64x1024xbf16> to vector<64x1024xbf16>
    %cst_26 = arith.constant dense<0.000000e+00> : vector<16x1024xf32>
    %28 = tpu.matmul %25, %27, %cst_26 {dimension_numbers = #tpu.dot_dimension_numbers<[1], [0], [0], [1], [0, 0, 1, 1], [], []>} : vector<16x64xbf16>, vector<64x1024xbf16>, vector<16x1024xf32> -> vector<16x1024xf32>
    %c1_27 = arith.constant 1 : index
    %c0_28 = arith.constant 0 : index
    %29 = vector.load %arg13[%c1_27, %c0_28] : memref<18x64xf32, #tpu.memory_space<vmem>>, vector<16x64xf32>
    %30 = arith.truncf %29 : vector<16x64xf32> to vector<16x64xbf16>
    %c1_29 = arith.constant 1 : index
    %c0_30 = arith.constant 0 : index
    %c0_31 = arith.constant 0 : index
    %31 = vector.load %arg4[%c1_29, %c0_30, %c0_31] : memref<3x64x1024xbf16, #tpu.memory_space<vmem>>, vector<1x64x1024xbf16>
    %32 = vector.shape_cast %31 : vector<1x64x1024xbf16> to vector<64x1024xbf16>
    %cst_32 = arith.constant dense<0.000000e+00> : vector<16x1024xf32>
    %33 = tpu.matmul %30, %32, %cst_32 {dimension_numbers = #tpu.dot_dimension_numbers<[1], [0], [0], [1], [0, 0, 1, 1], [], []>} : vector<16x64xbf16>, vector<64x1024xbf16>, vector<16x1024xf32> -> vector<16x1024xf32>
    %34 = arith.addf %28, %33 : vector<16x1024xf32>
    %c2 = arith.constant 2 : index
    %c0_33 = arith.constant 0 : index
    %35 = vector.load %arg13[%c2, %c0_33] : memref<18x64xf32, #tpu.memory_space<vmem>>, vector<16x64xf32>
    %36 = arith.truncf %35 : vector<16x64xf32> to vector<16x64xbf16>
    %c2_34 = arith.constant 2 : index
    %c0_35 = arith.constant 0 : index
    %c0_36 = arith.constant 0 : index
    %37 = vector.load %arg4[%c2_34, %c0_35, %c0_36] : memref<3x64x1024xbf16, #tpu.memory_space<vmem>>, vector<1x64x1024xbf16>
    %38 = vector.shape_cast %37 : vector<1x64x1024xbf16> to vector<64x1024xbf16>
    %cst_37 = arith.constant dense<0.000000e+00> : vector<16x1024xf32>
    %39 = tpu.matmul %36, %38, %cst_37 {dimension_numbers = #tpu.dot_dimension_numbers<[1], [0], [0], [1], [0, 0, 1, 1], [], []>} : vector<16x64xbf16>, vector<64x1024xbf16>, vector<16x1024xf32> -> vector<16x1024xf32>
    %40 = arith.addf %34, %39 : vector<16x1024xf32>
    %c0_38 = arith.constant 0 : index
    %c0_39 = arith.constant 0 : index
    %41 = vector.load %arg5[%c0_38, %c0_39] : memref<1x1024xf32, #tpu.memory_space<vmem>>, vector<1x1024xf32>
    %42 = vector.broadcast %41 : vector<1x1024xf32> to vector<16x1024xf32>
    %43 = arith.mulf %40, %42 : vector<16x1024xf32>
    %c0_40 = arith.constant 0 : index
    %c0_41 = arith.constant 0 : index
    %44 = vector.load %arg6[%c0_40, %c0_41] : memref<1x1024xf32, #tpu.memory_space<vmem>>, vector<1x1024xf32>
    %45 = vector.broadcast %44 : vector<1x1024xf32> to vector<16x1024xf32>
    %46 = arith.addf %43, %45 : vector<16x1024xf32>
    %cst_42 = arith.constant 0.000000e+00 : f32
    %47 = vector.broadcast %cst_42 : f32 to vector<16x1024xf32>
    %48 = arith.maximumf %46, %47 : vector<16x1024xf32>
    %cst_43 = arith.constant dense<0.000000e+00> : vector<1024xf32>
    %49 = vector.multi_reduction <add>, %48, %cst_43 [0] : vector<16x1024xf32> to vector<1024xf32>
    %50 = vector.shape_cast %49 : vector<1024xf32> to vector<1x1024xf32>
    %c0_44 = arith.constant 0 : index
    %c0_45 = arith.constant 0 : index
    %51 = vector.load %arg7[%c0_44, %c0_45] : memref<1024x64xf32, #tpu.memory_space<vmem>>, vector<1024x64xf32>
    %cst_46 = arith.constant dense<0.000000e+00> : vector<1x64xf32>
    %52 = tpu.matmul %50, %51, %cst_46 {dimension_numbers = #tpu.dot_dimension_numbers<[1], [0], [0], [1], [0, 0, 1, 1], [], []>} : vector<1x1024xf32>, vector<1024x64xf32>, vector<1x64xf32> -> vector<1x64xf32>
    %c0_47 = arith.constant 0 : index
    %c0_48 = arith.constant 0 : index
    %53 = vector.load %arg8[%c0_47, %c0_48] : memref<64x1024xf32, #tpu.memory_space<vmem>>, vector<64x1024xf32>
    %cst_49 = arith.constant dense<0.000000e+00> : vector<1x1024xf32>
    %54 = tpu.matmul %52, %53, %cst_49 {dimension_numbers = #tpu.dot_dimension_numbers<[1], [0], [0], [1], [0, 0, 1, 1], [], []>} : vector<1x64xf32>, vector<64x1024xf32>, vector<1x1024xf32> -> vector<1x1024xf32>
    %55 = arith.negf %54 : vector<1x1024xf32>
    %56 = math.exp %55 : vector<1x1024xf32>
    %cst_50 = arith.constant 1.000000e+00 : f32
    %57 = vector.broadcast %cst_50 : f32 to vector<1x1024xf32>
    %58 = arith.addf %57, %56 : vector<1x1024xf32>
    %59 = arith.divf %57, %58 : vector<1x1024xf32>
    %60 = vector.broadcast %59 : vector<1x1024xf32> to vector<16x1024xf32>
    %61 = arith.mulf %48, %60 : vector<16x1024xf32>
    %c1_51 = arith.constant 1 : index
    %c0_52 = arith.constant 0 : index
    %62 = vector.load %arg14[%c1_51, %c0_52] : memref<18x1024xf32, #tpu.memory_space<vmem>>, vector<16x1024xf32>
    tpu.vector_store %arg14[%c1_51, %c0_52], %61 {strides = array<i32>} : memref<18x1024xf32, #tpu.memory_space<vmem>>, vector<16x1024xf32>,
    %c0_53 = arith.constant 0 : index
    %c0_54 = arith.constant 0 : index
    %63 = vector.load %arg14[%c0_53, %c0_54] : memref<18x1024xf32, #tpu.memory_space<vmem>>, vector<16x1024xf32>
    %64 = arith.truncf %63 : vector<16x1024xf32> to vector<16x1024xbf16>
    %c0_55 = arith.constant 0 : index
    %c0_56 = arith.constant 0 : index
    %c0_57 = arith.constant 0 : index
    %65 = vector.load %arg9[%c0_55, %c0_56, %c0_57] : memref<3x1024x512xbf16, #tpu.memory_space<vmem>>, vector<1x1024x512xbf16>
    %66 = vector.shape_cast %65 : vector<1x1024x512xbf16> to vector<1024x512xbf16>
    %cst_58 = arith.constant dense<0.000000e+00> : vector<16x512xf32>
    %67 = tpu.matmul %64, %66, %cst_58 {dimension_numbers = #tpu.dot_dimension_numbers<[1], [0], [0], [1], [0, 0, 1, 1], [], []>} : vector<16x1024xbf16>, vector<1024x512xbf16>, vector<16x512xf32> -> vector<16x512xf32>
    %c1_59 = arith.constant 1 : index
    %c0_60 = arith.constant 0 : index
    %68 = vector.load %arg14[%c1_59, %c0_60] : memref<18x1024xf32, #tpu.memory_space<vmem>>, vector<16x1024xf32>
    %69 = arith.truncf %68 : vector<16x1024xf32> to vector<16x1024xbf16>
    %c1_61 = arith.constant 1 : index
    %c0_62 = arith.constant 0 : index
    %c0_63 = arith.constant 0 : index
    %70 = vector.load %arg9[%c1_61, %c0_62, %c0_63] : memref<3x1024x512xbf16, #tpu.memory_space<vmem>>, vector<1x1024x512xbf16>
    %71 = vector.shape_cast %70 : vector<1x1024x512xbf16> to vector<1024x512xbf16>
    %cst_64 = arith.constant dense<0.000000e+00> : vector<16x512xf32>
    %72 = tpu.matmul %69, %71, %cst_64 {dimension_numbers = #tpu.dot_dimension_numbers<[1], [0], [0], [1], [0, 0, 1, 1], [], []>} : vector<16x1024xbf16>, vector<1024x512xbf16>, vector<16x512xf32> -> vector<16x512xf32>
    %73 = arith.addf %67, %72 : vector<16x512xf32>
    %c2_65 = arith.constant 2 : index
    %c0_66 = arith.constant 0 : index
    %74 = vector.load %arg14[%c2_65, %c0_66] : memref<18x1024xf32, #tpu.memory_space<vmem>>, vector<16x1024xf32>
    %75 = arith.truncf %74 : vector<16x1024xf32> to vector<16x1024xbf16>
    %c2_67 = arith.constant 2 : index
    %c0_68 = arith.constant 0 : index
    %c0_69 = arith.constant 0 : index
    %76 = vector.load %arg9[%c2_67, %c0_68, %c0_69] : memref<3x1024x512xbf16, #tpu.memory_space<vmem>>, vector<1x1024x512xbf16>
    %77 = vector.shape_cast %76 : vector<1x1024x512xbf16> to vector<1024x512xbf16>
    %cst_70 = arith.constant dense<0.000000e+00> : vector<16x512xf32>
    %78 = tpu.matmul %75, %77, %cst_70 {dimension_numbers = #tpu.dot_dimension_numbers<[1], [0], [0], [1], [0, 0, 1, 1], [], []>} : vector<16x1024xbf16>, vector<1024x512xbf16>, vector<16x512xf32> -> vector<16x512xf32>
    %79 = arith.addf %73, %78 : vector<16x512xf32>
    %c0_71 = arith.constant 0 : index
    %c0_72 = arith.constant 0 : index
    %80 = vector.load %arg10[%c0_71, %c0_72] : memref<1x512xf32, #tpu.memory_space<vmem>>, vector<1x512xf32>
    %81 = vector.broadcast %80 : vector<1x512xf32> to vector<16x512xf32>
    %82 = arith.mulf %79, %81 : vector<16x512xf32>
    %c0_73 = arith.constant 0 : index
    %c0_74 = arith.constant 0 : index
    %83 = vector.load %arg11[%c0_73, %c0_74] : memref<1x512xf32, #tpu.memory_space<vmem>>, vector<1x512xf32>
    %84 = vector.broadcast %83 : vector<1x512xf32> to vector<16x512xf32>
    %85 = arith.addf %82, %84 : vector<16x512xf32>
    %cst_75 = arith.constant 0.000000e+00 : f32
    %86 = vector.broadcast %cst_75 : f32 to vector<16x512xf32>
    %87 = arith.maximumf %85, %86 : vector<16x512xf32>
    %c0_76 = arith.constant 0 : index
    %c0_77 = arith.constant 0 : index
    %c0_78 = arith.constant 0 : index
    %88 = vector.load %arg12[%c0_76, %c0_77, %c0_78] : memref<1x16x512xf32, #tpu.memory_space<vmem>>, vector<1x16x512xf32>
    %89 = vector.shape_cast %88 : vector<1x16x512xf32> to vector<16x512xf32>
    %90 = vector.shape_cast %87 : vector<16x512xf32> to vector<1x16x512xf32>
    tpu.vector_store %arg12[%c0_76, %c0_77, %c0_78], %90 {strides = array<i32>} : memref<1x16x512xf32, #tpu.memory_space<vmem>>, vector<1x16x512xf32>,
    return
  }
  func.func @transform_0(%arg0: i32) -> (i32, i32, i32) {
    %c0_i32 = arith.constant 0 : i32
    %c0_i32_0 = arith.constant 0 : i32
    %c0_i32_1 = arith.constant 0 : i32
    return %arg0, %c0_i32, %c0_i32_0 : i32, i32, i32
  }
  func.func @transform_1(%arg0: i32) -> (i32, i32) {
    %c0_i32 = arith.constant 0 : i32
    %c0_i32_0 = arith.constant 0 : i32
    %c0_i32_1 = arith.constant 0 : i32
    return %c0_i32, %c0_i32_0 : i32, i32
  }
  func.func @transform_2(%arg0: i32) -> (i32, i32) {
    %c0_i32 = arith.constant 0 : i32
    %c0_i32_0 = arith.constant 0 : i32
    %c0_i32_1 = arith.constant 0 : i32
    return %c0_i32, %c0_i32_0 : i32, i32
  }
  func.func @transform_3(%arg0: i32) -> (i32, i32, i32) {
    %c0_i32 = arith.constant 0 : i32
    %c0_i32_0 = arith.constant 0 : i32
    %c0_i32_1 = arith.constant 0 : i32
    %c0_i32_2 = arith.constant 0 : i32
    return %c0_i32, %c0_i32_0, %c0_i32_1 : i32, i32, i32
  }
  func.func @transform_4(%arg0: i32) -> (i32, i32) {
    %c0_i32 = arith.constant 0 : i32
    %c0_i32_0 = arith.constant 0 : i32
    %c0_i32_1 = arith.constant 0 : i32
    return %c0_i32, %c0_i32_0 : i32, i32
  }
  func.func @transform_5(%arg0: i32) -> (i32, i32) {
    %c0_i32 = arith.constant 0 : i32
    %c0_i32_0 = arith.constant 0 : i32
    %c0_i32_1 = arith.constant 0 : i32
    return %c0_i32, %c0_i32_0 : i32, i32
  }
  func.func @transform_6(%arg0: i32) -> (i32, i32) {
    %c0_i32 = arith.constant 0 : i32
    %c0_i32_0 = arith.constant 0 : i32
    %c0_i32_1 = arith.constant 0 : i32
    return %c0_i32, %c0_i32_0 : i32, i32
  }
  func.func @transform_7(%arg0: i32) -> (i32, i32) {
    %c0_i32 = arith.constant 0 : i32
    %c0_i32_0 = arith.constant 0 : i32
    %c0_i32_1 = arith.constant 0 : i32
    return %c0_i32, %c0_i32_0 : i32, i32
  }
  func.func @transform_8(%arg0: i32) -> (i32, i32, i32) {
    %c0_i32 = arith.constant 0 : i32
    %c0_i32_0 = arith.constant 0 : i32
    %c0_i32_1 = arith.constant 0 : i32
    %c0_i32_2 = arith.constant 0 : i32
    return %c0_i32, %c0_i32_0, %c0_i32_1 : i32, i32, i32
  }
  func.func @transform_9(%arg0: i32) -> (i32, i32) {
    %c0_i32 = arith.constant 0 : i32
    %c0_i32_0 = arith.constant 0 : i32
    %c0_i32_1 = arith.constant 0 : i32
    return %c0_i32, %c0_i32_0 : i32, i32
  }
  func.func @transform_10(%arg0: i32) -> (i32, i32) {
    %c0_i32 = arith.constant 0 : i32
    %c0_i32_0 = arith.constant 0 : i32
    %c0_i32_1 = arith.constant 0 : i32
    return %c0_i32, %c0_i32_0 : i32, i32
  }
  func.func @transform_11(%arg0: i32) -> (i32, i32, i32) {
    %c0_i32 = arith.constant 0 : i32
    %c0_i32_0 = arith.constant 0 : i32
    %c0_i32_1 = arith.constant 0 : i32
    return %arg0, %c0_i32, %c0_i32_0 : i32, i32, i32
  }
}

</mosaic_0001>

<bundles_post_ra>
// kernel: tpu_custom_call.1
= control target key start
LH: loop header
LB: loop body
LE: loop exit
PB: predicated region body
PF: predicated region fallthrough
CT: control target
= control target key end

     0   :  { %s13416_s0 = inlined_call_operand.hbm [shape: f32[2,16,64], index: 0, kind: input, shape index: {}]   ;;  %s13417_s1 = inlined_call_operand.vmem [shape: f32[64,4], index: 1, kind: input, shape index: {}]   ;;  %s13418_s2 = inlined_call_operand.hbm [shape: f32[4,64], index: 2, kind: input, shape index: {}]   ;;  %s13419_s3 = inlined_call_operand.hbm [shape: bf16[3,64,1024], index: 3, kind: input, shape index: {}]   ;;  %s13420_s4 = inlined_call_operand.hbm [shape: f32[1,1024], index: 4, kind: input, shape index: {}]   ;;  %s13421_s5 = inlined_call_operand.hbm [shape: f32[1,1024], index: 5, kind: input, shape index: {}]   ;;  %s13422_s6 = inlined_call_operand.vmem [shape: f32[1024,64], index: 6, kind: input, shape index: {}]   ;;  %s13423_s7 = inlined_call_operand.hbm [shape: f32[64,1024], index: 7, kind: input, shape index: {}]   ;;  %s13424_s8 = inlined_call_operand.hbm [shape: bf16[3,1024,512], index: 8, kind: input, shape index: {}]   ;;  %s13425_s9 = inlined_call_operand.hbm [shape: f32[1,512], index: 9, kind: input, shape index: {}]   ;;  %s13426_s10 = inlined_call_operand.hbm [shape: f32[1,512], index: 10, kind: input, shape index: {}]   ;;  %s13427_s11 = inlined_call_operand.hbm [shape: f32[2,16,512], index: 11, kind: output, shape index: {}]  }
   0x1   :  { %13434 = sst [smem:[#allocation26_spill]] %s13417_s1 }
   0x2   :  { %13435 = sst [smem:[#allocation27_spill]] %s13418_s2 }
   0x3   :  { %13436 = sst [smem:[#allocation28_spill]] %s13420_s4 }
   0x4   :  { %13437 = sst [smem:[#allocation29_spill]] %s13422_s6 }
   0x5   :  { %13438 = sst [smem:[#allocation30_spill]] %s13427_s11 }
   0x6   :  { %16 = vsyncpa [#allocation5], 0 }
   0x7   :  { %18 = vsyncpa [#allocation5 + $0x1], 0 }
   0x8   :  { %19 = vsyncpa [#allocation8], 0 }
   0x9   :  { %20 = vsyncpa [#allocation11], 0 }
   0xa   :  { %21 = vsyncpa [#allocation14], 0 }
   0xb   :  { %22 = vsyncpa [#allocation17], 0 }
   0xc   :  { %23 = vsyncpa [#allocation6], 0 }
   0xd   :  { %25 = vsyncpa [#allocation6 + $0x1], 0  ;;  %s12283_s17 = smov 0   ;;  %s12285_s18 = smov 0  }
   0xe   :  { %s12287_s19 = smov 0   ;;  %s12289_s20 = smov 0  }
   0xf LB: > { %s12199_s21 = smov [#allocation7]   ;;  %s12304_s23 = sadd.s32 4294967295, %s12197_s20   ;;  %s12197_s20 = sphi %s12289_s20, %s13468_s20   ;;  %s12193_s19 = sphi %s12287_s19, %s13467_s19   ;;  %s12189_s18 = sphi %s12285_s18, %s13466_s18   ;;  %s12185_s17 = sphi %s12283_s17, %s13465_s17  }
  0x10   : > { %s314_s22 = sshll.u32 %s12199_s21, 4  ;;  %p9098_p0 = scmp.ge.s32.totalorder %s12197_s20, 1  ;;  %s315_s22 = int_to_ptr.vmem [resolvable:$true] %s314_s22 }
  0x11   : > { %p13428_p1 = scmp.eq.s32.totalorder %s12304_s23, 0  ;;  %p298_p2 = scmp.lt.s32.totalorder %s12197_s20, 3 }
  0x12   : > { %s12200_s25 = smov [#allocation10]   ;;  %s12201_s27 = smov [#allocation13]  }
  0x13   : > { %p12309_p3 = pnand %p9098_p0, %p298_p2  ;;  %s338_s26 = sshll.u32 %s12200_s25, 4  ;;  %s12316_s26 = int_to_ptr.vmem [resolvable:$true] %s338_s26 }
  0x14   : > { %s362_s28 = sshll.u32 %s12201_s27, 4  ;;  %s13441_s2 = sld [smem:[#allocation27_spill]]  ;;  %s12324_s28 = int_to_ptr.vmem [resolvable:$true] %s362_s28 }
  0x15   : > { %s13439_s24 = scalar_select %p12309_p3, 1, 0 }
  0x16   : > { %p10556_p5 = pneg %p12309_p3 }
  0x18   : > { %p12320_p6 = pnand %p10556_p5, %p13428_p1 }
  0x1a   : > { %s11861_s13 = scalar_lea.hbm %s13441_s2, 64  ;;  %p12334_p8 = pneg %p12320_p6 }
  0x1b   : > { %p11862_p7 = scmp.ne.s32.totalorder %s13441_s2, %s11861_s13  ;;  %p11868_p11 = scmp.lt.u32.totalorder %s11861_s13, %s13441_s2 }
  0x1d   : > { %p11864_p9 = pnand %p12334_p8, %p11862_p7 }
  0x1f   : > { %p11865_p10 = pneg %p11864_p9 }
  0x21   : > { %p11870_p12 = pnand %p11868_p11, %p11865_p10 }
  0x23   : > { %11873 = shalt.err (!%p11870_p12)
}
  0x24   : > { %s11874_s27 = scalar_lea.vmem %s315_s22, 64  ;;  %p11882_p5 = scmp.lt.s32.totalorder %s315_s22, %s315_s22 }
  0x25   : > { %p11875_p13 = scmp.ne.s32.totalorder %s315_s22, %s11874_s27  ;;  %p11883_p4 = scmp.lt.s32.totalorder %s11874_s27, %s11874_s27 }
  0x27   : > { %p11877_p0 = pnand %p11875_p13, %p12334_p8  ;;  %p11884_p1 = por %p11883_p4, %p11882_p5 }
  0x29   : > { %p11878_p2 = pneg %p11877_p0 }
  0x2b   : > { %p11885_p3 = pnand %p11884_p1, %p11878_p2 }
  0x2d   : > { %11888 = shalt.err (!%p11885_p3)
}
  0x2e   : > { %10559 = dma.hbm_to_vmem [thread:$0]  (!%p12320_p6), %s13441_s2, 64, %s315_s22, [#allocation8]  }
  0x2f   : > { %s13443_s4 = sld [smem:[#allocation28_spill]] }
  0x35   : > { %s11889_s15 = scalar_lea.hbm %s13443_s4, 128 }
  0x36   : > { %p11890_p7 = scmp.ne.s32.totalorder %s13443_s4, %s11889_s15  ;;  %p11896_p1 = scmp.lt.u32.totalorder %s11889_s15, %s13443_s4 }
  0x38   : > { %p11892_p9 = pnand %p11890_p7, %p12334_p8 }
  0x3a   : > { %p11893_p4 = pneg %p11892_p9 }
  0x3c   : > { %p11898_p3 = pnand %p11896_p1, %p11893_p4 }
  0x3e   : > { %11901 = shalt.err (!%p11898_p3)
}
  0x3f   : > { %s11902_s22 = scalar_lea.vmem %s12316_s26, 128  ;;  %p11910_p13 = scmp.lt.s32.totalorder %s12316_s26, %s12316_s26 }
  0x40   : > { %p11903_p10 = scmp.ne.s32.totalorder %s12316_s26, %s11902_s22  ;;  %p11911_p0 = scmp.lt.s32.totalorder %s11902_s22, %s11902_s22 }
  0x42   : > { %p11905_p11 = pnand %p11903_p10, %p12334_p8  ;;  %p11912_p2 = por %p11911_p0, %p11910_p13 }
  0x44   : > { %p11906_p12 = pneg %p11905_p11 }
  0x46   : > { %p11913_p5 = pnand %p11912_p2, %p11906_p12 }
  0x48   : > { %11916 = shalt.err (!%p11913_p5)
}
  0x49   : > { %10565 = dma.hbm_to_vmem [thread:$0]  (!%p12320_p6), %s13443_s4, 128, %s12316_s26, [#allocation11]  }
  0x4a   : > { %s11917_s14 = scalar_lea.hbm %s13423_s7, 8192 }
  0x4b   : > { %p11918_p7 = scmp.ne.s32.totalorder %s13423_s7, %s11917_s14  ;;  %p11924_p1 = scmp.lt.u32.totalorder %s11917_s14, %s13423_s7 }
  0x4d   : > { %p11920_p9 = pnand %p11918_p7, %p12334_p8 }
  0x4f   : > { %p11921_p4 = pneg %p11920_p9 }
  0x51   : > { %p11926_p3 = pnand %p11924_p1, %p11921_p4 }
  0x53   : > { %11929 = shalt.err (!%p11926_p3)
}
  0x54   : > { %s11930_s26 = scalar_lea.vmem %s12324_s28, 8192  ;;  %p11938_p13 = scmp.lt.s32.totalorder %s12324_s28, %s12324_s28 }
  0x55   : > { %p11931_p10 = scmp.ne.s32.totalorder %s12324_s28, %s11930_s26  ;;  %p11939_p0 = scmp.lt.s32.totalorder %s11930_s26, %s11930_s26 }
  0x57   : > { %p11933_p11 = pnand %p11931_p10, %p12334_p8  ;;  %p11940_p2 = por %p11939_p0, %p11938_p13 }
  0x59   : > { %p11934_p12 = pneg %p11933_p11 }
  0x5b   : > { %p11941_p5 = pnand %p11940_p2, %p11934_p12 }
  0x5d   : > { %11944 = shalt.err (!%p11941_p5)
}
  0x5e   : > { %s12202_s22 = smov 1024   ;;  %s12203_s11 = smov 64  }
  0x5f   : > { %10571 = dma.hbm_to_vmem [thread:$0]  (!%p12320_p6), %s13423_s7, 8192, %s12324_s28, [#allocation14], %s12202_s22, %s12202_s22, %s12203_s11  }
  0x60   : > { %s12204_s13 = smov [#allocation16]   ;;  %s12205_s15 = smov [#allocation9]  }
  0x61   : > { %s389_s14 = sshll.u32 %s12204_s13, 4  ;;  %s324_s21 = sshll.u32 %s12205_s15, 4  ;;  %s390_s14 = int_to_ptr.vmem [resolvable:$true] %s389_s14  ;;  %s325_s21 = int_to_ptr.vmem [resolvable:$true] %s324_s21 }
  0x62   : > { %s11945_s26 = scalar_lea.hbm %s13425_s9, 64 }
  0x63   : > { %p11946_p7 = scmp.ne.s32.totalorder %s13425_s9, %s11945_s26  ;;  %p11952_p1 = scmp.lt.u32.totalorder %s11945_s26, %s13425_s9 }
  0x65   : > { %p11948_p9 = pnand %p11946_p7, %p12334_p8 }
  0x67   : > { %p11949_p4 = pneg %p11948_p9 }
  0x69   : > { %p11954_p3 = pnand %p11952_p1, %p11949_p4 }
  0x6b   : > { %11957 = shalt.err (!%p11954_p3)
}
  0x6c   : > { %s11958_s28 = scalar_lea.vmem %s390_s14, 64  ;;  %p11966_p13 = scmp.lt.s32.totalorder %s390_s14, %s390_s14 }
  0x6d   : > { %p11959_p10 = scmp.ne.s32.totalorder %s390_s14, %s11958_s28  ;;  %p11967_p0 = scmp.lt.s32.totalorder %s11958_s28, %s11958_s28 }
  0x6f   : > { %p11961_p11 = pnand %p11959_p10, %p12334_p8  ;;  %p11968_p2 = por %p11967_p0, %p11966_p13 }
  0x71   : > { %p11962_p12 = pneg %p11961_p11 }
  0x73   : > { %p11969_p5 = pnand %p11968_p2, %p11962_p12 }
  0x75   : > { %11972 = shalt.err (!%p11969_p5)
}
  0x76   : > { %10577 = dma.hbm_to_vmem [thread:$0]  (!%p12320_p6), %s13425_s9, 64, %s390_s14, [#allocation17]  }
  0x77   : > { %s11973_s22 = scalar_lea.hbm %s13419_s3, 12288 }
  0x78   : > { %p11974_p7 = scmp.ne.s32.totalorder %s13419_s3, %s11973_s22  ;;  %p11980_p1 = scmp.lt.u32.totalorder %s11973_s22, %s13419_s3 }
  0x7a   : > { %p11976_p9 = pnand %p11974_p7, %p12334_p8 }
  0x7c   : > { %p11977_p4 = pneg %p11976_p9 }
  0x7e   : > { %p11982_p3 = pnand %p11980_p1, %p11977_p4 }
  0x80   : > { %11985 = shalt.err (!%p11982_p3)
}
  0x81   : > { %s11986_s15 = scalar_lea.vmem %s325_s21, 12288  ;;  %p11994_p13 = scmp.lt.s32.totalorder %s325_s21, %s325_s21 }
  0x82   : > { %p11987_p10 = scmp.ne.s32.totalorder %s325_s21, %s11986_s15  ;;  %p11995_p0 = scmp.lt.s32.totalorder %s11986_s15, %s11986_s15 }
  0x84   : > { %p11989_p11 = pnand %p11987_p10, %p12334_p8  ;;  %p11996_p2 = por %p11995_p0, %p11994_p13 }
  0x86   : > { %p11990_p12 = pneg %p11989_p11 }
  0x88   : > { %p11997_p5 = pnand %p11996_p2, %p11990_p12 }
  0x8a   : > { %12000 = shalt.err (!%p11997_p5)
}
  0x8b   : > { %s12206_s14 = smov 512   ;;  %s12207_s25 = smov 32  }
  0x8c   : > { %10562 = dma.hbm_to_vmem [thread:$0]  (!%p12320_p6), %s13419_s3, 12288, %s325_s21, [#allocation8], %s12206_s14, %s12206_s14, %s12207_s25  }
  0x8d   : > { %s12208_s28 = smov [#allocation12]   ;;  %s12209_s4 = smov [#allocation15]  }
  0x8e   : > { %s349_s2 = sshll.u32 %s12208_s28, 4  ;;  %s375_s1 = sshll.u32 %s12209_s4, 4  ;;  %s350_s2 = int_to_ptr.vmem [resolvable:$true] %s349_s2  ;;  %s376_s1 = int_to_ptr.vmem [resolvable:$true] %s375_s1 }
  0x8f   : > { %s12001_s11 = scalar_lea.hbm %s13421_s5, 128 }
  0x90   : > { %p12002_p7 = scmp.ne.s32.totalorder %s13421_s5, %s12001_s11  ;;  %p12008_p1 = scmp.lt.u32.totalorder %s12001_s11, %s13421_s5 }
  0x92   : > { %p12004_p9 = pnand %p12002_p7, %p12334_p8 }
  0x94   : > { %p12005_p4 = pneg %p12004_p9 }
  0x96   : > { %p12010_p3 = pnand %p12008_p1, %p12005_p4 }
  0x98   : > { %12013 = shalt.err (!%p12010_p3)
}
  0x99   : > { %s12014_s21 = scalar_lea.vmem %s350_s2, 128  ;;  %p12022_p13 = scmp.lt.s32.totalorder %s350_s2, %s350_s2 }
  0x9a   : > { %p12015_p10 = scmp.ne.s32.totalorder %s350_s2, %s12014_s21  ;;  %p12023_p0 = scmp.lt.s32.totalorder %s12014_s21, %s12014_s21 }
  0x9c   : > { %p12017_p11 = pnand %p12015_p10, %p12334_p8  ;;  %p12024_p2 = por %p12023_p0, %p12022_p13 }
  0x9e   : > { %p12018_p12 = pneg %p12017_p11 }
  0xa0   : > { %p12025_p5 = pnand %p12024_p2, %p12018_p12 }
  0xa2   : > { %12028 = shalt.err (!%p12025_p5)
}
  0xa3   : > { %10568 = dma.hbm_to_vmem [thread:$0]  (!%p12320_p6), %s13421_s5, 128, %s350_s2, [#allocation11]  }
  0xa4   : > { %s12029_s28 = scalar_lea.hbm %s13424_s8, 98304 }
  0xa5   : > { %p12030_p7 = scmp.ne.s32.totalorder %s13424_s8, %s12029_s28  ;;  %p12036_p1 = scmp.lt.u32.totalorder %s12029_s28, %s13424_s8 }
  0xa7   : > { %p12032_p9 = pnand %p12030_p7, %p12334_p8 }
  0xa9   : > { %p12033_p4 = pneg %p12032_p9 }
  0xab   : > { %p12038_p3 = pnand %p12036_p1, %p12033_p4 }
  0xad   : > { %12041 = shalt.err (!%p12038_p3)
}
  0xae   : > { %s12042_s30 = scalar_lea.vmem %s376_s1, 98304  ;;  %p12050_p13 = scmp.lt.s32.totalorder %s376_s1, %s376_s1 }
  0xaf   : > { %p12043_p10 = scmp.ne.s32.totalorder %s376_s1, %s12042_s30  ;;  %p12051_p0 = scmp.lt.s32.totalorder %s12042_s30, %s12042_s30 }
  0xb1   : > { %p12045_p11 = pnand %p12043_p10, %p12334_p8  ;;  %p12052_p2 = por %p12051_p0, %p12050_p13 }
  0xb3   : > { %p12046_p12 = pneg %p12045_p11 }
  0xb5   : > { %p12053_p5 = pnand %p12052_p2, %p12046_p12 }
  0xb7   : > { %12056 = shalt.err (!%p12053_p5)
}
  0xb8   : > { %s12210_s2 = smov 256   ;;  %s12211_s12 = smov 16  }
  0xb9   : > { %10574 = dma.hbm_to_vmem [thread:$0]  (!%p12320_p6), %s13424_s8, 98304, %s376_s1, [#allocation14], %s12210_s2, %s12210_s2, %s12211_s12  }
  0xba   : > { %s12212_s21 = smov [#allocation18]   ;;  %s12057_s26 = scalar_lea.hbm %s13426_s10, 64 }
  0xbb   : > { %s400_s14 = sshll.u32 %s12212_s21, 4  ;;  %p12058_p7 = scmp.ne.s32.totalorder %s13426_s10, %s12057_s26  ;;  %s401_s14 = int_to_ptr.vmem [resolvable:$true] %s400_s14 }
  0xbc   : > { %p12064_p1 = scmp.lt.u32.totalorder %s12057_s26, %s13426_s10 }
  0xbd   : > { %p12060_p9 = pnand %p12058_p7, %p12334_p8 }
  0xbf   : > { %p12061_p4 = pneg %p12060_p9 }
  0xc1   : > { %p12066_p3 = pnand %p12064_p1, %p12061_p4 }
  0xc3   : > { %12069 = shalt.err (!%p12066_p3)
}
  0xc4   : > { %s12070_s1 = scalar_lea.vmem %s401_s14, 64  ;;  %p12078_p13 = scmp.lt.s32.totalorder %s401_s14, %s401_s14 }
  0xc5   : > { %p12071_p10 = scmp.ne.s32.totalorder %s401_s14, %s12070_s1  ;;  %p12079_p0 = scmp.lt.s32.totalorder %s12070_s1, %s12070_s1 }
  0xc7   : > { %p12073_p11 = pnand %p12071_p10, %p12334_p8  ;;  %p12080_p2 = por %p12079_p0, %p12078_p13 }
  0xc9   : > { %p12074_p12 = pneg %p12073_p11 }
  0xcb   : > { %p12081_p5 = pnand %p12080_p2, %p12074_p12 }
  0xcd   : > { %12084 = shalt.err (!%p12081_p5)
}
  0xce   : > { %10580 = dma.hbm_to_vmem [thread:$0]  (!%p12320_p6), %s13426_s10, 64, %s401_s14, [#allocation17]  }
  0xcf   : > { %s9097_s16 = sadd.s32 4294967294, %s12197_s20   ;;  %s12488_s29 = sadd.s32 1, %s12197_s20  }
  0xd0   : > { %s35_s2 = ssub.s32 %s12197_s20, %s12488_s29  ;;  %s38_s12 = sadd.s32 1, %s12193_s19 }
  0xd1   : > { %p36_p8 = scmp.eq.s32.totalorder %s35_s2, 0  ;;  %p45_p7 = scmp.ne.s32.totalorder %s12193_s19, %s12189_s18 }
  0xd2   : > { %p46_p9 = scmp.eq.s32.totalorder %s12197_s20, 0  ;;  %p51_p4 = scmp.ne.s32.totalorder %s12189_s18, %s12185_s17 }
  0xd3   : > { %s12499_s13 = scalar_select %p36_p8, %s12193_s19, %s38_s12  }
  0xd4   : > { %p12501_p1 = por %p46_p9, %p45_p7  ;;  %p13445_p3 = scmp.eq.s32.totalorder %s12304_s23, 0 }
  0xd5   : > { %p285_p10 = scmp.eq.s32.totalorder %s12304_s23, 1  ;;  %p291_p11 = scmp.eq.s32.totalorder %s9097_s16, 1 }
  0xd6   : > { %p12507_p6 = por %p13445_p3, %p51_p4  ;;  %p10597_p12 = scmp.lt.s32.totalorder %s12197_s20, 2 }
  0xd7   : > { %s411_s14 = sand.u32 1, %s12193_s19   ;;  %p12514_p13 = por %p285_p10, %p45_p7 }
  0xd8   : > { %p12518_p0 = por %p291_p11, %p51_p4  ;;  %s9108_s26 = sshll.u32 %s411_s14, 4 }
  0xd9   : > { %s13447_s25 = scalar_select %p12514_p13, 1, 0 }
  0xda   : > { %s13448_s27 = scalar_select %p12518_p0, 1, 0 }
  0xdb   : > { %s10019_s28 = sshll.u32 %s12197_s20, 8  ;;  %s415_s1 = scalar_lea.vmem [#allocation4], %s9108_s26 }
  0xdc   : > { %s12526_s22 = scalar_lea.hbm %s13416_s0, %s10019_s28  ;;  %s422_s11 = sshll.u32 %s415_s1, 4  ;;  %s12528_s11 = int_to_ptr.vmem [resolvable:$true] %s422_s11 }
  0xdd   : > { %p12532_p2 = pnand %p10597_p12, %p12501_p1  ;;  %s12536_s16 = scalar_lea.sflag [#allocation5], %s411_s14 }
  0xde   : > { %s12085_s2 = scalar_lea.hbm %s12526_s22, 256  ;;  %s12090_s15 = scalar_lea.hbm %s13416_s0, 512 }
  0xdf   : > { %p12086_p5 = scmp.ne.s32.totalorder %s12526_s22, %s12085_s2  ;;  %p12087_p8 = pneg %p12532_p2 }
  0xe0   : > { %p12091_p4 = scmp.lt.u32.totalorder %s12526_s22, %s13416_s0  ;;  %p12092_p1 = scmp.lt.u32.totalorder %s12090_s15, %s12085_s2 }
  0xe1   : > { %p12088_p7 = pnand %p12087_p8, %p12086_p5  ;;  %p12094_p10 = scmp.lt.u32.totalorder %s12085_s2, %s12526_s22 }
  0xe2   : > { %p12093_p3 = por %p12092_p1, %p12091_p4 }
  0xe3   : > { %p12089_p9 = pneg %p12088_p7 }
  0xe4   : > { %p12095_p11 = por %p12094_p10, %p12093_p3 }
  0xe6   : > { %p12096_p12 = pnand %p12095_p11, %p12089_p9 }
  0xe8   : > { %12099 = shalt.err (!%p12096_p12)
}
  0xe9   : > { %s12100_s14 = scalar_lea.vmem %s12528_s11, 256  ;;  %s12213_s6 = smov [#allocation4]  }
  0xea   : > { %p12101_p5 = scmp.ne.s32.totalorder %s12528_s11, %s12100_s14  ;;  %s12105_s1 = sshll.u32 %s12213_s6, 4  ;;  %s12106_s1 = int_to_ptr.vmem [resolvable:$false] %s12105_s1 }
  0xeb   : > { %s12107_s12 = scalar_lea.vmem %s12106_s1, 512  ;;  %p12108_p13 = scmp.lt.s32.totalorder %s12528_s11, %s12106_s1 }
  0xec   : > { %p12103_p7 = pnand %p12101_p5, %p12087_p8  ;;  %p12109_p4 = scmp.lt.s32.totalorder %s12107_s12, %s12100_s14 }
  0xee   : > { %p12104_p0 = pneg %p12103_p7  ;;  %p12110_p1 = por %p12109_p4, %p12108_p13 }
  0xf0   : > { %p12111_p3 = pnand %p12110_p1, %p12104_p0 }
  0xf2   : > { %12114 = shalt.err (!%p12111_p3)
}
  0xf3   : > { %s12214_s2 = smov 128   ;;  %s12215_s26 = smov 8  }
  0xf4   : > { %10584 = dma.hbm_to_vmem [thread:$0]  (!%p12532_p2), %s12526_s22, 256, %s12528_s11, %s12536_s16, %s12214_s2, %s12214_s2, %s12215_s26  }
  0xf5   : > { %p13450_p8 = scmp.ne.s32.totalorder %s13439_s24, 0 }
  0xf6   : > { %s12567_s15 = sand.u32 (!%p13450_p8), 1, %s12189_s18  }
  0xf7   : > { %434 = sbr.rel (%p13450_p8) target bundleno = 2516 (0x9d4), region = 64  ;;  %s9112_s28 = sshll.u32 (!%p13450_p8), %s12567_s15, 4 }
  0xf8   : > { %s437_s4 = scalar_lea.sflag (!%p13450_p8), [#allocation5], %s12567_s15  ;;  %s12571_s14 = scalar_lea.vmem (!%p13450_p8), [#allocation4], %s9112_s28 }
  0xfe   : > { %12160 = dma.done.wait (%p12507_p6), %s437_s4, 256  }
  0xff   : > { %12162 = vsyncadd (%p12507_p6), %s437_s4, 4294967040  ;;  %p13451_p13 = scmp.eq.s32.totalorder %s12304_s23, 0 }
 0x101   : > { %12164 = dma.done.wait (%p13451_p13), [#allocation8], 12352   ;;  %p13452_p0 = pmov %p13451_p13 }
 0x103   : > { %12166 = vsyncadd (%p13452_p0), [#allocation8], 4294954944  ;;  %p13453_p2 = pmov %p13452_p0 }
 0x104   : > { %p13454_p9 = pmov %p13452_p0 }
 0x105   : > { %12168 = dma.done.wait (%p13453_p2), [#allocation11], 256  }
 0x106   : > { %12170 = vsyncadd (%p13454_p9), [#allocation11], 4294967040  ;;  %p13455_p10 = pmov %p13452_p0 }
 0x107   : > { %p13456_p11 = pmov %p13452_p0 }
 0x108   : > { %12172 = dma.done.wait (%p13455_p10), [#allocation14], 106496  }
 0x109   : > { %12174 = vsyncadd (%p13456_p11), [#allocation14], 4294860800  ;;  %p13457_p6 = pmov %p13452_p0 }
 0x10a   : > { %p13458_p12 = pmov %p13452_p0 }
 0x10b   : > { %12176 = dma.done.wait (%p13457_p6), [#allocation17], 128  }
 0x10c   : > { %12178 = vsyncadd (%p13458_p12), [#allocation17], 4294967168  ;;  %v12216_v0 = vmov 0.0|0.0   ;;  %vm12217_vm0 = vmmov 0   ;;  %v12218_v1 = vmov 0.0   ;;  %s13459_s22 = sld [smem:[#allocation26_spill]] }
 0x10d   : > { %10196 = vmatprep.subr.bf16.mxu0 %v12216_v0  ;;  %10188 = vmatprep.mubr.msk.f32.mxu0 %vm12217_vm0, %v12218_v1  ;;  %515 = vst [vmem:[#allocation3] ss:$8 sm:$0xf] %v12218_v1  ;;  %516 = vst [vmem:[#allocation3] ss:$8 sm:$0xf0] %v12218_v1 }
 0x10e   : > { %518 = vst [vmem:[#allocation3 + $0x81] ss:$8 sm:$0xf] %v12218_v1  ;;  %519 = vst [vmem:[#allocation3 + $0x81] ss:$8 sm:$0xf0] %v12218_v1  ;;  %10191 = vmatprep.subr.mxu1 %v12218_v1  ;;  %10193 = vmatprep.mubr.msk.f32.mxu1 %vm12217_vm0, %v12218_v1 }
 0x10f   : > { %vm522_vm1 = vcmask 523264   ;;  %v520_v9 = vld [vmem:[%s12571_s14] sm:$0xff]  ;;  %v521_v11 = vld [vmem:[%s12571_s14 + $0x8] sm:$0xff]  ;;  %vm618_vm2 = vcmask 1043456   ;;  %vm614_vm3 = vcmask 31744   ;;  %v12219_v57 = vmov 0  }
 0x110   : > { %v523_v12 = vsel %vm522_vm1, %v520_v9, 0.0  ;;  %v524_v13 = vsel %vm522_vm1, %v521_v11, 0.0  ;;  %v613_v25 = vld [vmem:[#allocation7] sm:$0xf]  ;;  %v745_v28 = vld [vmem:[#allocation9 + $0x100] sm:$0xff]  ;;  %v746_v30 = vld [vmem:[#allocation9 + $0x108] sm:$0xff]  ;;  %v698_v11 = vlaneseq }
 0x111   : > { %v525_v14 = vadd.f32 %v524_v13, %v523_v12  ;;  %10192 = vmatpush3.msk.msra.mxu1 %vm618_vm2, %v613_v25  ;;  %v749_v29 = vld [vmem:[#allocation9 + $0x120] sm:$0xff]  ;;  %v750_v32 = vld [vmem:[#allocation9 + $0x128] sm:$0xff]  ;;  %v747_v58 = vld [vmem:[#allocation9 + $0x110] sm:$0xff]  ;;  %vm512_vm4 = vcmask 516096   ;;  %s13460_s6 = sld [smem:[#allocation29_spill]]  ;;  %vm2893_vm5 = vcmask 1040384  }
 0x112   : > { %v532_v2 = vld [vmem:[%s13459_s22] sm:$0xff]  ;;  %v533_v3 = vld [vmem:[%s13459_s22 + $0x8] sm:$0xff]  ;;  %v534_v4 = vld [vmem:[%s13459_s22 + $0x10] sm:$0xff]  ;;  %v9127_v31 = vcombine.high %v745_v28, %v749_v29  ;;  %v9126_v33 = vcombine.low %v745_v28, %v749_v29  ;;  %v9128_v34 = vcombine.low %v746_v30, %v750_v32  ;;  %v9129_v35 = vcombine.high %v746_v30, %v750_v32  ;;  %513 = vst.msk [vmem:[#allocation2] sm:$0x1] %vm512_vm4, %v12218_v1  ;;  %s9121_s2 = sshll.u32 %s12567_s15, 6 }
 0x113   : > { %v10197_v5 = vpack.c.bf16 %v533_v3, %v532_v2  ;;  %v535_v6 = vld [vmem:[%s13459_s22 + $0x18] sm:$0xff]  ;;  %v536_v7 = vld [vmem:[%s13459_s22 + $0x20] sm:$0xff]  ;;  %v537_v8 = vld [vmem:[%s13459_s22 + $0x28] sm:$0xff]  ;;  %v526_v18 = vrot.slane %v525_v14, 4  ;;  %514 = vst.msk [vmem:[#allocation2 + $0x11] sm:$0x1] %vm512_vm4, %v12218_v1 }
 0x114   : > { %v10200_v10 = vpack.c.bf16 %v535_v6, %v534_v4  ;;  %v538_v15 = vld [vmem:[%s13459_s22 + $0x30] sm:$0xff]  ;;  %v539_v16 = vld [vmem:[%s13459_s22 + $0x38] sm:$0xff]  ;;  %v10203_v17 = vpack.c.bf16 %v537_v8, %v536_v7  ;;  %940 = vmatprep.subr.bf16.mxu1 %v9127_v31  ;;  %v754_v38 = vld [vmem:[#allocation9 + $0x148] sm:$0xff]  ;;  %v12633_v12 = vshrl.u32 %v698_v11, 7  ;;  %vm3535_vm6 = vsmask.f32 7424 }
 0x115   : > { %10198 = vmatpush3.bf16.msra.mxu0 %v10197_v5  ;;  %v527_v19 = vadd.f32 %v526_v18, %v525_v14  ;;  %v10206_v20 = vpack.c.bf16 %v539_v16, %v538_v15  ;;  %v753_v36 = vld [vmem:[#allocation9 + $0x140] sm:$0xff]  ;;  %v758_v40 = vld [vmem:[#allocation9 + $0x168] sm:$0xff]  ;;  %v751_v59 = vld [vmem:[#allocation9 + $0x130] sm:$0xff]  ;;  %vm7193_vm7 = vcmask 1046528   ;;  %s13355_s26 = scalar_lea.vmem [#allocation19], %s9121_s2  ;;  %s10020_s4 = sshll.u32 %s12304_s23, 10 }
 0x116   : > { %10199 = vmatprep.subr.bf16.mxu0 %v12216_v0  ;;  %v757_v37 = vld [vmem:[#allocation9 + $0x160] sm:$0xff]  ;;  %v9136_v42 = vcombine.low %v754_v38, %v758_v40  ;;  %v9137_v43 = vcombine.high %v754_v38, %v758_v40  ;;  %v762_v46 = vld [vmem:[#allocation9 + $0x188] sm:$0xff]  ;;  %v9130_v62 = vcombine.low %v747_v58, %v751_v59  ;;  %v748_v63 = vld [vmem:[#allocation9 + $0x118] sm:$0xff]  ;;  %v9131_v3 = vcombine.high %v747_v58, %v751_v59  ;;  %s8948_s28 = sshll.u32 %s13355_s26, 4  ;;  %s13461_s21 = sld [smem:[#allocation30_spill]]  ;;  %s13360_s28 = int_to_ptr.vmem [resolvable:$true] %s8948_s28 }
 0x117   : > { %v528_v21 = vrot.slane %v527_v19, 2  ;;  %v9135_v39 = vcombine.high %v753_v36, %v757_v37  ;;  %v9134_v41 = vcombine.low %v753_v36, %v757_v37  ;;  %v761_v44 = vld [vmem:[#allocation9 + $0x180] sm:$0xff]  ;;  %v766_v48 = vld [vmem:[#allocation9 + $0x1a8] sm:$0xff]  ;;  %v12636_v13 = vsub.s32 0, %v12633_v12  ;;  %v763_v29 = vld [vmem:[#allocation9 + $0x190] sm:$0xff]  ;;  %s8935_s30 = scalar_lea.sflag [#allocation6], %s12567_s15 }
 0x118   : > { %v765_v45 = vld [vmem:[#allocation9 + $0x1a0] sm:$0xff]  ;;  %v9144_v50 = vcombine.low %v762_v46, %v766_v48  ;;  %v9145_v51 = vcombine.high %v762_v46, %v766_v48  ;;  %v770_v54 = vld [vmem:[#allocation9 + $0x1c8] sm:$0xff]  ;;  %v767_v30 = vld [vmem:[#allocation9 + $0x1b0] sm:$0xff]  ;;  %p13462_p7 = scmp.ne.s32.totalorder %s13447_s25, 0  ;;  %s12220_s16 = smov [#allocation19]  }
 0x119   : > { %10201 = vmatpush3.bf16.msra.mxu0 %v10200_v10  ;;  %v529_v22 = vadd.f32 %v528_v21, %v527_v19  ;;  %v9143_v47 = vcombine.high %v761_v44, %v765_v45  ;;  %v9142_v49 = vcombine.low %v761_v44, %v765_v45  ;;  %v769_v52 = vld [vmem:[#allocation9 + $0x1c0] sm:$0xff]  ;;  %v774_v56 = vld [vmem:[#allocation9 + $0x1e8] sm:$0xff]  ;;  %v759_v21 = vld [vmem:[#allocation9 + $0x170] sm:$0xff]  ;;  %s12119_s1 = sshll.u32 %s12220_s16, 4  ;;  %s12120_s1 = int_to_ptr.vmem [resolvable:$false] %s12119_s1 }
 0x11a   : > { %10202 = vmatprep.subr.bf16.mxu0 %v12216_v0  ;;  %v773_v53 = vld [vmem:[#allocation9 + $0x1e0] sm:$0xff]  ;;  %v9153_v61 = vcombine.high %v770_v54, %v774_v56  ;;  %v9152_v2 = vcombine.low %v770_v54, %v774_v56  ;;  %v764_v31 = vld [vmem:[#allocation9 + $0x198] sm:$0xff]  ;;  %v771_v37 = vld [vmem:[#allocation9 + $0x1d0] sm:$0xff]  ;;  %s12121_s12 = scalar_lea.vmem %s12120_s1, 2048  ;;  %p12122_p3 = scmp.lt.s32.totalorder %s13360_s28, %s12120_s1 }
 0x11b   : > { %v530_v23 = vrot.slane %v529_v22, 1  ;;  %v9151_v55 = vcombine.high %v769_v52, %v773_v53  ;;  %v9150_v60 = vcombine.low %v769_v52, %v773_v53  ;;  %v11849_v16 = vld [vmem:[%s12571_s14] sm:$0xff]  ;;  %v11850_v18 = vld [vmem:[%s12571_s14 + $0x8] sm:$0xff]  ;;  %s12115_s14 = scalar_lea.vmem %s13360_s28, 1024 }
 0x11c   : > { %v768_v32 = vld [vmem:[#allocation9 + $0x1b8] sm:$0xff]  ;;  %v775_v38 = vld [vmem:[#allocation9 + $0x1f0] sm:$0xff]  ;;  %v709_v45 = vld [vmem:[#allocation9] sm:$0xff]  ;;  %s13367_s11 = scalar_lea.hbm %s13461_s21, %s10020_s4  ;;  %p12116_p5 = scmp.ne.s32.totalorder %s13360_s28, %s12115_s14 }
 0x11d   : > { %10204 = vmatpush3.bf16.msra.mxu0 %v10203_v17  ;;  %v531_v24 = vadd.f32 %v530_v23, %v529_v22  ;;  %v756_v22 = vld [vmem:[#allocation9 + $0x158] sm:$0xff]  ;;  %v9149_v36 = vcombine.high %v764_v31, %v768_v32  ;;  %v713_v46 = vld [vmem:[#allocation9 + $0x20] sm:$0xff]  ;;  %v714_v48 = vld [vmem:[#allocation9 + $0x28] sm:$0xff]  ;;  %p12123_p8 = scmp.lt.s32.totalorder %s12121_s12, %s12115_s14 }
 0x11e   : > { %10205 = vmatprep.subr.bf16.mxu0 %v12216_v0  ;;  %v752_v0 = vld [vmem:[#allocation9 + $0x138] sm:$0xff]  ;;  %v717_v53 = vld [vmem:[#allocation9 + $0x40] sm:$0xff]  ;;  %v722_v56 = vld [vmem:[#allocation9 + $0x68] sm:$0xff]  ;;  %v9162_v58 = vcombine.low %v709_v45, %v713_v46  ;;  %p12117_p4 = pnand %p12116_p5, %p13462_p7 }
 0x11f   : > { %v9132_v4 = vcombine.low %v748_v63, %v752_v0  ;;  %v9133_v5 = vcombine.high %v748_v63, %v752_v0  ;;  %v760_v23 = vld [vmem:[#allocation9 + $0x178] sm:$0xff]  ;;  %v721_v54 = vld [vmem:[#allocation9 + $0x60] sm:$0xff]  ;;  %v726_v0 = vld [vmem:[#allocation9 + $0x88] sm:$0xff]  ;;  %p12124_p13 = por %p12123_p8, %p12122_p3 }
 0x120   : > { %v9141_v28 = vcombine.high %v756_v22, %v760_v23  ;;  %v776_v40 = vld [vmem:[#allocation9 + $0x1f8] sm:$0xff]  ;;  %v729_v63 = vld [vmem:[#allocation9 + $0xa0] sm:$0xff]  ;;  %p12118_p1 = pneg %p12117_p4 }
 0x121   : > { %10207 = vmatpush3.bf16.msra.mxu0 %v10206_v20  ;;  %v755_v20 = vld [vmem:[#allocation9 + $0x150] sm:$0xff] }
 0x122   : > { %983 = vmatprep.subr.bf16.mxu0 %v9129_v35  ;;  %v9147_v35 = vcombine.high %v763_v29, %v767_v30  ;;  %p12125_p0 = pnand %p12124_p13, %p12118_p1 }
 0x124   : > { %10189 = vmatmul.mubr.msk.f32.vlgmr.msra.gmra.mrb[0].mxu0 %vm522_vm1, %v531_v24 }
 0x125   : > { %984 = vmatpush1.bf16.msra.mxu0 %v9128_v34  ;;  %1015 = vmatprep.mubr.bf16.mxu0 %v12219_v57  ;;  %v9140_v34 = vcombine.low %v756_v22, %v760_v23 }
 0x126   : > { %985 = vmatprep.subr.bf16.mxu0 %v9137_v43  ;;  %v9155_v43 = vcombine.high %v771_v37, %v775_v38 }
 0x129   : > { %986 = vmatpush1.bf16.msra.mxu0 %v9136_v42  ;;  %v9148_v42 = vcombine.low %v764_v31, %v768_v32 }
 0x12a   : > { %987 = vmatprep.subr.bf16.mxu0 %v9145_v51  ;;  %v9163_v51 = vcombine.high %v709_v45, %v713_v46  ;;  %v739_v45 = vld [vmem:[#allocation9 + $0xf0] sm:$0xff]  ;;  %v736_v46 = vld [vmem:[#allocation9 + $0xd8] sm:$0xff] }
 0x12d   : > { %988 = vmatpush1.bf16.msra.mxu0 %v9144_v50 }
 0x12e   : > { %989 = vmatprep.subr.bf16.mxu0 %v9153_v61 }
 0x131   : > { %990 = vmatpush1.bf16.msra.mxu0 %v9152_v2  ;;  %v730_v2 = vld [vmem:[#allocation9 + $0xa8] sm:$0xff] }
 0x132   : > { %1069 = vmatprep.subr.bf16.mxu0 %v9133_v5 }
 0x1f7   : > { %v609_v26 = vpop.f32.mrb[0].mxu0 }
 0x1f8   : > { %v10190_v27 = vpop.f32.mrb[1].mxu0  ;;  %10194 = vmatmul.mubr.msk.f32.vlgmr.msra.gmra.mrb[0].mxu1 %vm614_vm3, %v609_v26 }
 0x1f9   : > { %941 = vmatpush1.bf16.msra.mxu1 %v9126_v33  ;;  %972 = vmatprep.mubr.bf16.mxu1 %v12219_v57  ;;  %v9139_v27 = vcombine.high %v755_v20, %v759_v21  ;;  %v9138_v33 = vcombine.low %v755_v20, %v759_v21  ;;  %v716_v20 = vld [vmem:[#allocation9 + $0x38] sm:$0xff] }
 0x1fa   : > { %942 = vmatprep.subr.bf16.mxu1 %v9135_v39  ;;  %v772_v39 = vld [vmem:[#allocation9 + $0x1d8] sm:$0xff] }
 0x1fb   : > { %v9157_v44 = vcombine.high %v772_v39, %v776_v40  ;;  %v9156_v50 = vcombine.low %v772_v39, %v776_v40  ;;  %v732_v39 = vld [vmem:[#allocation9 + $0xb8] sm:$0xff] }
 0x1fd   : > { %943 = vmatpush1.bf16.msra.mxu1 %v9134_v41  ;;  %v9146_v41 = vcombine.low %v763_v29, %v767_v30  ;;  %v724_v30 = vld [vmem:[#allocation9 + $0x78] sm:$0xff] }
 0x1fe   : > { %944 = vmatprep.subr.bf16.mxu1 %v9143_v47  ;;  %v710_v47 = vld [vmem:[#allocation9 + $0x8] sm:$0xff] }
 0x1ff   : > { %v9165_v52 = vcombine.high %v710_v47, %v714_v48  ;;  %v9164_v59 = vcombine.low %v710_v47, %v714_v48  ;;  %v740_v47 = vld [vmem:[#allocation9 + $0xf8] sm:$0xff] }
 0x201   : > { %945 = vmatpush1.bf16.msra.mxu1 %v9142_v49  ;;  %v9154_v49 = vcombine.low %v771_v37, %v775_v38  ;;  %v731_v37 = vld [vmem:[#allocation9 + $0xb0] sm:$0xff]  ;;  %v728_v38 = vld [vmem:[#allocation9 + $0x98] sm:$0xff] }
 0x202   : > { %946 = vmatprep.subr.bf16.mxu1 %v9151_v55  ;;  %v718_v55 = vld [vmem:[#allocation9 + $0x48] sm:$0xff] }
 0x203   : > { %v9173_v61 = vcombine.high %v718_v55, %v722_v56 }
 0x205   : > { %947 = vmatpush1.bf16.msra.mxu1 %v9150_v60  ;;  %v9171_v60 = vcombine.high %v717_v53, %v721_v54 }
 0x206   : > { %1026 = vmatprep.subr.bf16.mxu1 %v9131_v3  ;;  %v9170_v3 = vcombine.low %v717_v53, %v721_v54  ;;  %v1455_v53 = vld [vmem:[#allocation9 + $0x220] sm:$0xff]  ;;  %v1452_v54 = vld [vmem:[#allocation9 + $0x208] sm:$0xff] }
 0x2cb   : > { %v688_v6 = vpop.f32.mrb[0].mxu1 }
 0x2cc   : > { %v9125_v7 = vmul.f32 -1.442695, %v688_v6  ;;  %v10195_v8 = vpop.f32.mrb[1].mxu1  ;;  %v9181_v6 = vcombine.high %v726_v0, %v730_v2 }
 0x2cd   : > { %v737_v8 = vld [vmem:[#allocation9 + $0xe0] sm:$0xff] }
 0x2ce   : > { %11813 = vpow2.f32 %v9125_v7  ;;  %v733_v7 = vld [vmem:[#allocation9 + $0xc0] sm:$0xff] }
 0x2cf   : > { %v9186_v21 = vcombine.low %v733_v7, %v737_v8 }
 0x2d8   : > { %v11814_v9 = vpop.eup %11813 }
 0x2d9   : > { %v695_v10 = vadd.f32 1.0, %v11814_v9  ;;  %v734_v9 = vld [vmem:[#allocation9 + $0xc8] sm:$0xff] }
 0x2db   : > { %11815 = vrcp.f32 %v695_v10  ;;  %v738_v10 = vld [vmem:[#allocation9 + $0xe8] sm:$0xff] }
 0x2dc   : > { %v9188_v22 = vcombine.low %v734_v9, %v738_v10 }
 0x2e5   : > { %v11816_v14 = vpop.eup %11815 }
 0x2e6   : > { %v701_v15 = vrot.slane %v11816_v14, %v12636_v13  ;;  %v9180_v14 = vcombine.low %v726_v0, %v730_v2  ;;  %v1464_v0 = vld [vmem:[#allocation9 + $0x268] sm:$0xff] }
 0x2e8   : > { %v702_v17 = vmul.f32 %v11849_v16, %v701_v15  ;;  %v703_v19 = vmul.f32 %v11850_v18, %v701_v15  ;;  %v9187_v15 = vcombine.high %v733_v7, %v737_v8  ;;  %v9189_v16 = vcombine.high %v734_v9, %v738_v10  ;;  %v715_v18 = vld [vmem:[#allocation9 + $0x30] sm:$0xff]  ;;  %v1471_v7 = vld [vmem:[#allocation9 + $0x2a0] sm:$0xff]  ;;  %v1468_v8 = vld [vmem:[#allocation9 + $0x288] sm:$0xff] }
 0x2e9   : > { %v1472_v9 = vld [vmem:[#allocation9 + $0x2a8] sm:$0xff] }
 0x2ea   : > { %704 = vst.msk [vmem:[#allocation2 + $0x1] sm:$0xff] %vm522_vm1, %v702_v17  ;;  %705 = vst.msk [vmem:[#allocation2 + $0x9] sm:$0xff] %vm522_vm1, %v703_v19  ;;  %v711_v17 = vld [vmem:[#allocation9 + $0x10] sm:$0xff]  ;;  %v712_v19 = vld [vmem:[#allocation9 + $0x18] sm:$0xff] }
 0x2eb   : > { %v9167_v23 = vcombine.high %v711_v17, %v715_v18  ;;  %v9166_v31 = vcombine.low %v711_v17, %v715_v18  ;;  %v9168_v32 = vcombine.low %v712_v19, %v716_v20  ;;  %v1479_v17 = vld [vmem:[#allocation9 + $0x2e0] sm:$0xff]  ;;  %v1476_v18 = vld [vmem:[#allocation9 + $0x2c8] sm:$0xff] }
 0x2f1   : > { %v741_v24 = vld [vmem:[#allocation2 + $0x1] sm:$0xff]  ;;  %v742_v25 = vld [vmem:[#allocation2 + $0x9] sm:$0xff] }
 0x2f2   : > { %v743_v26 = vpack.c.bf16 %v742_v25, %v741_v24  ;;  %v9169_v24 = vcombine.high %v712_v19, %v716_v20  ;;  %v719_v25 = vld [vmem:[#allocation9 + $0x50] sm:$0xff]  ;;  %v1480_v19 = vld [vmem:[#allocation9 + $0x2e8] sm:$0xff] }
 0x2f3   : > { %v707_v29 = vld [vmem:[#allocation2 + $0x8] sm:$0xff] }
 0x2f4   : > { %9158 = vmatmul.mubr.msk.bf16.vlgmr.msra.gmra.mrb[4].mxu1 %vm522_vm1, %v743_v26  ;;  %9159 = vmatmul.mubr.msk.bf16.vlgmr.msra.gmra.mrb[4].mxu0 %vm522_vm1, %v743_v26 }
 0x2f5   : > { %1027 = vmatpush1.bf16.msra.mxu1 %v9130_v62  ;;  %1070 = vmatpush1.bf16.msra.mxu0 %v9132_v4  ;;  %v725_v62 = vld [vmem:[#allocation9 + $0x80] sm:$0xff]  ;;  %v9172_v4 = vcombine.low %v718_v55, %v722_v56  ;;  %v1456_v55 = vld [vmem:[#allocation9 + $0x228] sm:$0xff] }
 0x2f6   : > { %1028 = vmatprep.subr.bf16.mxu1 %v9139_v27  ;;  %1071 = vmatprep.subr.bf16.mxu0 %v9141_v28  ;;  %v9179_v5 = vcombine.high %v725_v62, %v729_v63  ;;  %v9178_v11 = vcombine.low %v725_v62, %v729_v63  ;;  %v720_v27 = vld [vmem:[#allocation9 + $0x58] sm:$0xff]  ;;  %v706_v28 = vld [vmem:[#allocation2] sm:$0xff] }
 0x2f7   : > { %1058 = vmatprep.mubr.bf16.mxu1 %v12219_v57  ;;  %1101 = vmatprep.mubr.bf16.mxu0 %v12219_v57  ;;  %v1463_v62 = vld [vmem:[#allocation9 + $0x260] sm:$0xff]  ;;  %v1460_v63 = vld [vmem:[#allocation9 + $0x248] sm:$0xff] }
 0x2f9   : > { %1029 = vmatpush1.bf16.msra.mxu1 %v9138_v33  ;;  %1072 = vmatpush1.bf16.msra.mxu0 %v9140_v34  ;;  %v708_v33 = vpack.c.bf16 %v707_v29, %v706_v28  ;;  %v9224_v29 = vcombine.low %v1476_v18, %v1480_v19 }
 0x2fa   : > { %1030 = vmatprep.subr.bf16.mxu1 %v9147_v35  ;;  %1073 = vmatprep.subr.bf16.mxu0 %v9149_v36  ;;  %v9177_v35 = vcombine.high %v720_v27, %v724_v30  ;;  %v727_v36 = vld [vmem:[#allocation9 + $0x90] sm:$0xff] }
 0x2fb   : > { %v9182_v48 = vcombine.low %v727_v36, %v731_v37 }
 0x2fd   : > { %1031 = vmatpush1.bf16.msra.mxu1 %v9146_v41  ;;  %1074 = vmatpush1.bf16.msra.mxu0 %v9148_v42  ;;  %v9176_v41 = vcombine.low %v720_v27, %v724_v30  ;;  %v9183_v42 = vcombine.high %v727_v36, %v731_v37  ;;  %v1458_v27 = vld [vmem:[#allocation9 + $0x238] sm:$0xff]  ;;  %v1448_v36 = vld [vmem:[#allocation2 + $0xa] sm:$0xff] }
 0x2fe   : > { %1032 = vmatprep.subr.bf16.mxu1 %v9155_v43  ;;  %1075 = vmatprep.subr.bf16.mxu0 %v9157_v44  ;;  %v9185_v43 = vcombine.high %v728_v38, %v732_v39  ;;  %v735_v44 = vld [vmem:[#allocation9 + $0xd0] sm:$0xff]  ;;  %v1466_v37 = vld [vmem:[#allocation9 + $0x278] sm:$0xff] }
 0x2ff   : > { %v9190_v56 = vcombine.low %v735_v44, %v739_v45 }
 0x301   : > { %1033 = vmatpush1.bf16.msra.mxu1 %v9154_v49  ;;  %1076 = vmatpush1.bf16.msra.mxu0 %v9156_v50  ;;  %v9184_v49 = vcombine.low %v728_v38, %v732_v39  ;;  %v9191_v50 = vcombine.high %v735_v44, %v739_v45  ;;  %v1473_v44 = vld [vmem:[#allocation9 + $0x2b0] sm:$0xff]  ;;  %v1470_v45 = vld [vmem:[#allocation9 + $0x298] sm:$0xff] }
 0x302   : > { %1275 = vmatprep.subr.bf16.mxu1 %v9163_v51  ;;  %1318 = vmatprep.subr.bf16.mxu0 %v9165_v52  ;;  %v9193_v51 = vcombine.high %v736_v46, %v740_v47  ;;  %v1451_v52 = vld [vmem:[#allocation9 + $0x200] sm:$0xff] }
 0x303   : > { %v9198_v2 = vcombine.low %v1451_v52, %v1455_v53 }
 0x304   : > { %9160 = vmatmul.mubr.msk.bf16.vlgmr.msra.gmra.mrb[8].mxu1 %vm522_vm1, %v743_v26  ;;  %9161 = vmatmul.mubr.msk.bf16.vlgmr.msra.gmra.mrb[8].mxu0 %vm522_vm1, %v743_v26  ;;  %v723_v26 = vld [vmem:[#allocation9 + $0x70] sm:$0xff] }
 0x305   : > { %1276 = vmatpush1.bf16.msra.mxu1 %v9162_v58  ;;  %1319 = vmatpush1.bf16.msra.mxu0 %v9164_v59  ;;  %v9175_v34 = vcombine.high %v719_v25, %v723_v26  ;;  %v9174_v40 = vcombine.low %v719_v25, %v723_v26  ;;  %v9192_v58 = vcombine.low %v736_v46, %v740_v47  ;;  %v1457_v25 = vld [vmem:[#allocation9 + $0x230] sm:$0xff]  ;;  %v1454_v26 = vld [vmem:[#allocation9 + $0x218] sm:$0xff] }
 0x306   : > { %1277 = vmatprep.subr.bf16.mxu1 %v9171_v60  ;;  %1320 = vmatprep.subr.bf16.mxu0 %v9173_v61  ;;  %v9199_v59 = vcombine.high %v1451_v52, %v1455_v53  ;;  %v9201_v60 = vcombine.high %v1452_v54, %v1456_v55  ;;  %v1459_v61 = vld [vmem:[#allocation9 + $0x240] sm:$0xff]  ;;  %v9204_v39 = vcombine.low %v1454_v26, %v1458_v27  ;;  %v1474_v46 = vld [vmem:[#allocation9 + $0x2b8] sm:$0xff]  ;;  %v1481_v52 = vld [vmem:[#allocation9 + $0x2f0] sm:$0xff] }
 0x307   : > { %1307 = vmatprep.mubr.bf16.mxu1 %v12219_v57  ;;  %1350 = vmatprep.mubr.bf16.mxu0 %v12219_v57  ;;  %v9206_v10 = vcombine.low %v1459_v61, %v1463_v62  ;;  %v1478_v53 = vld [vmem:[#allocation9 + $0x2d8] sm:$0xff] }
 0x309   : > { %1278 = vmatpush1.bf16.msra.mxu1 %v9170_v3  ;;  %1321 = vmatpush1.bf16.msra.mxu0 %v9172_v4  ;;  %v9200_v3 = vcombine.low %v1452_v54, %v1456_v55  ;;  %v9207_v4 = vcombine.high %v1459_v61, %v1463_v62  ;;  %v1482_v54 = vld [vmem:[#allocation9 + $0x2f8] sm:$0xff]  ;;  %v2039_v61 = vld [vmem:[%s13460_s6 + $0x88] sm:$0xff] }
 0x30a   : > { %1279 = vmatprep.subr.bf16.mxu1 %v9179_v5  ;;  %1322 = vmatprep.subr.bf16.mxu0 %v9181_v6  ;;  %v9209_v5 = vcombine.high %v1460_v63, %v1464_v0  ;;  %v1467_v6 = vld [vmem:[#allocation9 + $0x280] sm:$0xff]  ;;  %v2071_v62 = vld [vmem:[%s13460_s6 + $0x188] sm:$0xff] }
 0x30b   : > { %v9214_v20 = vcombine.low %v1467_v6, %v1471_v7 }
 0x30d   : > { %1280 = vmatpush1.bf16.msra.mxu1 %v9178_v11  ;;  %1323 = vmatpush1.bf16.msra.mxu0 %v9180_v14  ;;  %v9208_v11 = vcombine.low %v1460_v63, %v1464_v0  ;;  %v9215_v14 = vcombine.high %v1467_v6, %v1471_v7  ;;  %v9228_v0 = vcombine.low %v1478_v53, %v1482_v54  ;;  %v2054_v6 = vld [vmem:[%s13460_s6 + $0x100] sm:$0xff]  ;;  %v2055_v7 = vld [vmem:[%s13460_s6 + $0x108] sm:$0xff] }
 0x30e   : > { %1281 = vmatprep.subr.bf16.mxu1 %v9187_v15  ;;  %1324 = vmatprep.subr.bf16.mxu0 %v9189_v16  ;;  %v9217_v15 = vcombine.high %v1468_v8, %v1472_v9  ;;  %v1475_v16 = vld [vmem:[#allocation9 + $0x2c0] sm:$0xff] }
 0x30f   : > { %v9222_v28 = vcombine.low %v1475_v16, %v1479_v17 }
 0x311   : > { %1282 = vmatpush1.bf16.msra.mxu1 %v9186_v21  ;;  %1325 = vmatpush1.bf16.msra.mxu0 %v9188_v22  ;;  %v9216_v21 = vcombine.low %v1468_v8, %v1472_v9  ;;  %v9223_v22 = vcombine.high %v1475_v16, %v1479_v17  ;;  %v2040_v8 = vld [vmem:[%s13460_s6 + $0x90] sm:$0xff]  ;;  %v2041_v9 = vld [vmem:[%s13460_s6 + $0x98] sm:$0xff] }
 0x312   : > { %1361 = vmatprep.subr.bf16.mxu1 %v9167_v23  ;;  %1404 = vmatprep.subr.bf16.mxu0 %v9169_v24  ;;  %v9225_v23 = vcombine.high %v1476_v18, %v1480_v19  ;;  %v1453_v24 = vld [vmem:[#allocation9 + $0x210] sm:$0xff]  ;;  %v10212_v17 = vpack.c.bf16 %v2041_v9, %v2040_v8  ;;  %v2025_v19 = vld [vmem:[%s13460_s6 + $0x18] sm:$0xff]  ;;  %v2050_v9 = vld [vmem:[%s13460_s6 + $0xe0] sm:$0xff] }
 0x313   : > { %v9203_v30 = vcombine.high %v1453_v24, %v1457_v25  ;;  %v9202_v38 = vcombine.low %v1453_v24, %v1457_v25  ;;  %v2024_v16 = vld [vmem:[%s13460_s6 + $0x10] sm:$0xff]  ;;  %v2042_v24 = vld [vmem:[%s13460_s6 + $0xa0] sm:$0xff]  ;;  %v2043_v25 = vld [vmem:[%s13460_s6 + $0xa8] sm:$0xff] }
 0x314   : > { %9194 = vmatmul.mubr.msk.bf16.vlgmr.msra.gmra.mrb[4].mxu1 %vm522_vm1, %v708_v33  ;;  %9195 = vmatmul.mubr.msk.bf16.vlgmr.msra.gmra.mrb[4].mxu0 %vm522_vm1, %v708_v33 }
 0x315   : > { %1362 = vmatpush1.bf16.msra.mxu1 %v9166_v31  ;;  %1405 = vmatpush1.bf16.msra.mxu0 %v9168_v32  ;;  %v9205_v31 = vcombine.high %v1454_v26, %v1458_v27  ;;  %v1461_v32 = vld [vmem:[#allocation9 + $0x250] sm:$0xff]  ;;  %v2074_v26 = vld [vmem:[%s13460_s6 + $0x1a0] sm:$0xff]  ;;  %v10216_v27 = vpack.c.bf16 %v2043_v25, %v2042_v24  ;;  %v2053_v24 = vld [vmem:[%s13460_s6 + $0xf8] sm:$0xff] }
 0x316   : > { %1363 = vmatprep.subr.bf16.mxu1 %v9175_v34  ;;  %1406 = vmatprep.subr.bf16.mxu0 %v9177_v35  ;;  %v1462_v34 = vld [vmem:[#allocation9 + $0x258] sm:$0xff]  ;;  %v1447_v35 = vld [vmem:[#allocation2 + $0x2] sm:$0xff] }
 0x317   : > { %1393 = vmatprep.mubr.bf16.mxu1 %v12219_v57  ;;  %1436 = vmatprep.mubr.bf16.mxu0 %v12219_v57  ;;  %v2084_v25 = vld [vmem:[%s13460_s6 + $0x1f0] sm:$0xff] }
 0x319   : > { %1364 = vmatpush1.bf16.msra.mxu1 %v9174_v40  ;;  %1407 = vmatpush1.bf16.msra.mxu0 %v9176_v41  ;;  %v12659_v40 = vpack.c.bf16 %v1448_v36, %v1447_v35  ;;  %v2044_v36 = vld [vmem:[%s13460_s6 + $0xb0] sm:$0xff] }
 0x31a   : > { %1365 = vmatprep.subr.bf16.mxu1 %v9183_v42  ;;  %1408 = vmatprep.subr.bf16.mxu0 %v9185_v43  ;;  %v9213_v42 = vcombine.high %v1462_v34, %v1466_v37  ;;  %v1469_v43 = vld [vmem:[#allocation9 + $0x290] sm:$0xff] }
 0x31b   : > { %v9218_v55 = vcombine.low %v1469_v43, %v1473_v44 }
 0x31d   : > { %1366 = vmatpush1.bf16.msra.mxu1 %v9182_v48  ;;  %1409 = vmatpush1.bf16.msra.mxu0 %v9184_v49  ;;  %v9212_v48 = vcombine.low %v1462_v34, %v1466_v37  ;;  %v9219_v49 = vcombine.high %v1469_v43, %v1473_v44  ;;  %v2045_v37 = vld [vmem:[%s13460_s6 + $0xb8] sm:$0xff] }
 0x31e   : > { %1367 = vmatprep.subr.bf16.mxu1 %v9191_v50  ;;  %1410 = vmatprep.subr.bf16.mxu0 %v9193_v51  ;;  %v9221_v50 = vcombine.high %v1470_v45, %v1474_v46  ;;  %v1477_v51 = vld [vmem:[#allocation9 + $0x2d0] sm:$0xff] }
 0x31f   : > { %v9226_v63 = vcombine.low %v1477_v51, %v1481_v52 }
 0x321   : > { %1368 = vmatpush1.bf16.msra.mxu1 %v9190_v56  ;;  %1411 = vmatpush1.bf16.msra.mxu0 %v9192_v58  ;;  %v9220_v56 = vcombine.low %v1470_v45, %v1474_v46  ;;  %v9227_v58 = vcombine.high %v1477_v51, %v1481_v52  ;;  %v2060_v45 = vld [vmem:[%s13460_s6 + $0x130] sm:$0xff]  ;;  %v2061_v46 = vld [vmem:[%s13460_s6 + $0x138] sm:$0xff]  ;;  %v2079_v52 = vld [vmem:[%s13460_s6 + $0x1c8] sm:$0xff] }
 0x322   : > { %1646 = vmatprep.subr.bf16.mxu1 %v9199_v59  ;;  %1689 = vmatprep.subr.bf16.mxu0 %v9201_v60  ;;  %v9229_v59 = vcombine.high %v1478_v53, %v1482_v54  ;;  %v2038_v60 = vld [vmem:[%s13460_s6 + $0x80] sm:$0xff]  ;;  %v2031_v54 = vld [vmem:[%s13460_s6 + $0x48] sm:$0xff] }
 0x323   : > { %v2030_v53 = vld [vmem:[%s13460_s6 + $0x40] sm:$0xff] }
 0x324   : > { %9196 = vmatmul.mubr.msk.bf16.vlgmr.msra.gmra.mrb[8].mxu1 %vm522_vm1, %v708_v33  ;;  %9197 = vmatmul.mubr.msk.bf16.vlgmr.msra.gmra.mrb[8].mxu0 %vm522_vm1, %v708_v33  ;;  %v1465_v33 = vld [vmem:[#allocation9 + $0x270] sm:$0xff] }
 0x325   : > { %1647 = vmatpush1.bf16.msra.mxu1 %v9198_v2  ;;  %1690 = vmatpush1.bf16.msra.mxu0 %v9200_v3  ;;  %v9211_v41 = vcombine.high %v1461_v32, %v1465_v33  ;;  %v9210_v47 = vcombine.low %v1461_v32, %v1465_v33  ;;  %v2022_v2 = vld [vmem:[%s13460_s6] sm:$0xff]  ;;  %v2023_v3 = vld [vmem:[%s13460_s6 + $0x8] sm:$0xff] }
 0x326   : > { %1648 = vmatprep.subr.bf16.mxu1 %v9207_v4  ;;  %1691 = vmatprep.subr.bf16.mxu0 %v9209_v5  ;;  %v10208_v4 = vpack.c.bf16 %v2039_v61, %v2038_v60  ;;  %v2058_v32 = vld [vmem:[%s13460_s6 + $0x120] sm:$0xff]  ;;  %v2059_v33 = vld [vmem:[%s13460_s6 + $0x128] sm:$0xff]  ;;  %v2048_v61 = vld [vmem:[%s13460_s6 + $0xd0] sm:$0xff] }
 0x327   : > { %1678 = vmatprep.mubr.bf16.mxu1 %v12219_v57  ;;  %1721 = vmatprep.mubr.bf16.mxu0 %v12219_v57  ;;  %v10250_v35 = vpack.c.bf16 %v2059_v33, %v2058_v32  ;;  %v2068_v32 = vld [vmem:[%s13460_s6 + $0x170] sm:$0xff]  ;;  %v2069_v33 = vld [vmem:[%s13460_s6 + $0x178] sm:$0xff] }
 0x329   : > { %1649 = vmatpush1.bf16.msra.mxu1 %v9206_v10  ;;  %1692 = vmatpush1.bf16.msra.mxu0 %v9208_v11  ;;  %v2072_v10 = vld [vmem:[%s13460_s6 + $0x190] sm:$0xff]  ;;  %v2073_v11 = vld [vmem:[%s13460_s6 + $0x198] sm:$0xff] }
 0x32a   : > { %1650 = vmatprep.subr.bf16.mxu1 %v9215_v14  ;;  %1693 = vmatprep.subr.bf16.mxu0 %v9217_v15  ;;  %v10210_v14 = vpack.c.bf16 %v2023_v3, %v2022_v2  ;;  %v10242_v15 = vpack.c.bf16 %v2055_v7, %v2054_v6  ;;  %v10244_v18 = vpack.c.bf16 %v2073_v11, %v2072_v10  ;;  %v2032_v2 = vld [vmem:[%s13460_s6 + $0x50] sm:$0xff]  ;;  %v2033_v3 = vld [vmem:[%s13460_s6 + $0x58] sm:$0xff]  ;;  %v2051_v10 = vld [vmem:[%s13460_s6 + $0xe8] sm:$0xff] }
 0x32b   : > { %v2064_v6 = vld [vmem:[%s13460_s6 + $0x150] sm:$0xff]  ;;  %v2065_v7 = vld [vmem:[%s13460_s6 + $0x158] sm:$0xff]  ;;  %v2082_v11 = vld [vmem:[%s13460_s6 + $0x1e0] sm:$0xff] }
 0x32c   : > { %v10262_v8 = vpack.c.bf16 %v2065_v7, %v2064_v6 }
 0x32d   : > { %1651 = vmatpush1.bf16.msra.mxu1 %v9214_v20  ;;  %1694 = vmatpush1.bf16.msra.mxu0 %v9216_v21  ;;  %v2056_v20 = vld [vmem:[%s13460_s6 + $0x110] sm:$0xff]  ;;  %v2057_v21 = vld [vmem:[%s13460_s6 + $0x118] sm:$0xff] }
 0x32e   : > { %1652 = vmatprep.subr.bf16.mxu1 %v9223_v22  ;;  %1695 = vmatprep.subr.bf16.mxu0 %v9225_v23  ;;  %v10214_v22 = vpack.c.bf16 %v2025_v19, %v2024_v16  ;;  %v10246_v23 = vpack.c.bf16 %v2057_v21, %v2056_v20  ;;  %v2034_v16 = vld [vmem:[%s13460_s6 + $0x60] sm:$0xff]  ;;  %v2067_v21 = vld [vmem:[%s13460_s6 + $0x168] sm:$0xff] }
 0x32f   : > { %v2066_v20 = vld [vmem:[%s13460_s6 + $0x160] sm:$0xff] }
 0x331   : > { %1653 = vmatpush1.bf16.msra.mxu1 %v9222_v28  ;;  %1696 = vmatpush1.bf16.msra.mxu0 %v9224_v29  ;;  %v2075_v28 = vld [vmem:[%s13460_s6 + $0x1a8] sm:$0xff]  ;;  %v2026_v29 = vld [vmem:[%s13460_s6 + $0x20] sm:$0xff] }
 0x332   : > { %1732 = vmatprep.subr.bf16.mxu1 %v9203_v30  ;;  %1775 = vmatprep.subr.bf16.mxu0 %v9205_v31  ;;  %v10248_v30 = vpack.c.bf16 %v2075_v28, %v2074_v26  ;;  %v2027_v31 = vld [vmem:[%s13460_s6 + $0x28] sm:$0xff]  ;;  %v2036_v28 = vld [vmem:[%s13460_s6 + $0x70] sm:$0xff] }
 0x333   : > { %v10218_v34 = vpack.c.bf16 %v2027_v31, %v2026_v29  ;;  %v2037_v29 = vld [vmem:[%s13460_s6 + $0x78] sm:$0xff] }
 0x334   : > { %9230 = vmatmul.mubr.msk.bf16.vlgmr.msra.gmra.mrb[4].mxu1 %vm522_vm1, %v12659_v40  ;;  %9231 = vmatmul.mubr.msk.bf16.vlgmr.msra.gmra.mrb[4].mxu0 %vm522_vm1, %v12659_v40  ;;  %v10238_v31 = vpack.c.bf16 %v2037_v29, %v2036_v28  ;;  %v1858_v29 = vsub.s32 5, %v12633_v12 }
 0x335   : > { %1733 = vmatpush1.bf16.msra.mxu1 %v9202_v38  ;;  %1776 = vmatpush1.bf16.msra.mxu0 %v9204_v39  ;;  %v2076_v38 = vld [vmem:[%s13460_s6 + $0x1b0] sm:$0xff]  ;;  %v10220_v39 = vpack.c.bf16 %v2045_v37, %v2044_v36  ;;  %v2103_v36 = vld [vmem:[%s13460_s6 + $0x288] sm:$0xff]  ;;  %v2134_v37 = vld [vmem:[%s13460_s6 + $0x380] sm:$0xff] }
 0x336   : > { %1734 = vmatprep.subr.bf16.mxu1 %v9211_v41  ;;  %1777 = vmatprep.subr.bf16.mxu0 %v9213_v42  ;;  %v2028_v41 = vld [vmem:[%s13460_s6 + $0x30] sm:$0xff]  ;;  %v2029_v42 = vld [vmem:[%s13460_s6 + $0x38] sm:$0xff] }
 0x337   : > { %1764 = vmatprep.mubr.bf16.mxu1 %v12219_v57  ;;  %1807 = vmatprep.mubr.bf16.mxu0 %v12219_v57  ;;  %v2070_v57 = vld [vmem:[%s13460_s6 + $0x180] sm:$0xff]  ;;  %v10222_v44 = vpack.c.bf16 %v2029_v42, %v2028_v41  ;;  %v12876_v41 = vsub.s32 2, %v12633_v12 }
 0x338   : > { %v10240_v5 = vpack.c.bf16 %v2071_v62, %v2070_v57  ;;  %v2049_v57 = vld [vmem:[%s13460_s6 + $0xd8] sm:$0xff]  ;;  %v2080_v62 = vld [vmem:[%s13460_s6 + $0x1d0] sm:$0xff] }
 0x339   : > { %1735 = vmatpush1.bf16.msra.mxu1 %v9210_v47  ;;  %1778 = vmatpush1.bf16.msra.mxu0 %v9212_v48  ;;  %v10254_v47 = vpack.c.bf16 %v2061_v46, %v2060_v45  ;;  %v2046_v48 = vld [vmem:[%s13460_s6 + $0xc0] sm:$0xff] }
 0x33a   : > { %1736 = vmatprep.subr.bf16.mxu1 %v9219_v49  ;;  %1779 = vmatprep.subr.bf16.mxu0 %v9221_v50  ;;  %v2047_v49 = vld [vmem:[%s13460_s6 + $0xc8] sm:$0xff]  ;;  %v2078_v50 = vld [vmem:[%s13460_s6 + $0x1c0] sm:$0xff] }
 0x33b   : > { %v10224_v51 = vpack.c.bf16 %v2047_v49, %v2046_v48  ;;  %v12878_v42 = vld [vmem:[#allocation10] sm:$0xff]  ;;  %v12886_v45 = vld [vmem:[#allocation12] sm:$0xff] }
 0x33c   : > { %v1839_v46 = vrot.slane %v12878_v42, %v12636_v13 }
 0x33d   : > { %1737 = vmatpush1.bf16.msra.mxu1 %v9218_v55  ;;  %1780 = vmatpush1.bf16.msra.mxu0 %v9220_v56  ;;  %v10256_v55 = vpack.c.bf16 %v2079_v52, %v2078_v50  ;;  %v10226_v56 = vpack.c.bf16 %v2031_v54, %v2030_v53  ;;  %v1897_v50 = vrot.slane %v12886_v45, %v12636_v13 }
 0x33e   : > { %1738 = vmatprep.subr.bf16.mxu1 %v9227_v58  ;;  %1781 = vmatprep.subr.bf16.mxu0 %v9229_v59  ;;  %v2062_v58 = vld [vmem:[%s13460_s6 + $0x140] sm:$0xff]  ;;  %v2063_v59 = vld [vmem:[%s13460_s6 + $0x148] sm:$0xff] }
 0x33f   : > { %v10258_v60 = vpack.c.bf16 %v2063_v59, %v2062_v58 }
 0x341   : > { %1739 = vmatpush1.bf16.msra.mxu1 %v9226_v63  ;;  %1782 = vmatpush1.bf16.msra.mxu0 %v9228_v0  ;;  %v10228_v63 = vpack.c.bf16 %v2049_v57, %v2048_v61  ;;  %v2081_v0 = vld [vmem:[%s13460_s6 + $0x1d8] sm:$0xff] }
 0x342   : > { %10209 = vmatprep.subr.bf16.mxu1 %v10208_v4  ;;  %10241 = vmatprep.subr.bf16.mxu0 %v10240_v5  ;;  %v10260_v4 = vpack.c.bf16 %v2081_v0, %v2080_v62  ;;  %v10230_v5 = vpack.c.bf16 %v2033_v3, %v2032_v2 }
 0x344   : > { %9232 = vmatmul.mubr.msk.bf16.vlgmr.msra.gmra.mrb[8].mxu1 %vm522_vm1, %v12659_v40  ;;  %9233 = vmatmul.mubr.msk.bf16.vlgmr.msra.gmra.mrb[8].mxu0 %vm522_vm1, %v12659_v40  ;;  %v2077_v40 = vld [vmem:[%s13460_s6 + $0x1b8] sm:$0xff] }
 0x345   : > { %10211 = vmatpush3.bf16.msra.mxu1 %v10210_v14  ;;  %10243 = vmatpush3.bf16.msra.mxu0 %v10242_v15  ;;  %v10252_v43 = vpack.c.bf16 %v2077_v40, %v2076_v38  ;;  %v10232_v14 = vpack.c.bf16 %v2051_v10, %v2050_v9  ;;  %v2083_v15 = vld [vmem:[%s13460_s6 + $0x1e8] sm:$0xff] }
 0x346   : > { %10213 = vmatprep.subr.bf16.mxu1 %v10212_v17  ;;  %10245 = vmatprep.subr.bf16.mxu0 %v10244_v18  ;;  %v2035_v17 = vld [vmem:[%s13460_s6 + $0x68] sm:$0xff]  ;;  %v10264_v18 = vpack.c.bf16 %v2083_v15, %v2082_v11 }
 0x347   : > { %v10234_v19 = vpack.c.bf16 %v2035_v17, %v2034_v16 }
 0x349   : > { %10215 = vmatpush3.bf16.msra.mxu1 %v10214_v22  ;;  %10247 = vmatpush3.bf16.msra.mxu0 %v10246_v23  ;;  %v10266_v22 = vpack.c.bf16 %v2067_v21, %v2066_v20  ;;  %v2052_v23 = vld [vmem:[%s13460_s6 + $0xf0] sm:$0xff] }
 0x34a   : > { %10217 = vmatprep.subr.bf16.mxu1 %v10216_v27  ;;  %10249 = vmatprep.subr.bf16.mxu0 %v10248_v30  ;;  %v10236_v26 = vpack.c.bf16 %v2053_v24, %v2052_v23  ;;  %v2085_v27 = vld [vmem:[%s13460_s6 + $0x1f8] sm:$0xff] }
 0x34b   : > { %v10268_v30 = vpack.c.bf16 %v2085_v27, %v2084_v25 }
 0x34d   : > { %10219 = vmatpush3.bf16.msra.mxu1 %v10218_v34  ;;  %10251 = vmatpush3.bf16.msra.mxu0 %v10250_v35  ;;  %v10270_v34 = vpack.c.bf16 %v2069_v33, %v2068_v32  ;;  %v2102_v35 = vld [vmem:[%s13460_s6 + $0x280] sm:$0xff] }
 0x34e   : > { %10221 = vmatprep.subr.bf16.mxu1 %v10220_v39  ;;  %10253 = vmatprep.subr.bf16.mxu0 %v10252_v43  ;;  %v10272_v38 = vpack.c.bf16 %v2103_v36, %v2102_v35  ;;  %v2135_v39 = vld [vmem:[%s13460_s6 + $0x388] sm:$0xff]  ;;  %v12881_v43 = vsub.s32 1, %v12633_v12 }
 0x34f   : > { %v10304_v40 = vpack.c.bf16 %v2135_v39, %v2134_v37  ;;  %v1854_v37 = vsub.s32 4, %v12633_v12 }
 0x350   : > { %v1843_v48 = vrot.slane %v12878_v42, %v12881_v43  ;;  %v1901_v54 = vrot.slane %v12886_v45, %v12881_v43 }
 0x351   : > { %10223 = vmatpush3.bf16.msra.mxu1 %v10222_v44  ;;  %10255 = vmatpush3.bf16.msra.mxu0 %v10254_v47  ;;  %v12884_v44 = vsub.s32 3, %v12633_v12  ;;  %v1847_v47 = vrot.slane %v12878_v42, %v12876_v41 }
 0x352   : > { %10225 = vmatprep.subr.bf16.mxu1 %v10224_v51  ;;  %10257 = vmatprep.subr.bf16.mxu0 %v10256_v55  ;;  %v1905_v51 = vrot.slane %v12886_v45, %v12876_v41 }
 0x353   : > { %v1851_v49 = vrot.slane %v12878_v42, %v12884_v44  ;;  %v1909_v55 = vrot.slane %v12886_v45, %v12884_v44 }
 0x355   : > { %10227 = vmatpush3.bf16.msra.mxu1 %v10226_v56  ;;  %10259 = vmatpush3.bf16.msra.mxu0 %v10258_v60 }
 0x356   : > { %10229 = vmatprep.subr.bf16.mxu1 %v10228_v63  ;;  %10261 = vmatprep.subr.bf16.mxu0 %v10260_v4 }
 0x359   : > { %10231 = vmatpush3.bf16.msra.mxu1 %v10230_v5  ;;  %10263 = vmatpush3.bf16.msra.mxu0 %v10262_v8 }
 0x35a   : > { %10233 = vmatprep.subr.bf16.mxu1 %v10232_v14  ;;  %10265 = vmatprep.subr.bf16.mxu0 %v10264_v18 }
 0x35d   : > { %10235 = vmatpush3.bf16.msra.mxu1 %v10234_v19  ;;  %10267 = vmatpush3.bf16.msra.mxu0 %v10266_v22 }
 0x35e   : > { %10237 = vmatprep.subr.bf16.mxu1 %v10236_v26  ;;  %10269 = vmatprep.subr.bf16.mxu0 %v10268_v30  ;;  %v1866_v30 = vsub.s32 7, %v12633_v12 }
 0x361   : > { %10239 = vmatpush3.bf16.msra.mxu1 %v10238_v31  ;;  %10271 = vmatpush3.bf16.msra.mxu0 %v10270_v34 }
 0x362   : > { %10273 = vmatprep.subr.bf16.mxu1 %v10272_v38  ;;  %10305 = vmatprep.subr.bf16.mxu0 %v10304_v40  ;;  %v1862_v38 = vsub.s32 6, %v12633_v12  ;;  %v12963_v12 = vld [vmem:[%s13460_s6 + $0x300] sm:$0xff] }
 0x407   : > { %v1680_v52 = vpop.f32.mrb[4].mxu1  ;;  %v1723_v53 = vpop.f32.mrb[4].mxu0 }
 0x408   : > { %v1876_v56 = vmul.f32 %v1839_v46, %v1680_v52  ;;  %v1878_v58 = vmul.f32 %v1847_v47, %v1723_v53  ;;  %v1682_v59 = vpop.f32.mrb[5].mxu1  ;;  %v1725_v60 = vpop.f32.mrb[5].mxu0  ;;  %v12968_v52 = vld [vmem:[%s13460_s6 + $0x308] sm:$0xff] }
 0x409   : > { %v1877_v61 = vmul.f32 %v1843_v48, %v1682_v59  ;;  %v1879_v57 = vmul.f32 %v1851_v49, %v1725_v60  ;;  %v1684_v62 = vpop.f32.mrb[6].mxu1  ;;  %v1727_v63 = vpop.f32.mrb[6].mxu0  ;;  %v1855_v60 = vrot.slane %v12878_v42, %v1854_v37 }
 0x40a   : > { %v12904_v0 = vadd.f32 %v1897_v50, %v1876_v56  ;;  %v12906_v2 = vadd.f32 %v1905_v51, %v1878_v58  ;;  %v1884_v3 = vmul.f32 %v1839_v46, %v1684_v62  ;;  %v1886_v4 = vmul.f32 %v1847_v47, %v1727_v63  ;;  %v1686_v5 = vpop.f32.mrb[7].mxu1  ;;  %v1729_v6 = vpop.f32.mrb[7].mxu0 }
 0x40b   : > { %v12908_v7 = vadd.f32 %v1901_v54, %v1877_v61  ;;  %v12910_v8 = vadd.f32 %v1909_v55, %v1879_v57  ;;  %v1885_v9 = vmul.f32 %v1843_v48, %v1686_v5  ;;  %v1887_v10 = vmul.f32 %v1851_v49, %v1729_v6  ;;  %v12953_v48 = vld [vmem:[%s13460_s6 + $0x200] sm:$0xff] }
 0x40c   : > { %v12912_v11 = vadd.f32 %v1897_v50, %v1884_v3  ;;  %v12914_v14 = vadd.f32 %v1905_v51, %v1886_v4  ;;  %v1950_v17 = vmax.f32 %v12904_v0, 0.0  ;;  %v1952_v18 = vmax.f32 %v12906_v2, 0.0  ;;  %v12958_v51 = vld [vmem:[%s13460_s6 + $0x208] sm:$0xff]  ;;  %v12979_v4 = vld [vmem:[%s13460_s6 + $0x290] sm:$0xff] }
 0x40d   : > { %v12916_v15 = vadd.f32 %v1901_v54, %v1885_v9  ;;  %v12918_v16 = vadd.f32 %v1909_v55, %v1887_v10  ;;  %v1951_v21 = vmax.f32 %v12908_v7, 0.0  ;;  %v1953_v22 = vmax.f32 %v12910_v8, 0.0 }
 0x40e   : > { %v1958_v19 = vmax.f32 %v12912_v11, 0.0  ;;  %v1960_v20 = vmax.f32 %v12914_v14, 0.0  ;;  %v1859_v46 = vrot.slane %v12878_v42, %v1858_v29  ;;  %v1867_v47 = vrot.slane %v12878_v42, %v1866_v30 }
 0x40f   : > { %v1959_v23 = vmax.f32 %v12916_v15, 0.0  ;;  %v1961_v24 = vmax.f32 %v12918_v16, 0.0  ;;  %v1917_v55 = vrot.slane %v12886_v45, %v1858_v29  ;;  %v1925_v56 = vrot.slane %v12886_v45, %v1866_v30 }
 0x410   : > { %v1966_v25 = vadd.f32 %v1958_v19, %v1950_v17  ;;  %v1980_v26 = vadd.f32 %v1960_v20, %v1952_v18  ;;  %v1913_v61 = vrot.slane %v12886_v45, %v1854_v37  ;;  %v1863_v57 = vrot.slane %v12878_v42, %v1862_v38  ;;  %v12988_v42 = vld [vmem:[%s13460_s6 + $0x298] sm:$0xff] }
 0x411   : > { %v1973_v27 = vadd.f32 %v1959_v23, %v1951_v21  ;;  %v1987_v28 = vadd.f32 %v1961_v24, %v1953_v22  ;;  %v1921_v62 = vrot.slane %v12886_v45, %v1862_v38  ;;  %v12993_v45 = vld [vmem:[%s13460_s6 + $0x390] sm:$0xff] }
 0x412   : > { %v1967_v31 = vrot.slane %v1966_v25, 4  ;;  %v1981_v32 = vrot.slane %v1980_v26, 4 }
 0x413   : > { %v1974_v33 = vrot.slane %v1973_v27, 4  ;;  %v1988_v34 = vrot.slane %v1987_v28, 4 }
 0x414   : > { %v1968_v35 = vadd.f32 %v1967_v31, %v1966_v25  ;;  %v1982_v36 = vadd.f32 %v1981_v32, %v1980_v26  ;;  %v10274_v25 = vpack.c.bf16 %v12958_v51, %v12953_v48  ;;  %v10306_v26 = vpack.c.bf16 %v12968_v52, %v12963_v12 }
 0x415   : > { %v1975_v39 = vadd.f32 %v1974_v33, %v1973_v27  ;;  %v1989_v40 = vadd.f32 %v1988_v34, %v1987_v28  ;;  %v12998_v27 = vld [vmem:[%s13460_s6 + $0x398] sm:$0xff]  ;;  %v10276_v52 = vpack.c.bf16 %v12988_v42, %v12979_v4 }
 0x416   : > { %v1969_v49 = vrot.slane %v1968_v35, 2  ;;  %v1983_v50 = vrot.slane %v1982_v36, 2 }
 0x417   : > { %v1766_v53 = vpop.f32.mrb[8].mxu1  ;;  %v1809_v54 = vpop.f32.mrb[8].mxu0  ;;  %v1976_v58 = vrot.slane %v1975_v39, 2  ;;  %v1990_v59 = vrot.slane %v1989_v40, 2 }
 0x418   : > { %v1768_v63 = vpop.f32.mrb[9].mxu1  ;;  %v1811_v3 = vpop.f32.mrb[9].mxu0  ;;  %v1970_v28 = vadd.f32 %v1969_v49, %v1968_v35  ;;  %v1984_v29 = vadd.f32 %v1983_v50, %v1982_v36  ;;  %v1880_v35 = vmul.f32 %v1855_v60, %v1766_v53  ;;  %v1882_v36 = vmul.f32 %v1863_v57, %v1809_v54 }
 0x419   : > { %v1881_v5 = vmul.f32 %v1859_v46, %v1768_v63  ;;  %v1883_v6 = vmul.f32 %v1867_v47, %v1811_v3  ;;  %v1770_v9 = vpop.f32.mrb[10].mxu1  ;;  %v1813_v10 = vpop.f32.mrb[10].mxu0  ;;  %v1977_v32 = vadd.f32 %v1976_v58, %v1975_v39  ;;  %v1991_v33 = vadd.f32 %v1990_v59, %v1989_v40 }
 0x41a   : > { %v1772_v30 = vpop.f32.mrb[11].mxu1  ;;  %v1815_v31 = vpop.f32.mrb[11].mxu0  ;;  %v1888_v51 = vmul.f32 %v1855_v60, %v1770_v9  ;;  %v1890_v12 = vmul.f32 %v1863_v57, %v1813_v10  ;;  %v10308_v63 = vpack.c.bf16 %v12998_v27, %v12993_v45  ;;  %v1971_v3 = vrot.slane %v1970_v28, 1  ;;  %v2089_v60 = vld [vmem:[%s13460_s6 + $0x218] sm:$0xff]  ;;  %v2120_v57 = vld [vmem:[%s13460_s6 + $0x310] sm:$0xff]  ;;  %v2106_v27 = vld [vmem:[%s13460_s6 + $0x2a0] sm:$0xff] }
 0x41b   : > { %v13000_v34 = vadd.f32 %v1917_v55, %v1881_v5  ;;  %v13002_v37 = vadd.f32 %v1925_v56, %v1883_v6  ;;  %v1889_v38 = vmul.f32 %v1859_v46, %v1772_v30  ;;  %v1891_v48 = vmul.f32 %v1867_v47, %v1815_v31  ;;  %v2121_v45 = vld [vmem:[%s13460_s6 + $0x318] sm:$0xff]  ;;  %v2107_v30 = vld [vmem:[%s13460_s6 + $0x2a8] sm:$0xff] }
 0x41c   : > { %v1978_v46 = vrot.slane %v1977_v32, 1  ;;  %v1992_v47 = vrot.slane %v1991_v33, 1  ;;  %v1985_v4 = vrot.slane %v1984_v29, 1  ;;  %v13016_v5 = vadd.f32 %v1913_v61, %v1888_v51 }
 0x41d   : > { %v13008_v49 = vadd.f32 %v1917_v55, %v1889_v38  ;;  %v13010_v39 = vadd.f32 %v1925_v56, %v1891_v48  ;;  %v1955_v40 = vmax.f32 %v13000_v34, 0.0  ;;  %v1957_v50 = vmax.f32 %v13002_v37, 0.0  ;;  %v2088_v56 = vld [vmem:[%s13460_s6 + $0x210] sm:$0xff]  ;;  %v2091_v48 = vld [vmem:[%s13460_s6 + $0x228] sm:$0xff] }
 0x41e   : > { %v13018_v53 = vadd.f32 %v1921_v62, %v1890_v12  ;;  %v1979_v54 = vadd.f32 %v1978_v46, %v1977_v32  ;;  %v1993_v55 = vadd.f32 %v1992_v47, %v1991_v33  ;;  %v1972_v10 = vadd.f32 %v1971_v3, %v1970_v28  ;;  %v2138_v28 = vld [vmem:[%s13460_s6 + $0x3a0] sm:$0xff]  ;;  %v2123_v46 = vld [vmem:[%s13460_s6 + $0x328] sm:$0xff]  ;;  %v2108_v47 = vld [vmem:[%s13460_s6 + $0x2b0] sm:$0xff] }
 0x41f   : > { %v1963_v58 = vmax.f32 %v13008_v49, 0.0  ;;  %v1965_v59 = vmax.f32 %v13010_v39, 0.0  ;;  %v1986_v42 = vadd.f32 %v1985_v4, %v1984_v29  ;;  %v13046_v31 = vadd.f32 %v1913_v61, %v1880_v35  ;;  %v2139_v29 = vld [vmem:[%s13460_s6 + $0x3a8] sm:$0xff]  ;;  %v2090_v61 = vld [vmem:[%s13460_s6 + $0x220] sm:$0xff] }
 0x420   : > { %2214 = vmatprep.mubr.f32.mxu1 %v1979_v54  ;;  %2284 = vmatprep.mubr.f32.mxu0 %v1993_v55  ;;  %v13054_v32 = vadd.f32 %v1921_v62, %v1882_v36  ;;  %v1962_v51 = vmax.f32 %v13016_v5, 0.0  ;;  %v10278_v12 = vpack.c.bf16 %v2089_v60, %v2088_v56  ;;  %v10310_v35 = vpack.c.bf16 %v2121_v45, %v2120_v57  ;;  %v2122_v36 = vld [vmem:[%s13460_s6 + $0x320] sm:$0xff]  ;;  %v2109_v54 = vld [vmem:[%s13460_s6 + $0x2b8] sm:$0xff]  ;;  %v2140_v55 = vld [vmem:[%s13460_s6 + $0x3b0] sm:$0xff] }
 0x421   : > { %v2001_v6 = vadd.f32 %v1963_v58, %v1955_v40  ;;  %v2015_v9 = vadd.f32 %v1965_v59, %v1957_v50  ;;  %2215 = vmatmul.mubr.f32.vlgmr.msra.gmra.mrb[2].mxu1 %v1972_v10  ;;  %2285 = vmatmul.mubr.f32.vlgmr.msra.gmra.mrb[2].mxu0 %v1986_v42  ;;  %v10280_v62 = vpack.c.bf16 %v2107_v30, %v2106_v27  ;;  %v1964_v3 = vmax.f32 %v13018_v53, 0.0  ;;  %v2141_v56 = vld [vmem:[%s13460_s6 + $0x3b8] sm:$0xff]  ;;  %v10765_v49 = vld [vmem:[#allocation15 + $0xa24] ss:$16 sps:$4 sm:$0xff]  }
 0x422   : > { %10275 = vmatpush3.bf16.msra.mxu1 %v10274_v25  ;;  %10307 = vmatpush3.bf16.msra.mxu0 %v10306_v26  ;;  %v10312_v26 = vpack.c.bf16 %v2139_v29, %v2138_v28  ;;  %v1954_v60 = vmax.f32 %v13046_v31, 0.0  ;;  %v10282_v57 = vpack.c.bf16 %v2091_v48, %v2090_v61  ;;  %v10284_v27 = vpack.c.bf16 %v2109_v54, %v2108_v47  ;;  %v2124_v28 = vld [vmem:[%s13460_s6 + $0x330] sm:$0xff]  ;;  %v2125_v29 = vld [vmem:[%s13460_s6 + $0x338] sm:$0xff]  ;;  %v2111_v61 = vld [vmem:[%s13460_s6 + $0x2c8] sm:$0xff] }
 0x423   : > { %v2002_v33 = vrot.slane %v2001_v6, 4  ;;  %v2016_v38 = vrot.slane %v2015_v9, 4  ;;  %10277 = vmatprep.subr.bf16.mxu1 %v10276_v52  ;;  %10309 = vmatprep.subr.bf16.mxu0 %v10308_v63  ;;  %v10314_v52 = vpack.c.bf16 %v2123_v46, %v2122_v36  ;;  %v2092_v63 = vld [vmem:[%s13460_s6 + $0x230] sm:$0xff]  ;;  %v10316_v30 = vpack.c.bf16 %v2141_v56, %v2140_v55  ;;  %v2095_v56 = vld [vmem:[%s13460_s6 + $0x248] sm:$0xff] }
 0x424   : > { %v1994_v45 = vadd.f32 %v1962_v51, %v1954_v60 }
 0x425   : > { %v2003_v4 = vadd.f32 %v2002_v33, %v2001_v6  ;;  %v2017_v25 = vadd.f32 %v2016_v38, %v2015_v9  ;;  %v1956_v6 = vmax.f32 %v13054_v32, 0.0  ;;  %v2093_v9 = vld [vmem:[%s13460_s6 + $0x238] sm:$0xff]  ;;  %v2110_v33 = vld [vmem:[%s13460_s6 + $0x2c0] sm:$0xff] }
 0x426   : > { %10279 = vmatpush3.bf16.msra.mxu1 %v10278_v12  ;;  %10311 = vmatpush3.bf16.msra.mxu0 %v10310_v35  ;;  %v2142_v12 = vld [vmem:[%s13460_s6 + $0x3c0] sm:$0xff]  ;;  %v2143_v35 = vld [vmem:[%s13460_s6 + $0x3c8] sm:$0xff]  ;;  %v10286_v46 = vpack.c.bf16 %v2093_v9, %v2092_v63  ;;  %v1995_v63 = vrot.slane %v1994_v45, 4 }
 0x427   : > { %v2004_v10 = vrot.slane %v2003_v4, 2  ;;  %v2018_v42 = vrot.slane %v2017_v25, 2  ;;  %v2008_v38 = vadd.f32 %v1964_v3, %v1956_v6  ;;  %10281 = vmatprep.subr.bf16.mxu1 %v10280_v62  ;;  %10313 = vmatprep.subr.bf16.mxu0 %v10312_v26  ;;  %v10318_v62 = vpack.c.bf16 %v2125_v29, %v2124_v28  ;;  %v2113_v28 = vld [vmem:[%s13460_s6 + $0x2d8] sm:$0xff]  ;;  %v2144_v29 = vld [vmem:[%s13460_s6 + $0x3d0] sm:$0xff] }
 0x428   : > { %v10288_v26 = vpack.c.bf16 %v2111_v61, %v2110_v33  ;;  %v10320_v55 = vpack.c.bf16 %v2143_v35, %v2142_v12  ;;  %v2097_v12 = vld [vmem:[%s13460_s6 + $0x258] sm:$0xff]  ;;  %v1996_v35 = vadd.f32 %v1995_v63, %v1994_v45  ;;  %v2115_v45 = vld [vmem:[%s13460_s6 + $0x2e8] sm:$0xff]  ;;  %v2130_v63 = vld [vmem:[%s13460_s6 + $0x360] sm:$0xff] }
 0x429   : > { %v2005_v48 = vadd.f32 %v2004_v10, %v2003_v4  ;;  %v2019_v36 = vadd.f32 %v2018_v42, %v2017_v25  ;;  %v2094_v4 = vld [vmem:[%s13460_s6 + $0x240] sm:$0xff]  ;;  %v2009_v9 = vrot.slane %v2008_v38, 4  ;;  %v2127_v10 = vld [vmem:[%s13460_s6 + $0x348] sm:$0xff]  ;;  %v2112_v42 = vld [vmem:[%s13460_s6 + $0x2d0] sm:$0xff] }
 0x42a   : > { %10283 = vmatpush3.bf16.msra.mxu1 %v10282_v57  ;;  %10315 = vmatpush3.bf16.msra.mxu0 %v10314_v52  ;;  %v2126_v25 = vld [vmem:[%s13460_s6 + $0x340] sm:$0xff]  ;;  %v10292_v61 = vpack.c.bf16 %v2113_v28, %v2112_v42  ;;  %v2131_v42 = vld [vmem:[%s13460_s6 + $0x368] sm:$0xff]  ;;  %v2116_v28 = vld [vmem:[%s13460_s6 + $0x2f0] sm:$0xff] }
 0x42b   : > { %v2006_v47 = vrot.slane %v2005_v48, 1  ;;  %v2020_v54 = vrot.slane %v2019_v36, 1  ;;  %10285 = vmatprep.subr.bf16.mxu1 %v10284_v27  ;;  %10317 = vmatprep.subr.bf16.mxu0 %v10316_v30  ;;  %v2145_v27 = vld [vmem:[%s13460_s6 + $0x3d8] sm:$0xff]  ;;  %v10290_v30 = vpack.c.bf16 %v2095_v56, %v2094_v4  ;;  %v10322_v33 = vpack.c.bf16 %v2127_v10, %v2126_v25  ;;  %v2098_v56 = vld [vmem:[%s13460_s6 + $0x260] sm:$0xff]  ;;  %v2099_v25 = vld [vmem:[%s13460_s6 + $0x268] sm:$0xff] }
 0x42d   : > { %v2007_v57 = vadd.f32 %v2006_v47, %v2005_v48  ;;  %v2021_v52 = vadd.f32 %v2020_v54, %v2019_v36  ;;  %v2096_v48 = vld [vmem:[%s13460_s6 + $0x250] sm:$0xff]  ;;  %v2010_v36 = vadd.f32 %v2009_v9, %v2008_v38  ;;  %v10324_v47 = vpack.c.bf16 %v2145_v27, %v2144_v29  ;;  %v2129_v54 = vld [vmem:[%s13460_s6 + $0x358] sm:$0xff]  ;;  %v2146_v38 = vld [vmem:[%s13460_s6 + $0x3e0] sm:$0xff] }
 0x42e   : > { %10287 = vmatpush3.bf16.msra.mxu1 %v10286_v46  ;;  %10319 = vmatpush3.bf16.msra.mxu0 %v10318_v62  ;;  %v2128_v46 = vld [vmem:[%s13460_s6 + $0x350] sm:$0xff]  ;;  %v2114_v62 = vld [vmem:[%s13460_s6 + $0x2e0] sm:$0xff]  ;;  %v1997_v9 = vrot.slane %v1996_v35, 2  ;;  %v2117_v29 = vld [vmem:[%s13460_s6 + $0x2f8] sm:$0xff] }
 0x42f   : > { %2354 = vmatprep.mubr.f32.mxu1 %v2007_v57  ;;  %2424 = vmatprep.mubr.f32.mxu0 %v2021_v52  ;;  %v10326_v4 = vpack.c.bf16 %v2129_v54, %v2128_v46  ;;  %v2011_v57 = vrot.slane %v2010_v36, 2  ;;  %v10296_v52 = vpack.c.bf16 %v2115_v45, %v2114_v62  ;;  %v2148_v27 = vld [vmem:[%s13460_s6 + $0x3f0] sm:$0xff]  ;;  %v2101_v62 = vld [vmem:[%s13460_s6 + $0x278] sm:$0xff] }
 0x430   : > { %10289 = vmatprep.subr.bf16.mxu1 %v10288_v26  ;;  %10321 = vmatprep.subr.bf16.mxu0 %v10320_v55  ;;  %v2147_v26 = vld [vmem:[%s13460_s6 + $0x3e8] sm:$0xff]  ;;  %v10294_v55 = vpack.c.bf16 %v2097_v12, %v2096_v48  ;;  %v10300_v48 = vpack.c.bf16 %v2117_v29, %v2116_v28  ;;  %v2100_v12 = vld [vmem:[%s13460_s6 + $0x270] sm:$0xff] }
 0x431   : > { %v10328_v10 = vpack.c.bf16 %v2147_v26, %v2146_v38  ;;  %v2012_v46 = vadd.f32 %v2011_v57, %v2010_v36  ;;  %v2132_v45 = vld [vmem:[%s13460_s6 + $0x370] sm:$0xff]  ;;  %v2133_v38 = vld [vmem:[%s13460_s6 + $0x378] sm:$0xff]  ;;  %v10302_v26 = vpack.c.bf16 %v2101_v62, %v2100_v12  ;;  %v2449_v12 = vld [vmem:[#allocation13 + $0x98] sm:$0xff] }
 0x432   : > { %10291 = vmatpush3.bf16.msra.mxu1 %v10290_v30  ;;  %10323 = vmatpush3.bf16.msra.mxu0 %v10322_v33  ;;  %v2149_v30 = vld [vmem:[%s13460_s6 + $0x3f8] sm:$0xff]  ;;  %v10298_v33 = vpack.c.bf16 %v2099_v25, %v2098_v56  ;;  %v2446_v62 = vld [vmem:[#allocation13 + $0x80] sm:$0xff] }
 0x433   : > { %10293 = vmatprep.subr.bf16.mxu1 %v10292_v61  ;;  %10325 = vmatprep.subr.bf16.mxu0 %v10324_v47  ;;  %v10330_v61 = vpack.c.bf16 %v2131_v42, %v2130_v63  ;;  %v1998_v47 = vadd.f32 %v1997_v9, %v1996_v35  ;;  %v10332_v54 = vpack.c.bf16 %v2149_v30, %v2148_v27  ;;  %v2431_v25 = vld [vmem:[#allocation13 + $0x8] sm:$0xff]  ;;  %v2433_v9 = vld [vmem:[#allocation13 + $0x18] sm:$0xff]  ;;  %v2438_v42 = vld [vmem:[#allocation13 + $0x40] sm:$0xff] }
 0x434   : > { %v10334_v35 = vpack.c.bf16 %v2133_v38, %v2132_v45  ;;  %v2439_v63 = vld [vmem:[#allocation13 + $0x48] sm:$0xff]  ;;  %v2432_v27 = vld [vmem:[#allocation13 + $0x10] sm:$0xff]  ;;  %v2454_v45 = vld [vmem:[#allocation13 + $0xc0] sm:$0xff] }
 0x435   : > { %v1999_v36 = vrot.slane %v1998_v47, 1  ;;  %v10336_v57 = vpack.c.bf16 %v2439_v63, %v2431_v25  ;;  %v2440_v30 = vld [vmem:[#allocation13 + $0x50] sm:$0xff]  ;;  %v2465_v25 = vld [vmem:[#allocation13 + $0x118] sm:$0xff] }
 0x436   : > { %10295 = vmatpush3.bf16.msra.mxu1 %v10294_v55  ;;  %10327 = vmatpush3.bf16.msra.mxu0 %v10326_v4  ;;  %v2013_v55 = vrot.slane %v2012_v46, 1  ;;  %v2448_v38 = vld [vmem:[#allocation13 + $0x90] sm:$0xff]  ;;  %v2473_v63 = vld [vmem:[#allocation13 + $0x158] sm:$0xff] }
 0x437   : > { %10297 = vmatprep.subr.bf16.mxu1 %v10296_v52  ;;  %10329 = vmatprep.subr.bf16.mxu0 %v10328_v10  ;;  %v2000_v4 = vadd.f32 %v1999_v36, %v1998_v47  ;;  %v2441_v52 = vld [vmem:[#allocation13 + $0x58] sm:$0xff]  ;;  %v2430_v10 = vld [vmem:[#allocation13] sm:$0xff]  ;;  %v2463_v36 = vld [vmem:[#allocation13 + $0x108] sm:$0xff] }
 0x438   : > { %v2014_v56 = vadd.f32 %v2013_v55, %v2012_v46  ;;  %v10352_v28 = vpack.c.bf16 %v2441_v52, %v2433_v9  ;;  %v10338_v29 = vpack.c.bf16 %v2438_v42, %v2430_v10  ;;  %v2457_v47 = vld [vmem:[#allocation13 + $0xd8] sm:$0xff]  ;;  %v2471_v55 = vld [vmem:[#allocation13 + $0x148] sm:$0xff]  ;;  %v10360_v9 = vpack.c.bf16 %v2473_v63, %v2465_v25  ;;  %v2470_v52 = vld [vmem:[#allocation13 + $0x140] sm:$0xff] }
 0x439   : > { %v2464_v10 = vld [vmem:[#allocation13 + $0x110] sm:$0xff] }
 0x43a   : > { %10299 = vmatpush3.bf16.msra.mxu1 %v10298_v33  ;;  %10331 = vmatpush3.bf16.msra.mxu0 %v10330_v61  ;;  %v2447_v33 = vld [vmem:[#allocation13 + $0x88] sm:$0xff]  ;;  %v10354_v61 = vpack.c.bf16 %v2440_v30, %v2432_v27 }
 0x43b   : > { %10301 = vmatprep.subr.bf16.mxu1 %v10300_v48  ;;  %10333 = vmatprep.subr.bf16.mxu0 %v10332_v54  ;;  %v2455_v48 = vld [vmem:[#allocation13 + $0xc8] sm:$0xff]  ;;  %v10356_v54 = vpack.c.bf16 %v2457_v47, %v2449_v12  ;;  %v2478_v12 = vld [vmem:[#allocation13 + $0x180] sm:$0xff] }
 0x43c   : > { %v10340_v46 = vpack.c.bf16 %v2455_v48, %v2447_v33  ;;  %v2479_v27 = vld [vmem:[#allocation13 + $0x188] sm:$0xff]  ;;  %v2481_v33 = vld [vmem:[#allocation13 + $0x198] sm:$0xff]  ;;  %v2486_v47 = vld [vmem:[#allocation13 + $0x1c0] sm:$0xff] }
 0x43d   : > { %v2487_v30 = vld [vmem:[#allocation13 + $0x1c8] sm:$0xff]  ;;  %v2489_v48 = vld [vmem:[#allocation13 + $0x1d8] sm:$0xff] }
 0x43e   : > { %10303 = vmatpush3.bf16.msra.mxu1 %v10302_v26  ;;  %10335 = vmatpush3.bf16.msra.mxu0 %v10334_v35  ;;  %v10342_v26 = vpack.c.bf16 %v2454_v45, %v2446_v62  ;;  %v2456_v35 = vld [vmem:[#allocation13 + $0xd0] sm:$0xff] }
 0x43f   : > { %10337 = vmatprep.subr.bf16.mxu1 %v10336_v57  ;;  %10353 = vmatprep.subr.bf16.mxu0 %v10352_v28  ;;  %v2462_v57 = vld [vmem:[#allocation13 + $0x100] sm:$0xff]  ;;  %v2472_v28 = vld [vmem:[#allocation13 + $0x150] sm:$0xff] }
 0x440   : > { %v10346_v42 = vpack.c.bf16 %v2470_v52, %v2462_v57  ;;  %v2480_v62 = vld [vmem:[#allocation13 + $0x190] sm:$0xff] }
 0x441   : > { %2355 = vmatmul.mubr.f32.vlgmr.msra.gmra.mrb[12].mxu1 %v2000_v4  ;;  %2425 = vmatmul.mubr.f32.vlgmr.msra.gmra.mrb[12].mxu0 %v2014_v56  ;;  %v10358_v4 = vpack.c.bf16 %v2456_v35, %v2448_v38  ;;  %v10344_v56 = vpack.c.bf16 %v2471_v55, %v2463_v36  ;;  %v2488_v45 = vld [vmem:[#allocation13 + $0x1d0] sm:$0xff]  ;;  %v2443_v35 = vld [vmem:[#allocation13 + $0x68] sm:$0xff]  ;;  %v2437_v36 = vld [vmem:[#allocation13 + $0x38] sm:$0xff] }
 0x442   : > { %2561 = vmatprep.mubr.f32.mxu1 %v12218_v1  ;;  %2632 = vmatprep.mubr.f32.mxu0 %v12218_v1  ;;  %v10366_v38 = vpack.c.bf16 %v2488_v45, %v2480_v62  ;;  %v2459_v62 = vld [vmem:[#allocation13 + $0xe8] sm:$0xff]  ;;  %v2453_v45 = vld [vmem:[#allocation13 + $0xb8] sm:$0xff] }
 0x443   : > { %10339 = vmatpush1.bf16.msra.mxu1 %v10338_v29  ;;  %10355 = vmatpush1.bf16.msra.mxu0 %v10354_v61  ;;  %v10362_v29 = vpack.c.bf16 %v2472_v28, %v2464_v10  ;;  %v10348_v61 = vpack.c.bf16 %v2487_v30, %v2479_v27 }
 0x444   : > { %10341 = vmatprep.subr.bf16.mxu1 %v10340_v46  ;;  %10357 = vmatprep.subr.bf16.mxu0 %v10356_v54  ;;  %v10364_v46 = vpack.c.bf16 %v2489_v48, %v2481_v33  ;;  %v10350_v54 = vpack.c.bf16 %v2486_v47, %v2478_v12  ;;  %v2434_v33 = vld [vmem:[#allocation13 + $0x20] sm:$0xff]  ;;  %v2436_v47 = vld [vmem:[#allocation13 + $0x30] sm:$0xff] }
 0x447   : > { %10343 = vmatpush1.bf16.msra.mxu1 %v10342_v26  ;;  %10359 = vmatpush1.bf16.msra.mxu0 %v10358_v4  ;;  %v2435_v26 = vld [vmem:[#allocation13 + $0x28] sm:$0xff]  ;;  %v2445_v4 = vld [vmem:[#allocation13 + $0x78] sm:$0xff] }
 0x448   : > { %10345 = vmatprep.subr.bf16.mxu1 %v10344_v56  ;;  %10361 = vmatprep.subr.bf16.mxu0 %v10360_v9  ;;  %v10368_v55 = vpack.c.bf16 %v2443_v35, %v2435_v26  ;;  %v10384_v56 = vpack.c.bf16 %v2445_v4, %v2437_v36  ;;  %v2458_v4 = vld [vmem:[#allocation13 + $0xe0] sm:$0xff] }
 0x44b   : > { %10347 = vmatpush1.bf16.msra.mxu1 %v10346_v42  ;;  %10363 = vmatpush1.bf16.msra.mxu0 %v10362_v29 }
 0x44c   : > { %10349 = vmatprep.subr.bf16.mxu1 %v10348_v61  ;;  %10365 = vmatprep.subr.bf16.mxu0 %v10364_v46  ;;  %v2442_v61 = vld [vmem:[#allocation13 + $0x60] sm:$0xff]  ;;  %v2444_v46 = vld [vmem:[#allocation13 + $0x70] sm:$0xff] }
 0x44d   : > { %v10370_v35 = vpack.c.bf16 %v2442_v61, %v2434_v33  ;;  %v10386_v36 = vpack.c.bf16 %v2444_v46, %v2436_v47  ;;  %v2474_v33 = vld [vmem:[#allocation13 + $0x160] sm:$0xff]  ;;  %v2476_v47 = vld [vmem:[#allocation13 + $0x170] sm:$0xff]  ;;  %v2483_v46 = vld [vmem:[#allocation13 + $0x1a8] sm:$0xff] }
 0x44f   : > { %10351 = vmatpush1.bf16.msra.mxu1 %v10350_v54  ;;  %10367 = vmatpush1.bf16.msra.mxu0 %v10366_v38  ;;  %v2451_v54 = vld [vmem:[#allocation13 + $0xa8] sm:$0xff]  ;;  %v2461_v38 = vld [vmem:[#allocation13 + $0xf8] sm:$0xff] }
 0x450   : > { %10369 = vmatprep.subr.bf16.mxu1 %v10368_v55  ;;  %10385 = vmatprep.subr.bf16.mxu0 %v10384_v56  ;;  %v2450_v55 = vld [vmem:[#allocation13 + $0xa0] sm:$0xff] }
 0x4f4   : > { %v10064_v25 = vpop.f32.mrb[2].mxu1  ;;  %v10099_v63 = vpop.f32.mrb[2].mxu0 }
 0x4f5   : > { %v10065_v9 = vpop.f32.mrb[3].mxu1  ;;  %v10100_v57 = vpop.f32.mrb[3].mxu0 }
 0x4f6   : > { %v10066_v52 = vadd.f32 %v10065_v9, %v10064_v25  ;;  %v10101_v10 = vadd.f32 %v10100_v57, %v10099_v63  ;;  %v10372_v25 = vpack.c.bf16 %v2459_v62, %v2451_v54  ;;  %v10388_v63 = vpack.c.bf16 %v2461_v38, %v2453_v45  ;;  %v2452_v9 = vld [vmem:[#allocation13 + $0xb0] sm:$0xff]  ;;  %v2491_v54 = vld [vmem:[#allocation13 + $0x1e8] sm:$0xff]  ;;  %v2485_v62 = vld [vmem:[#allocation13 + $0x1b8] sm:$0xff] }
 0x4f7   : > { %v2460_v57 = vld [vmem:[#allocation13 + $0xf0] sm:$0xff]  ;;  %v2493_v45 = vld [vmem:[#allocation13 + $0x1f8] sm:$0xff] }
 0x4f8   : > { %v2287_v42 = vadd.f32 %v10101_v10, %v10066_v52  ;;  %v2467_v52 = vld [vmem:[#allocation13 + $0x128] sm:$0xff] }
 0x4f9   : > { %v2475_v10 = vld [vmem:[#allocation13 + $0x168] sm:$0xff] }
 0x4fa   : > { %v10376_v61 = vpack.c.bf16 %v2475_v10, %v2467_v52  ;;  %v10663_v52 = vld [vmem:[#allocation15 + $0x804] ss:$16 sps:$4 sm:$0xff]   ;;  %v10661_v10 = vld [vmem:[#allocation15 + $0x800] ss:$16 sps:$4 sm:$0xff]  }
 0x514   : > { %v10134_v28 = vpop.f32.mrb[12].mxu1  ;;  %v10169_v29 = vpop.f32.mrb[12].mxu0 }
 0x515   : > { %v10135_v27 = vpop.f32.mrb[13].mxu1  ;;  %v10170_v30 = vpop.f32.mrb[13].mxu0 }
 0x516   : > { %v10136_v48 = vadd.f32 %v10135_v27, %v10134_v28  ;;  %v10171_v12 = vadd.f32 %v10170_v30, %v10169_v29  ;;  %v2469_v28 = vld [vmem:[#allocation13 + $0x138] sm:$0xff]  ;;  %v10390_v27 = vpack.c.bf16 %v2460_v57, %v2452_v9  ;;  %v2466_v30 = vld [vmem:[#allocation13 + $0x120] sm:$0xff] }
 0x517   : > { %v2477_v29 = vld [vmem:[#allocation13 + $0x178] sm:$0xff]  ;;  %v10378_v38 = vpack.c.bf16 %v2474_v33, %v2466_v30  ;;  %v10675_v33 = vld [vmem:[#allocation15 + $0x844] ss:$16 sps:$4 sm:$0xff]  }
 0x518   : > { %v2357_v26 = vadd.f32 %v10136_v48, %v2287_v42  ;;  %v10374_v42 = vpack.c.bf16 %v2458_v4, %v2450_v55  ;;  %v10392_v48 = vpack.c.bf16 %v2477_v29, %v2469_v28  ;;  %v10396_v55 = vpack.c.bf16 %v2493_v45, %v2485_v62  ;;  %v2490_v4 = vld [vmem:[#allocation13 + $0x1e0] sm:$0xff]  ;;  %v10664_v28 = vld [vmem:[#allocation15 + $0x808] ss:$16 sps:$4 sm:$0xff]   ;;  %v10690_v45 = vld [vmem:[#allocation15 + $0x88c] ss:$16 sps:$4 sm:$0xff]  }
 0x519   : > { %v10669_v29 = vld [vmem:[#allocation15 + $0x824] ss:$16 sps:$4 sm:$0xff]   ;;  %v10670_v30 = vld [vmem:[#allocation15 + $0x828] ss:$16 sps:$4 sm:$0xff]  }
 0x51a   : > { %v2427_v56 = vadd.f32 %v10171_v12, %v2357_v26  ;;  %v2468_v12 = vld [vmem:[#allocation13 + $0x130] sm:$0xff] }
 0x51b   : > { %v10394_v26 = vpack.c.bf16 %v2476_v47, %v2468_v12  ;;  %v10676_v12 = vld [vmem:[#allocation15 + $0x848] ss:$16 sps:$4 sm:$0xff]   ;;  %v10681_v47 = vld [vmem:[#allocation15 + $0x864] ss:$16 sps:$4 sm:$0xff]  }
 0x51c   : > { %9234 = vmatmul.mubr.msk.f32.vlgmr.msra.gmra.mrb[14].mxu1 %vm522_vm1, %v2427_v56  ;;  %9235 = vmatmul.mubr.msk.f32.vlgmr.msra.gmra.mrb[14].mxu0 %vm522_vm1, %v2427_v56  ;;  %v10687_v62 = vld [vmem:[#allocation15 + $0x884] ss:$16 sps:$4 sm:$0xff]  }
 0x51d   : > { %10371 = vmatpush1.bf16.msra.mxu1 %v10370_v35  ;;  %10387 = vmatpush1.bf16.msra.mxu0 %v10386_v36  ;;  %v2482_v35 = vld [vmem:[#allocation13 + $0x1a0] sm:$0xff]  ;;  %v10380_v36 = vpack.c.bf16 %v2491_v54, %v2483_v46  ;;  %v10684_v46 = vld [vmem:[#allocation15 + $0x86c] ss:$16 sps:$4 sm:$0xff]  }
 0x51e   : > { %10373 = vmatprep.subr.bf16.mxu1 %v10372_v25  ;;  %10389 = vmatprep.subr.bf16.mxu0 %v10388_v63  ;;  %v2484_v25 = vld [vmem:[#allocation13 + $0x1b0] sm:$0xff]  ;;  %v10382_v9 = vpack.c.bf16 %v2490_v4, %v2482_v35  ;;  %v10694_v4 = vld [vmem:[#allocation15 + $0x8a8] ss:$16 sps:$4 sm:$0xff]  }
 0x51f   : > { %2703 = vmatprep.mubr.f32.mxu1 %v12218_v1  ;;  %2774 = vmatprep.mubr.f32.mxu0 %v12218_v1  ;;  %v2492_v63 = vld [vmem:[#allocation13 + $0x1f0] sm:$0xff]  ;;  %v10666_v1 = vld [vmem:[#allocation15 + $0x80c] ss:$16 sps:$4 sm:$0xff]  }
 0x520   : > { %v10398_v57 = vpack.c.bf16 %v2492_v63, %v2484_v25  ;;  %v10679_v54 = vld [vmem:[#allocation15 + $0x860] ss:$16 sps:$4 sm:$0xff]   ;;  %v10693_v35 = vld [vmem:[#allocation15 + $0x8a4] ss:$16 sps:$4 sm:$0xff]   ;;  %v10702_v63 = vld [vmem:[#allocation15 + $0x8cc] ss:$16 sps:$4 sm:$0xff]  }
 0x521   : > { %10375 = vmatpush1.bf16.msra.mxu1 %v10374_v42  ;;  %10391 = vmatpush1.bf16.msra.mxu0 %v10390_v27  ;;  %v10672_v42 = vld [vmem:[#allocation15 + $0x82c] ss:$16 sps:$4 sm:$0xff]   ;;  %v10667_v27 = vld [vmem:[#allocation15 + $0x820] ss:$16 sps:$4 sm:$0xff]   ;;  %v10699_v25 = vld [vmem:[#allocation15 + $0x8c4] ss:$16 sps:$4 sm:$0xff]  }
 0x522   : > { %10377 = vmatprep.subr.bf16.mxu1 %v10376_v61  ;;  %10393 = vmatprep.subr.bf16.mxu0 %v10392_v48  ;;  %v10678_v61 = vld [vmem:[#allocation15 + $0x84c] ss:$16 sps:$4 sm:$0xff]   ;;  %v10673_v48 = vld [vmem:[#allocation15 + $0x840] ss:$16 sps:$4 sm:$0xff]  }
 0x525   : > { %10379 = vmatpush1.bf16.msra.mxu1 %v10378_v38  ;;  %10395 = vmatpush1.bf16.msra.mxu0 %v10394_v26  ;;  %v10685_v38 = vld [vmem:[#allocation15 + $0x880] ss:$16 sps:$4 sm:$0xff]   ;;  %v10688_v26 = vld [vmem:[#allocation15 + $0x888] ss:$16 sps:$4 sm:$0xff]  }
 0x526   : > { %10381 = vmatprep.subr.bf16.mxu1 %v10380_v36  ;;  %10397 = vmatprep.subr.bf16.mxu0 %v10396_v55  ;;  %v10696_v36 = vld [vmem:[#allocation15 + $0x8ac] ss:$16 sps:$4 sm:$0xff]   ;;  %v10691_v55 = vld [vmem:[#allocation15 + $0x8a0] ss:$16 sps:$4 sm:$0xff]  }
 0x529   : > { %10383 = vmatpush1.bf16.msra.mxu1 %v10382_v9  ;;  %10399 = vmatpush1.bf16.msra.mxu0 %v10398_v57  ;;  %v10697_v9 = vld [vmem:[#allocation15 + $0x8c0] ss:$16 sps:$4 sm:$0xff]   ;;  %v10700_v57 = vld [vmem:[#allocation15 + $0x8c8] ss:$16 sps:$4 sm:$0xff]  }
 0x52a   : > { %4920 = vmatprep.subr.bf16.mxu1 %v10663_v52  ;;  %5092 = vmatprep.subr.bf16.mxu0 %v10666_v1  ;;  %v10705_v52 = vld [vmem:[#allocation15 + $0x8e4] ss:$16 sps:$4 sm:$0xff]   ;;  %v10708_v1 = vld [vmem:[#allocation15 + $0x8ec] ss:$16 sps:$4 sm:$0xff]  }
 0x52c   : > { %9236 = vmatmul.mubr.msk.f32.vlgmr.msra.gmra.mrb[16].mxu1 %vm522_vm1, %v2427_v56  ;;  %9237 = vmatmul.mubr.msk.f32.vlgmr.msra.gmra.mrb[16].mxu0 %vm522_vm1, %v2427_v56  ;;  %v10682_v56 = vld [vmem:[#allocation15 + $0x868] ss:$16 sps:$4 sm:$0xff]  }
 0x52d   : > { %4921 = vmatpush1.bf16.msra.mxu1 %v10661_v10  ;;  %5093 = vmatpush1.bf16.msra.mxu0 %v10664_v28  ;;  %v10703_v10 = vld [vmem:[#allocation15 + $0x8e0] ss:$16 sps:$4 sm:$0xff]   ;;  %v10706_v28 = vld [vmem:[#allocation15 + $0x8e8] ss:$16 sps:$4 sm:$0xff]  }
 0x52e   : > { %4922 = vmatprep.subr.bf16.mxu1 %v10669_v29  ;;  %5094 = vmatprep.subr.bf16.mxu0 %v10672_v42  ;;  %v10711_v29 = vld [vmem:[#allocation15 + $0x904] ss:$16 sps:$4 sm:$0xff]   ;;  %v10714_v42 = vld [vmem:[#allocation15 + $0x90c] ss:$16 sps:$4 sm:$0xff]  }
 0x531   : > { %4923 = vmatpush1.bf16.msra.mxu1 %v10667_v27  ;;  %5095 = vmatpush1.bf16.msra.mxu0 %v10670_v30  ;;  %v10709_v27 = vld [vmem:[#allocation15 + $0x900] ss:$16 sps:$4 sm:$0xff]   ;;  %v10712_v30 = vld [vmem:[#allocation15 + $0x908] ss:$16 sps:$4 sm:$0xff]  }
 0x532   : > { %4924 = vmatprep.subr.bf16.mxu1 %v10675_v33  ;;  %5096 = vmatprep.subr.bf16.mxu0 %v10678_v61  ;;  %v10717_v33 = vld [vmem:[#allocation15 + $0x924] ss:$16 sps:$4 sm:$0xff]   ;;  %v10720_v61 = vld [vmem:[#allocation15 + $0x92c] ss:$16 sps:$4 sm:$0xff]  }
 0x535   : > { %4925 = vmatpush1.bf16.msra.mxu1 %v10673_v48  ;;  %5097 = vmatpush1.bf16.msra.mxu0 %v10676_v12  ;;  %v10715_v48 = vld [vmem:[#allocation15 + $0x920] ss:$16 sps:$4 sm:$0xff]   ;;  %v10718_v12 = vld [vmem:[#allocation15 + $0x928] ss:$16 sps:$4 sm:$0xff]  }
 0x536   : > { %4926 = vmatprep.subr.bf16.mxu1 %v10681_v47  ;;  %5098 = vmatprep.subr.bf16.mxu0 %v10684_v46  ;;  %v10723_v47 = vld [vmem:[#allocation15 + $0x944] ss:$16 sps:$4 sm:$0xff]   ;;  %v10726_v46 = vld [vmem:[#allocation15 + $0x94c] ss:$16 sps:$4 sm:$0xff]  }
 0x539   : > { %4927 = vmatpush1.bf16.msra.mxu1 %v10679_v54  ;;  %5099 = vmatpush1.bf16.msra.mxu0 %v10682_v56  ;;  %v10721_v54 = vld [vmem:[#allocation15 + $0x940] ss:$16 sps:$4 sm:$0xff]   ;;  %v10724_v56 = vld [vmem:[#allocation15 + $0x948] ss:$16 sps:$4 sm:$0xff]  }
 0x53a   : > { %4928 = vmatprep.subr.bf16.mxu1 %v10687_v62  ;;  %5100 = vmatprep.subr.bf16.mxu0 %v10690_v45  ;;  %v10729_v62 = vld [vmem:[#allocation15 + $0x964] ss:$16 sps:$4 sm:$0xff]   ;;  %v10732_v45 = vld [vmem:[#allocation15 + $0x96c] ss:$16 sps:$4 sm:$0xff]  }
 0x53d   : > { %4929 = vmatpush1.bf16.msra.mxu1 %v10685_v38  ;;  %5101 = vmatpush1.bf16.msra.mxu0 %v10688_v26  ;;  %v10727_v38 = vld [vmem:[#allocation15 + $0x960] ss:$16 sps:$4 sm:$0xff]   ;;  %v10730_v26 = vld [vmem:[#allocation15 + $0x968] ss:$16 sps:$4 sm:$0xff]  }
 0x53e   : > { %4930 = vmatprep.subr.bf16.mxu1 %v10693_v35  ;;  %5102 = vmatprep.subr.bf16.mxu0 %v10696_v36  ;;  %v10735_v35 = vld [vmem:[#allocation15 + $0x984] ss:$16 sps:$4 sm:$0xff]   ;;  %v10738_v36 = vld [vmem:[#allocation15 + $0x98c] ss:$16 sps:$4 sm:$0xff]  }
 0x541   : > { %4931 = vmatpush1.bf16.msra.mxu1 %v10691_v55  ;;  %5103 = vmatpush1.bf16.msra.mxu0 %v10694_v4  ;;  %v10733_v55 = vld [vmem:[#allocation15 + $0x980] ss:$16 sps:$4 sm:$0xff]   ;;  %v10736_v4 = vld [vmem:[#allocation15 + $0x988] ss:$16 sps:$4 sm:$0xff]  }
 0x542   : > { %4932 = vmatprep.subr.bf16.mxu1 %v10699_v25  ;;  %5104 = vmatprep.subr.bf16.mxu0 %v10702_v63  ;;  %v10741_v25 = vld [vmem:[#allocation15 + $0x9a4] ss:$16 sps:$4 sm:$0xff]   ;;  %v10744_v63 = vld [vmem:[#allocation15 + $0x9ac] ss:$16 sps:$4 sm:$0xff]  }
 0x545   : > { %4933 = vmatpush1.bf16.msra.mxu1 %v10697_v9  ;;  %5105 = vmatpush1.bf16.msra.mxu0 %v10700_v57  ;;  %v10739_v9 = vld [vmem:[#allocation15 + $0x9a0] ss:$16 sps:$4 sm:$0xff]   ;;  %v10742_v57 = vld [vmem:[#allocation15 + $0x9a8] ss:$16 sps:$4 sm:$0xff]  }
 0x546   : > { %4934 = vmatprep.subr.bf16.mxu1 %v10705_v52  ;;  %5106 = vmatprep.subr.bf16.mxu0 %v10708_v1  ;;  %v10747_v52 = vld [vmem:[#allocation15 + $0x9c4] ss:$16 sps:$4 sm:$0xff]   ;;  %v10750_v1 = vld [vmem:[#allocation15 + $0x9cc] ss:$16 sps:$4 sm:$0xff]  }
 0x549   : > { %4935 = vmatpush1.bf16.msra.mxu1 %v10703_v10  ;;  %5107 = vmatpush1.bf16.msra.mxu0 %v10706_v28  ;;  %v10745_v10 = vld [vmem:[#allocation15 + $0x9c0] ss:$16 sps:$4 sm:$0xff]   ;;  %v10748_v28 = vld [vmem:[#allocation15 + $0x9c8] ss:$16 sps:$4 sm:$0xff]  }
 0x54a   : > { %4936 = vmatprep.subr.bf16.mxu1 %v10711_v29  ;;  %5108 = vmatprep.subr.bf16.mxu0 %v10714_v42  ;;  %v10753_v29 = vld [vmem:[#allocation15 + $0x9e4] ss:$16 sps:$4 sm:$0xff]   ;;  %v10756_v42 = vld [vmem:[#allocation15 + $0x9ec] ss:$16 sps:$4 sm:$0xff]  }
 0x54d   : > { %4937 = vmatpush1.bf16.msra.mxu1 %v10709_v27  ;;  %5109 = vmatpush1.bf16.msra.mxu0 %v10712_v30  ;;  %v10751_v27 = vld [vmem:[#allocation15 + $0x9e0] ss:$16 sps:$4 sm:$0xff]   ;;  %v10754_v30 = vld [vmem:[#allocation15 + $0x9e8] ss:$16 sps:$4 sm:$0xff]  }
 0x54e   : > { %4938 = vmatprep.subr.bf16.mxu1 %v10717_v33  ;;  %5110 = vmatprep.subr.bf16.mxu0 %v10720_v61  ;;  %v10759_v33 = vld [vmem:[#allocation15 + $0xa04] ss:$16 sps:$4 sm:$0xff]   ;;  %v10762_v61 = vld [vmem:[#allocation15 + $0xa0c] ss:$16 sps:$4 sm:$0xff]  }
 0x551   : > { %4939 = vmatpush1.bf16.msra.mxu1 %v10715_v48  ;;  %5111 = vmatpush1.bf16.msra.mxu0 %v10718_v12 }
 0x552   : > { %4940 = vmatprep.subr.bf16.mxu1 %v10723_v47  ;;  %5112 = vmatprep.subr.bf16.mxu0 %v10726_v46 }
 0x555   : > { %4941 = vmatpush1.bf16.msra.mxu1 %v10721_v54  ;;  %5113 = vmatpush1.bf16.msra.mxu0 %v10724_v56 }
 0x556   : > { %4942 = vmatprep.subr.bf16.mxu1 %v10729_v62  ;;  %5114 = vmatprep.subr.bf16.mxu0 %v10732_v45 }
 0x559   : > { %4943 = vmatpush1.bf16.msra.mxu1 %v10727_v38  ;;  %5115 = vmatpush1.bf16.msra.mxu0 %v10730_v26 }
 0x55a   : > { %4944 = vmatprep.subr.bf16.mxu1 %v10735_v35  ;;  %5116 = vmatprep.subr.bf16.mxu0 %v10738_v36 }
 0x55d   : > { %4945 = vmatpush1.bf16.msra.mxu1 %v10733_v55  ;;  %5117 = vmatpush1.bf16.msra.mxu0 %v10736_v4 }
 0x55e   : > { %4946 = vmatprep.subr.bf16.mxu1 %v10741_v25  ;;  %5118 = vmatprep.subr.bf16.mxu0 %v10744_v63 }
 0x561   : > { %4947 = vmatpush1.bf16.msra.mxu1 %v10739_v9  ;;  %5119 = vmatpush1.bf16.msra.mxu0 %v10742_v57 }
 0x562   : > { %4948 = vmatprep.subr.bf16.mxu1 %v10747_v52  ;;  %5120 = vmatprep.subr.bf16.mxu0 %v10750_v1 }
 0x565   : > { %4949 = vmatpush1.bf16.msra.mxu1 %v10745_v10  ;;  %5121 = vmatpush1.bf16.msra.mxu0 %v10748_v28 }
 0x566   : > { %4950 = vmatprep.subr.bf16.mxu1 %v10753_v29  ;;  %5122 = vmatprep.subr.bf16.mxu0 %v10756_v42 }
 0x569   : > { %4951 = vmatpush1.bf16.msra.mxu1 %v10751_v27  ;;  %5123 = vmatpush1.bf16.msra.mxu0 %v10754_v30 }
 0x56a   : > { %4963 = vmatprep.subr.bf16.mxu1 %v10759_v33  ;;  %5135 = vmatprep.subr.bf16.mxu0 %v10762_v61 }
 0x5ef   : > { %v2563_v48 = vpop.f32.mrb[14].mxu1  ;;  %v2634_v12 = vpop.f32.mrb[14].mxu0 }
 0x5f0   : > { %v9238_v47 = vmul.f32 -1.442695, %v2563_v48  ;;  %v9240_v46 = vmul.f32 -1.442695, %v2634_v12  ;;  %v2565_v54 = vpop.f32.mrb[15].mxu1  ;;  %v2636_v56 = vpop.f32.mrb[15].mxu0 }
 0x5f1   : > { %v9239_v62 = vmul.f32 -1.442695, %v2565_v54  ;;  %v9241_v45 = vmul.f32 -1.442695, %v2636_v56 }
 0x5f2   : > { %11817 = vpow2.f32 %v9238_v47 }
 0x5f3   : > { %11819 = vpow2.f32 %v9240_v46 }
 0x5f4   : > { %11821 = vpow2.f32 %v9239_v62 }
 0x5f5   : > { %11823 = vpow2.f32 %v9241_v45 }
 0x5fc   : > { %v11818_v38 = vpop.eup %11817 }
 0x5fd   : > { %v11820_v26 = vpop.eup %11819  ;;  %v2805_v35 = vadd.f32 1.0, %v11818_v38 }
 0x5fe   : > { %v11822_v36 = vpop.eup %11821  ;;  %v2807_v55 = vadd.f32 1.0, %v11820_v26 }
 0x5ff   : > { %v11824_v4 = vpop.eup %11823  ;;  %11825 = vrcp.f32 %v2805_v35  ;;  %v2806_v25 = vadd.f32 1.0, %v11822_v36  ;;  %v2705_v63 = vpop.f32.mrb[16].mxu1 }
 0x600   : > { %v2776_v9 = vpop.f32.mrb[16].mxu0  ;;  %11827 = vrcp.f32 %v2807_v55  ;;  %v2808_v57 = vadd.f32 1.0, %v11824_v4  ;;  %v9242_v52 = vmul.f32 -1.442695, %v2705_v63  ;;  %v2707_v10 = vpop.f32.mrb[17].mxu1 }
 0x601   : > { %v9244_v1 = vmul.f32 -1.442695, %v2776_v9  ;;  %11829 = vrcp.f32 %v2806_v25  ;;  %v9243_v28 = vmul.f32 -1.442695, %v2707_v10  ;;  %v2778_v29 = vpop.f32.mrb[17].mxu0 }
 0x602   : > { %11831 = vrcp.f32 %v2808_v57  ;;  %v9245_v42 = vmul.f32 -1.442695, %v2778_v29 }
 0x603   : > { %11833 = vpow2.f32 %v9242_v52 }
 0x604   : > { %11835 = vpow2.f32 %v9244_v1 }
 0x605   : > { %11837 = vpow2.f32 %v9243_v28 }
 0x606   : > { %11839 = vpow2.f32 %v9245_v42 }
 0x609   : > { %v11826_v27 = vpop.eup %11825 }
 0x60a   : > { %v11828_v30 = vpop.eup %11827  ;;  %v2832_v33 = vrot.slane %v11826_v27, %v12636_v13 }
 0x60b   : > { %v11830_v61 = vpop.eup %11829  ;;  %v2840_v48 = vrot.slane %v11828_v30, %v12636_v13 }
 0x60c   : > { %v11832_v12 = vpop.eup %11831  ;;  %v2861_v47 = vmul.f32 %v2832_v33, %v1950_v17  ;;  %v2869_v46 = vmul.f32 %v2832_v33, %v1958_v19  ;;  %v2836_v54 = vrot.slane %v11830_v61, %v12636_v13 }
 0x60d   : > { %v11834_v56 = vpop.eup %11833  ;;  %v2863_v62 = vmul.f32 %v2840_v48, %v1952_v18  ;;  %v2871_v45 = vmul.f32 %v2840_v48, %v1960_v20  ;;  %v2844_v38 = vrot.slane %v11832_v12, %v12636_v13 }
 0x60e   : > { %v11836_v26 = vpop.eup %11835  ;;  %v2894_v35 = vrot.slane %v2861_v47, 7  ;;  %v2902_v36 = vrot.slane %v2869_v46, 7  ;;  %v2862_v0 = vmul.f32 %v2836_v54, %v1951_v21  ;;  %v2870_v11 = vmul.f32 %v2836_v54, %v1959_v23 }
 0x60f   : > { %v11838_v17 = vpop.eup %11837  ;;  %v2896_v19 = vrot.slane %v2863_v62, 7  ;;  %v2906_v55 = vrot.slane %v2871_v45, 7  ;;  %v2864_v2 = vmul.f32 %v2844_v38, %v1953_v22  ;;  %v2872_v14 = vmul.f32 %v2844_v38, %v1961_v24 }
 0x610   : > { %v11840_v18 = vpop.eup %11839  ;;  %v2903_v20 = vsel %vm2893_vm5, %v2894_v35, %v2902_v36  ;;  %2942 = vst [vmem:[#allocation3] sm:$0xfe] %v2894_v35  ;;  %2958 = vst [vmem:[#allocation3 + $0x80] sm:$0x1] %v2902_v36  ;;  %v2895_v4 = vrot.slane %v2862_v0, 7  ;;  %v2904_v7 = vrot.slane %v2870_v11, 7 }
 0x611   : > { %v2809_v21 = vadd.f32 1.0, %v11834_v56  ;;  %2950 = vst [vmem:[#allocation3 + $0x40] sm:$0xff] %v2903_v20  ;;  %v13230_v15 = vsel %vm2893_vm5, %v2896_v19, %v2906_v55  ;;  %2944 = vst [vmem:[#allocation3 + $0x10] sm:$0xfe] %v2896_v19  ;;  %v2897_v23 = vrot.slane %v2864_v2, 7  ;;  %v2908_v8 = vrot.slane %v2872_v14, 7 }
 0x612   : > { %2960 = vst [vmem:[#allocation3 + $0x90] sm:$0x1] %v2906_v55  ;;  %v2811_v22 = vadd.f32 1.0, %v11836_v26  ;;  %2952 = vst [vmem:[#allocation3 + $0x50] sm:$0xff] %v13230_v15  ;;  %v2905_v16 = vsel %vm2893_vm5, %v2895_v4, %v2904_v7  ;;  %v2810_v24 = vadd.f32 1.0, %v11838_v17  ;;  %v2812_v25 = vadd.f32 1.0, %v11840_v18 }
 0x613   : > { %2943 = vst [vmem:[#allocation3 + $0x8] sm:$0xfe] %v2895_v4  ;;  %2959 = vst [vmem:[#allocation3 + $0x88] sm:$0x1] %v2904_v7  ;;  %11841 = vrcp.f32 %v2809_v21  ;;  %v13235_v63 = vsel %vm2893_vm5, %v2897_v23, %v2908_v8 }
 0x614   : > { %2951 = vst [vmem:[#allocation3 + $0x48] sm:$0xff] %v2905_v16  ;;  %2945 = vst [vmem:[#allocation3 + $0x18] sm:$0xfe] %v2897_v23  ;;  %11843 = vrcp.f32 %v2811_v22 }
 0x615   : > { %2961 = vst [vmem:[#allocation3 + $0x98] sm:$0x1] %v2908_v8  ;;  %2953 = vst [vmem:[#allocation3 + $0x58] sm:$0xff] %v13235_v63  ;;  %11845 = vrcp.f32 %v2810_v24 }
 0x616   : > { %11847 = vrcp.f32 %v2812_v25 }
 0x617   : > { %v3246_v9 = vld [vmem:[#allocation3] sm:$0xfe]  ;;  %v3254_v57 = vld [vmem:[#allocation3 + $0x80] sm:$0x1] }
 0x618   : > { %v3262_v52 = vpack.c.bf16 %v2903_v20, %v3246_v9  ;;  %v3270_v1 = vpack.c.bf16 %v3254_v57, %v3254_v57  ;;  %v3248_v10 = vld [vmem:[#allocation3 + $0x10] sm:$0xfe] }
 0x619   : > { %v13238_v28 = vld [vmem:[#allocation3 + $0x90] sm:$0x1]  ;;  %v13241_v27 = vpack.c.bf16 %v13230_v15, %v3248_v10 }
 0x61a   : > { %v3247_v29 = vld [vmem:[#allocation3 + $0x8] sm:$0xfe]  ;;  %v3255_v42 = vld [vmem:[#allocation3 + $0x88] sm:$0x1]  ;;  %v3539_v61 = vshll.u32 %v3262_v52, 16  ;;  %v3272_v47 = vpack.c.bf16 %v13238_v28, %v13238_v28  ;;  %v3537_v46 = vshrl.u32 %v3262_v52, 16 }
 0x61b   : > { %v3263_v30 = vpack.c.bf16 %v2905_v16, %v3247_v29  ;;  %v3271_v33 = vpack.c.bf16 %v3255_v42, %v3255_v42  ;;  %v3249_v48 = vld [vmem:[#allocation3 + $0x18] sm:$0xfe]  ;;  %v3544_v54 = vshll.u32 %v3270_v1, 16  ;;  %v10769_v28 = vld [vmem:[#allocation15 + $0xa40] ss:$16 sps:$4 sm:$0xff]  }
 0x61c   : > { %v13243_v12 = vld [vmem:[#allocation3 + $0x98] sm:$0x1]  ;;  %v3265_v56 = vpack.c.bf16 %v13235_v63, %v3249_v48  ;;  %v3541_v36 = vrot.slane %v3539_v61, 1  ;;  %v10763_v48 = vld [vmem:[#allocation15 + $0xa20] ss:$16 sps:$4 sm:$0xff]  }
 0x61d   : > { %v3273_v62 = vpack.c.bf16 %v13243_v12, %v13243_v12  ;;  %v11842_v45 = vpop.eup %11841  ;;  %v3549_v38 = vshrl.u32 %v3263_v30, 16  ;;  %v3551_v26 = vshll.u32 %v3263_v30, 16  ;;  %v3556_v35 = vshll.u32 %v3271_v33, 16 }
 0x61e   : > { %v11844_v0 = vpop.eup %11843  ;;  %v2848_v11 = vrot.slane %v11842_v45, %v12636_v13  ;;  %v3546_v17 = vrot.slane %v3544_v54, 1  ;;  %v3573_v19 = vshrl.u32 %v3265_v56, 16  ;;  %v3575_v55 = vshll.u32 %v3265_v56, 16  ;;  %v10766_v54 = vld [vmem:[#allocation15 + $0xa28] ss:$16 sps:$4 sm:$0xff]  }
 0x61f   : > { %v11846_v2 = vpop.eup %11845  ;;  %v2856_v14 = vrot.slane %v11844_v0, %v12636_v13  ;;  %v3553_v18 = vrot.slane %v3551_v26, 1  ;;  %v3558_v20 = vrot.slane %v3556_v35, 1  ;;  %v3542_v4 = vor.u32 %v3541_v36, %v3537_v46  ;;  %v10771_v45 = vld [vmem:[#allocation15 + $0xa44] ss:$16 sps:$4 sm:$0xff]  }
 0x620   : > { %v11848_v7 = vpop.eup %11847  ;;  %v2865_v21 = vmul.f32 %v2848_v11, %v1954_v60  ;;  %v2873_v23 = vmul.f32 %v2848_v11, %v1962_v51  ;;  %v2852_v8 = vrot.slane %v11846_v2, %v12636_v13  ;;  %v3577_v22 = vrot.slane %v3575_v55, 1  ;;  %v10777_v0 = vld [vmem:[#allocation15 + $0xa64] ss:$16 sps:$4 sm:$0xff]  }
 0x621   : > { %v2867_v16 = vmul.f32 %v2856_v14, %v1956_v6  ;;  %v2875_v24 = vmul.f32 %v2856_v14, %v1964_v3  ;;  %v2860_v25 = vrot.slane %v11848_v7, %v12636_v13  ;;  %v3554_v9 = vor.u32 %v3553_v18, %v3549_v38  ;;  %v10757_v3 = vld [vmem:[#allocation15 + $0xa00] ss:$16 sps:$4 sm:$0xff]   ;;  %v10760_v6 = vld [vmem:[#allocation15 + $0xa08] ss:$16 sps:$4 sm:$0xff]   ;;  %v10774_v38 = vld [vmem:[#allocation15 + $0xa4c] ss:$16 sps:$4 sm:$0xff]  }
 0x622   : > { %v2898_v57 = vrot.slane %v2865_v21, 7  ;;  %v2910_v52 = vrot.slane %v2873_v23, 7  ;;  %v2866_v31 = vmul.f32 %v2852_v8, %v1955_v40  ;;  %v2874_v5 = vmul.f32 %v2852_v8, %v1963_v58  ;;  %v10768_v58 = vld [vmem:[#allocation15 + $0xa2c] ss:$16 sps:$4 sm:$0xff]   ;;  %v10775_v14 = vld [vmem:[#allocation15 + $0xa60] ss:$16 sps:$4 sm:$0xff]  }
 0x623   : > { %v2900_v51 = vrot.slane %v2867_v16, 7  ;;  %v2914_v60 = vrot.slane %v2875_v24, 7  ;;  %v2868_v32 = vmul.f32 %v2860_v25, %v1957_v50  ;;  %v2876_v53 = vmul.f32 %v2860_v25, %v1965_v59  ;;  %v10778_v18 = vld [vmem:[#allocation15 + $0xa68] ss:$16 sps:$4 sm:$0xff]   ;;  %v10786_v23 = vld [vmem:[#allocation15 + $0xa8c] ss:$16 sps:$4 sm:$0xff]  }
 0x624   : > { %v2911_v1 = vsel %vm2893_vm5, %v2898_v57, %v2910_v52  ;;  %2946 = vst [vmem:[#allocation3 + $0x20] sm:$0xfe] %v2898_v57  ;;  %2962 = vst [vmem:[#allocation3 + $0xa0] sm:$0x1] %v2910_v52  ;;  %v2899_v10 = vrot.slane %v2866_v31, 7  ;;  %v2912_v34 = vrot.slane %v2874_v5, 7  ;;  %v3559_v40 = vsel %vm3535_vm6, %v3554_v9, %v3558_v20 }
 0x625   : > { %2954 = vst [vmem:[#allocation3 + $0x60] sm:$0xff] %v2911_v1  ;;  %v2915_v29 = vsel %vm2893_vm5, %v2900_v51, %v2914_v60  ;;  %2948 = vst [vmem:[#allocation3 + $0x30] sm:$0xfe] %v2900_v51  ;;  %v2901_v37 = vrot.slane %v2868_v32, 7  ;;  %v2916_v39 = vrot.slane %v2876_v53, 7  ;;  %4952 = vmatprep.mubr.bf16.mxu1 %v3559_v40  ;;  %5124 = vmatprep.mubr.bf16.mxu0 %v3559_v40  ;;  %v3580_v30 = vshll.u32 %v3273_v62, 16 }
 0x626   : > { %2964 = vst [vmem:[#allocation3 + $0xb0] sm:$0x1] %v2914_v60  ;;  %v3547_v50 = vsel %vm3535_vm6, %v3542_v4, %v3546_v17  ;;  %2956 = vst [vmem:[#allocation3 + $0x70] sm:$0xff] %v2915_v29  ;;  %v13275_v59 = vsel %vm2893_vm5, %v2899_v10, %v2912_v34  ;;  %v3578_v42 = vor.u32 %v3577_v22, %v3573_v19  ;;  %v3563_v33 = vshll.u32 %v13241_v27, 16  ;;  %v10783_v20 = vld [vmem:[#allocation15 + $0xa84] ss:$16 sps:$4 sm:$0xff]  }
 0x627   : > { %2947 = vst [vmem:[#allocation3 + $0x28] sm:$0xfe] %v2899_v10  ;;  %2963 = vst [vmem:[#allocation3 + $0xa8] sm:$0x1] %v2912_v34  ;;  %4953 = vmatmul.mubr.bf16.vlgmr.msra.gmra.mrb[20].mxu1 %v3547_v50  ;;  %5125 = vmatmul.mubr.bf16.vlgmr.msra.gmra.mrb[20].mxu0 %v3547_v50  ;;  %v2917_v61 = vsel %vm2893_vm5, %v2901_v37, %v2916_v39  ;;  %v3568_v12 = vshll.u32 %v3272_v47, 16  ;;  %v3582_v46 = vrot.slane %v3580_v30, 1 }
 0x628   : > { %2955 = vst [vmem:[#allocation3 + $0x68] sm:$0xff] %v13275_v59  ;;  %2949 = vst [vmem:[#allocation3 + $0x38] sm:$0xfe] %v2901_v37  ;;  %4964 = vmatpush1.bf16.msra.mxu1 %v10757_v3  ;;  %5136 = vmatpush1.bf16.msra.mxu0 %v10760_v6  ;;  %v3561_v56 = vshrl.u32 %v13241_v27, 16  ;;  %v3565_v62 = vrot.slane %v3563_v33, 1 }
 0x629   : > { %2965 = vst [vmem:[#allocation3 + $0xb8] sm:$0x1] %v2916_v39  ;;  %2957 = vst [vmem:[#allocation3 + $0x78] sm:$0xff] %v2917_v61  ;;  %4965 = vmatprep.subr.bf16.mxu1 %v10765_v49  ;;  %5137 = vmatprep.subr.bf16.mxu0 %v10768_v58  ;;  %v3583_v26 = vsel %vm3535_vm6, %v3578_v42, %v3582_v46  ;;  %v3570_v36 = vrot.slane %v3568_v12, 1  ;;  %v10772_v47 = vld [vmem:[#allocation15 + $0xa48] ss:$16 sps:$4 sm:$0xff]  }
 0x62a   : > { %v3566_v35 = vor.u32 %v3565_v62, %v3561_v56  ;;  %4995 = vmatprep.mubr.bf16.mxu1 %v3583_v26  ;;  %5167 = vmatprep.mubr.bf16.mxu0 %v3583_v26  ;;  %v10780_v27 = vld [vmem:[#allocation15 + $0xa6c] ss:$16 sps:$4 sm:$0xff]   ;;  %v6891_v21 = vld [vmem:[#allocation3 + $0x18] sm:$0xfc]  ;;  %v6899_v8 = vld [vmem:[#allocation3 + $0x98] sm:$0x3] }
 0x62b   : > { %v6890_v22 = vld [vmem:[#allocation3 + $0x10] sm:$0xfc]  ;;  %v6907_v25 = vpack.c.bf16 %v13235_v63, %v6891_v21  ;;  %v6898_v9 = vld [vmem:[#allocation3 + $0x90] sm:$0x3]  ;;  %v10784_v52 = vld [vmem:[#allocation15 + $0xa88] ss:$16 sps:$4 sm:$0xff]   ;;  %v6915_v51 = vpack.c.bf16 %v6899_v8, %v6899_v8 }
 0x62c   : > { %4966 = vmatpush1.bf16.msra.mxu1 %v10763_v48  ;;  %5138 = vmatpush1.bf16.msra.mxu0 %v10766_v54  ;;  %v13286_v11 = vsel %vm3535_vm6, %v3566_v35, %v3570_v36  ;;  %v10781_v57 = vld [vmem:[#allocation15 + $0xa80] ss:$16 sps:$4 sm:$0xff]   ;;  %v6906_v60 = vpack.c.bf16 %v13230_v15, %v6890_v22  ;;  %v10789_v32 = vld [vmem:[#allocation15 + $0xaa4] ss:$16 sps:$4 sm:$0xff]   ;;  %v10792_v53 = vld [vmem:[#allocation15 + $0xaac] ss:$16 sps:$4 sm:$0xff]   ;;  %v6914_v6 = vpack.c.bf16 %v6898_v9, %v6898_v9 }
 0x62d   : > { %4967 = vmatprep.subr.bf16.mxu1 %v10771_v45  ;;  %5139 = vmatprep.subr.bf16.mxu0 %v10774_v38  ;;  %v10787_v63 = vld [vmem:[#allocation15 + $0xaa0] ss:$16 sps:$4 sm:$0xff]   ;;  %v10790_v1 = vld [vmem:[#allocation15 + $0xaa8] ss:$16 sps:$4 sm:$0xff]   ;;  %v7203_v40 = vrot.slane %v6907_v25, 1  ;;  %v7204_v49 = vrot.slane %v6915_v51, 1 }
 0x62e   : > { %v3251_v17 = vld [vmem:[#allocation3 + $0x28] sm:$0xfe]  ;;  %v3259_v19 = vld [vmem:[#allocation3 + $0xa8] sm:$0x1]  ;;  %v13294_v34 = vld [vmem:[#allocation3 + $0x60] sm:$0xff]  ;;  %v7200_v58 = vrot.slane %v6906_v60, 1 }
 0x62f   : > { %v3267_v55 = vpack.c.bf16 %v13275_v59, %v3251_v17  ;;  %v3275_v2 = vpack.c.bf16 %v3259_v19, %v3259_v19  ;;  %v6893_v10 = vld [vmem:[#allocation3 + $0x28] sm:$0xfc]  ;;  %v6901_v15 = vld [vmem:[#allocation3 + $0xa8] sm:$0x3]  ;;  %v10798_v37 = vld [vmem:[#allocation15 + $0xacc] ss:$16 sps:$4 sm:$0xff]   ;;  %v13301_v33 = vsel %vm7193_vm7, %v7203_v40, %v7204_v49 }
 0x630   : > { %4968 = vmatpush1.bf16.msra.mxu1 %v10769_v28  ;;  %5140 = vmatpush1.bf16.msra.mxu0 %v10772_v47  ;;  %v10795_v29 = vld [vmem:[#allocation15 + $0xac4] ss:$16 sps:$4 sm:$0xff]   ;;  %v10793_v50 = vld [vmem:[#allocation15 + $0xac0] ss:$16 sps:$4 sm:$0xff]   ;;  %v10796_v42 = vld [vmem:[#allocation15 + $0xac8] ss:$16 sps:$4 sm:$0xff]   ;;  %v6909_v48 = vpack.c.bf16 %v13275_v59, %v6893_v10  ;;  %v6917_v46 = vpack.c.bf16 %v6901_v15, %v6901_v15 }
 0x631   : > { %v3599_v4 = vshll.u32 %v3267_v55, 16  ;;  %v3604_v7 = vshll.u32 %v3275_v2, 16  ;;  %4969 = vmatprep.subr.bf16.mxu1 %v10777_v0  ;;  %5141 = vmatprep.subr.bf16.mxu0 %v10780_v27  ;;  %v3597_v16 = vshrl.u32 %v3267_v55, 16  ;;  %v13296_v39 = vld [vmem:[#allocation3 + $0x78] sm:$0xff]  ;;  %v13298_v30 = vld [vmem:[#allocation3 + $0x70] sm:$0xff]  ;;  %v7201_v61 = vrot.slane %v6914_v6, 1 }
 0x632   : > { %v6892_v12 = vld [vmem:[#allocation3 + $0x20] sm:$0xfc]  ;;  %v6900_v54 = vld [vmem:[#allocation3 + $0xa0] sm:$0x3]  ;;  %v6895_v62 = vld [vmem:[#allocation3 + $0x38] sm:$0xfc] }
 0x633   : > { %v3601_v24 = vrot.slane %v3599_v4, 1  ;;  %v3606_v5 = vrot.slane %v3604_v7, 1  ;;  %v6908_v56 = vpack.c.bf16 %v13294_v34, %v6892_v12  ;;  %v6903_v45 = vld [vmem:[#allocation3 + $0xb8] sm:$0x3]  ;;  %v13306_v38 = vsel %vm7193_vm7, %v7200_v58, %v7201_v61  ;;  %v6894_v28 = vld [vmem:[#allocation3 + $0x30] sm:$0xfc] }
 0x634   : > { %4970 = vmatpush1.bf16.msra.mxu1 %v10775_v14  ;;  %5142 = vmatpush1.bf16.msra.mxu0 %v10778_v18  ;;  %v7209_v26 = vrot.slane %v6909_v48, 1  ;;  %v6916_v35 = vpack.c.bf16 %v6900_v54, %v6900_v54  ;;  %v6911_v36 = vpack.c.bf16 %v13296_v39, %v6895_v62  ;;  %v6902_v47 = vld [vmem:[#allocation3 + $0xb0] sm:$0x3]  ;;  %v10801_v59 = vld [vmem:[#allocation15 + $0xae4] ss:$16 sps:$4 sm:$0xff]   ;;  %v6919_v27 = vpack.c.bf16 %v6903_v45, %v6903_v45 }
 0x635   : > { %v3602_v31 = vor.u32 %v3601_v24, %v3597_v16  ;;  %4971 = vmatprep.subr.bf16.mxu1 %v10783_v20  ;;  %5143 = vmatprep.subr.bf16.mxu0 %v10786_v23  ;;  %v10804_v0 = vld [vmem:[#allocation15 + $0xaec] ss:$16 sps:$4 sm:$0xff]   ;;  %v6910_v17 = vpack.c.bf16 %v13298_v30, %v6894_v28  ;;  %v6918_v19 = vpack.c.bf16 %v6902_v47, %v6902_v47  ;;  %v7210_v55 = vrot.slane %v6917_v46, 1  ;;  %v10799_v21 = vld [vmem:[#allocation15 + $0xae0] ss:$16 sps:$4 sm:$0xff]  }
 0x636   : > { %v7206_v2 = vrot.slane %v6908_v56, 1  ;;  %v7207_v14 = vrot.slane %v6916_v35, 1  ;;  %v7215_v18 = vrot.slane %v6911_v36, 1  ;;  %v7216_v20 = vrot.slane %v6919_v27, 1  ;;  %v10802_v23 = vld [vmem:[#allocation15 + $0xae8] ss:$16 sps:$4 sm:$0xff]  }
 0x637   : > { %v13292_v3 = vsel %vm3535_vm6, %v3602_v31, %v3606_v5  ;;  %v7212_v4 = vrot.slane %v6910_v17, 1  ;;  %v7213_v7 = vrot.slane %v6918_v19, 1  ;;  %v13311_v8 = vsel %vm7193_vm7, %v7209_v26, %v7210_v55  ;;  %v10807_v16 = vld [vmem:[#allocation15 + $0xb04] ss:$16 sps:$4 sm:$0xff]   ;;  %v10810_v24 = vld [vmem:[#allocation15 + $0xb0c] ss:$16 sps:$4 sm:$0xff]  }
 0x638   : > { %4972 = vmatpush1.bf16.msra.mxu1 %v10781_v57  ;;  %5144 = vmatpush1.bf16.msra.mxu0 %v10784_v52  ;;  %v13314_v22 = vsel %vm7193_vm7, %v7206_v2, %v7207_v14  ;;  %v13317_v25 = vsel %vm7193_vm7, %v7215_v18, %v7216_v20  ;;  %v10805_v57 = vld [vmem:[#allocation15 + $0xb00] ss:$16 sps:$4 sm:$0xff]   ;;  %v10808_v52 = vld [vmem:[#allocation15 + $0xb08] ss:$16 sps:$4 sm:$0xff]   ;;  %v10813_v31 = vld [vmem:[#allocation15 + $0xb24] ss:$16 sps:$4 sm:$0xff]  }
 0x639   : > { %4973 = vmatprep.subr.bf16.mxu1 %v10789_v32  ;;  %5145 = vmatprep.subr.bf16.mxu0 %v10792_v53  ;;  %v13320_v9 = vsel %vm7193_vm7, %v7212_v4, %v7213_v7  ;;  %v10816_v5 = vld [vmem:[#allocation15 + $0xb2c] ss:$16 sps:$4 sm:$0xff]   ;;  %v10811_v51 = vld [vmem:[#allocation15 + $0xb20] ss:$16 sps:$4 sm:$0xff]   ;;  %v10814_v60 = vld [vmem:[#allocation15 + $0xb28] ss:$16 sps:$4 sm:$0xff]  }
 0x63a   : > { %v10819_v32 = vld [vmem:[#allocation15 + $0xb44] ss:$16 sps:$4 sm:$0xff]   ;;  %v10822_v53 = vld [vmem:[#allocation15 + $0xb4c] ss:$16 sps:$4 sm:$0xff]   ;;  %v10817_v6 = vld [vmem:[#allocation15 + $0xb40] ss:$16 sps:$4 sm:$0xff]  }
 0x63b   : > { %v10828_v10 = vld [vmem:[#allocation15 + $0xb6c] ss:$16 sps:$4 sm:$0xff]   ;;  %v10823_v40 = vld [vmem:[#allocation15 + $0xb60] ss:$16 sps:$4 sm:$0xff]   ;;  %v10826_v49 = vld [vmem:[#allocation15 + $0xb68] ss:$16 sps:$4 sm:$0xff]  }
 0x63c   : > { %4974 = vmatpush1.bf16.msra.mxu1 %v10787_v63  ;;  %5146 = vmatpush1.bf16.msra.mxu0 %v10790_v1  ;;  %v10820_v63 = vld [vmem:[#allocation15 + $0xb48] ss:$16 sps:$4 sm:$0xff]   ;;  %v10825_v1 = vld [vmem:[#allocation15 + $0xb64] ss:$16 sps:$4 sm:$0xff]   ;;  %v10834_v15 = vld [vmem:[#allocation15 + $0xb8c] ss:$16 sps:$4 sm:$0xff]  }
 0x63d   : > { %4975 = vmatprep.subr.bf16.mxu1 %v10795_v29  ;;  %5147 = vmatprep.subr.bf16.mxu0 %v10798_v37  ;;  %v10831_v58 = vld [vmem:[#allocation15 + $0xb84] ss:$16 sps:$4 sm:$0xff]   ;;  %v10829_v29 = vld [vmem:[#allocation15 + $0xb80] ss:$16 sps:$4 sm:$0xff]   ;;  %v10832_v37 = vld [vmem:[#allocation15 + $0xb88] ss:$16 sps:$4 sm:$0xff]  }
 0x63e   : > { %v10835_v61 = vld [vmem:[#allocation15 + $0xba0] ss:$16 sps:$4 sm:$0xff]   ;;  %v10838_v48 = vld [vmem:[#allocation15 + $0xba8] ss:$16 sps:$4 sm:$0xff]   ;;  %v10843_v12 = vld [vmem:[#allocation15 + $0xbc4] ss:$16 sps:$4 sm:$0xff]  }
 0x63f   : > { %v10846_v46 = vld [vmem:[#allocation15 + $0xbcc] ss:$16 sps:$4 sm:$0xff]   ;;  %v10841_v54 = vld [vmem:[#allocation15 + $0xbc0] ss:$16 sps:$4 sm:$0xff]   ;;  %v10844_v56 = vld [vmem:[#allocation15 + $0xbc8] ss:$16 sps:$4 sm:$0xff]  }
 0x640   : > { %4976 = vmatpush1.bf16.msra.mxu1 %v10793_v50  ;;  %5148 = vmatpush1.bf16.msra.mxu0 %v10796_v42  ;;  %v10837_v50 = vld [vmem:[#allocation15 + $0xba4] ss:$16 sps:$4 sm:$0xff]   ;;  %v10840_v42 = vld [vmem:[#allocation15 + $0xbac] ss:$16 sps:$4 sm:$0xff]   ;;  %v10847_v26 = vld [vmem:[#allocation15 + $0xbe0] ss:$16 sps:$4 sm:$0xff]  }
 0x641   : > { %4977 = vmatprep.subr.bf16.mxu1 %v10801_v59  ;;  %5149 = vmatprep.subr.bf16.mxu0 %v10804_v0  ;;  %v10849_v62 = vld [vmem:[#allocation15 + $0xbe4] ss:$16 sps:$4 sm:$0xff]   ;;  %v10852_v45 = vld [vmem:[#allocation15 + $0xbec] ss:$16 sps:$4 sm:$0xff]   ;;  %v10850_v35 = vld [vmem:[#allocation15 + $0xbe8] ss:$16 sps:$4 sm:$0xff]  }
 0x642   : > { %v10855_v36 = vld [vmem:[#allocation15 + $0xc04] ss:$16 sps:$4 sm:$0xff]   ;;  %v10858_v28 = vld [vmem:[#allocation15 + $0xc0c] ss:$16 sps:$4 sm:$0xff]   ;;  %v10853_v47 = vld [vmem:[#allocation15 + $0xc00] ss:$16 sps:$4 sm:$0xff]  }
 0x643   : > { %v10856_v59 = vld [vmem:[#allocation15 + $0xc08] ss:$16 sps:$4 sm:$0xff]   ;;  %v10861_v0 = vld [vmem:[#allocation15 + $0xc24] ss:$16 sps:$4 sm:$0xff]   ;;  %v10864_v27 = vld [vmem:[#allocation15 + $0xc2c] ss:$16 sps:$4 sm:$0xff]  }
 0x644   : > { %4978 = vmatpush1.bf16.msra.mxu1 %v10799_v21  ;;  %5150 = vmatpush1.bf16.msra.mxu0 %v10802_v23  ;;  %v10859_v17 = vld [vmem:[#allocation15 + $0xc20] ss:$16 sps:$4 sm:$0xff]   ;;  %v10862_v19 = vld [vmem:[#allocation15 + $0xc28] ss:$16 sps:$4 sm:$0xff]   ;;  %v10867_v55 = vld [vmem:[#allocation15 + $0xc44] ss:$16 sps:$4 sm:$0xff]  }
 0x645   : > { %4979 = vmatprep.subr.bf16.mxu1 %v10807_v16  ;;  %5151 = vmatprep.subr.bf16.mxu0 %v10810_v24  ;;  %v10870_v2 = vld [vmem:[#allocation15 + $0xc4c] ss:$16 sps:$4 sm:$0xff]   ;;  %v10865_v14 = vld [vmem:[#allocation15 + $0xc40] ss:$16 sps:$4 sm:$0xff]   ;;  %v10868_v18 = vld [vmem:[#allocation15 + $0xc48] ss:$16 sps:$4 sm:$0xff]  }
 0x646   : > { %v10873_v20 = vld [vmem:[#allocation15 + $0xc64] ss:$16 sps:$4 sm:$0xff]   ;;  %v10871_v4 = vld [vmem:[#allocation15 + $0xc60] ss:$16 sps:$4 sm:$0xff]   ;;  %v10874_v7 = vld [vmem:[#allocation15 + $0xc68] ss:$16 sps:$4 sm:$0xff]  }
 0x647   : > { %v10879_v21 = vld [vmem:[#allocation15 + $0xc84] ss:$16 sps:$4 sm:$0xff]   ;;  %v10877_v23 = vld [vmem:[#allocation15 + $0xc80] ss:$16 sps:$4 sm:$0xff]   ;;  %v10880_v16 = vld [vmem:[#allocation15 + $0xc88] ss:$16 sps:$4 sm:$0xff]  }
 0x648   : > { %4980 = vmatpush1.bf16.msra.mxu1 %v10805_v57  ;;  %5152 = vmatpush1.bf16.msra.mxu0 %v10808_v52  ;;  %v10885_v24 = vld [vmem:[#allocation15 + $0xca4] ss:$16 sps:$4 sm:$0xff]   ;;  %v10888_v57 = vld [vmem:[#allocation15 + $0xcac] ss:$16 sps:$4 sm:$0xff]   ;;  %v10883_v52 = vld [vmem:[#allocation15 + $0xca0] ss:$16 sps:$4 sm:$0xff]  }
 0x649   : > { %4981 = vmatprep.subr.bf16.mxu1 %v10813_v31  ;;  %5153 = vmatprep.subr.bf16.mxu0 %v10816_v5  ;;  %v10886_v31 = vld [vmem:[#allocation15 + $0xca8] ss:$16 sps:$4 sm:$0xff]   ;;  %v10891_v5 = vld [vmem:[#allocation15 + $0xcc4] ss:$16 sps:$4 sm:$0xff]  }
 0x64c   : > { %4982 = vmatpush1.bf16.msra.mxu1 %v10811_v51  ;;  %5154 = vmatpush1.bf16.msra.mxu0 %v10814_v60  ;;  %v10894_v51 = vld [vmem:[#allocation15 + $0xccc] ss:$16 sps:$4 sm:$0xff]   ;;  %v10889_v60 = vld [vmem:[#allocation15 + $0xcc0] ss:$16 sps:$4 sm:$0xff]  }
 0x64d   : > { %4983 = vmatprep.subr.bf16.mxu1 %v10819_v32  ;;  %5155 = vmatprep.subr.bf16.mxu0 %v10822_v53  ;;  %v10892_v32 = vld [vmem:[#allocation15 + $0xcc8] ss:$16 sps:$4 sm:$0xff]   ;;  %v10897_v53 = vld [vmem:[#allocation15 + $0xce4] ss:$16 sps:$4 sm:$0xff]  }
 0x650   : > { %4984 = vmatpush1.bf16.msra.mxu1 %v10817_v6  ;;  %5156 = vmatpush1.bf16.msra.mxu0 %v10820_v63  ;;  %v10900_v6 = vld [vmem:[#allocation15 + $0xcec] ss:$16 sps:$4 sm:$0xff]   ;;  %v10895_v63 = vld [vmem:[#allocation15 + $0xce0] ss:$16 sps:$4 sm:$0xff]  }
 0x651   : > { %4985 = vmatprep.subr.bf16.mxu1 %v10825_v1  ;;  %5157 = vmatprep.subr.bf16.mxu0 %v10828_v10  ;;  %v10898_v1 = vld [vmem:[#allocation15 + $0xce8] ss:$16 sps:$4 sm:$0xff]   ;;  %v10903_v10 = vld [vmem:[#allocation15 + $0xd04] ss:$16 sps:$4 sm:$0xff]  }
 0x654   : > { %4986 = vmatpush1.bf16.msra.mxu1 %v10823_v40  ;;  %5158 = vmatpush1.bf16.msra.mxu0 %v10826_v49  ;;  %v10906_v40 = vld [vmem:[#allocation15 + $0xd0c] ss:$16 sps:$4 sm:$0xff]   ;;  %v10901_v49 = vld [vmem:[#allocation15 + $0xd00] ss:$16 sps:$4 sm:$0xff]  }
 0x655   : > { %4987 = vmatprep.subr.bf16.mxu1 %v10831_v58  ;;  %5159 = vmatprep.subr.bf16.mxu0 %v10834_v15  ;;  %v10904_v58 = vld [vmem:[#allocation15 + $0xd08] ss:$16 sps:$4 sm:$0xff]   ;;  %v10909_v15 = vld [vmem:[#allocation15 + $0xd24] ss:$16 sps:$4 sm:$0xff]  }
 0x658   : > { %4988 = vmatpush1.bf16.msra.mxu1 %v10829_v29  ;;  %5160 = vmatpush1.bf16.msra.mxu0 %v10832_v37  ;;  %v10912_v29 = vld [vmem:[#allocation15 + $0xd2c] ss:$16 sps:$4 sm:$0xff]   ;;  %v10907_v37 = vld [vmem:[#allocation15 + $0xd20] ss:$16 sps:$4 sm:$0xff]  }
 0x659   : > { %4989 = vmatprep.subr.bf16.mxu1 %v10837_v50  ;;  %5161 = vmatprep.subr.bf16.mxu0 %v10840_v42  ;;  %v10910_v50 = vld [vmem:[#allocation15 + $0xd28] ss:$16 sps:$4 sm:$0xff]   ;;  %v10915_v42 = vld [vmem:[#allocation15 + $0xd44] ss:$16 sps:$4 sm:$0xff]  }
 0x65c   : > { %4990 = vmatpush1.bf16.msra.mxu1 %v10835_v61  ;;  %5162 = vmatpush1.bf16.msra.mxu0 %v10838_v48  ;;  %v10918_v61 = vld [vmem:[#allocation15 + $0xd4c] ss:$16 sps:$4 sm:$0xff]   ;;  %v10913_v48 = vld [vmem:[#allocation15 + $0xd40] ss:$16 sps:$4 sm:$0xff]  }
 0x65d   : > { %4991 = vmatprep.subr.bf16.mxu1 %v10843_v12  ;;  %5163 = vmatprep.subr.bf16.mxu0 %v10846_v46  ;;  %v10916_v12 = vld [vmem:[#allocation15 + $0xd48] ss:$16 sps:$4 sm:$0xff]   ;;  %v10921_v46 = vld [vmem:[#allocation15 + $0xd64] ss:$16 sps:$4 sm:$0xff]  }
 0x660   : > { %4992 = vmatpush1.bf16.msra.mxu1 %v10841_v54  ;;  %5164 = vmatpush1.bf16.msra.mxu0 %v10844_v56  ;;  %v10924_v54 = vld [vmem:[#allocation15 + $0xd6c] ss:$16 sps:$4 sm:$0xff]   ;;  %v10919_v56 = vld [vmem:[#allocation15 + $0xd60] ss:$16 sps:$4 sm:$0xff]  }
 0x661   : > { %4993 = vmatprep.subr.bf16.mxu1 %v10849_v62  ;;  %5165 = vmatprep.subr.bf16.mxu0 %v10852_v45  ;;  %v10922_v62 = vld [vmem:[#allocation15 + $0xd68] ss:$16 sps:$4 sm:$0xff]   ;;  %v10927_v45 = vld [vmem:[#allocation15 + $0xd84] ss:$16 sps:$4 sm:$0xff]  }
 0x664   : > { %4994 = vmatpush1.bf16.msra.mxu1 %v10847_v26  ;;  %5166 = vmatpush1.bf16.msra.mxu0 %v10850_v35  ;;  %v10930_v26 = vld [vmem:[#allocation15 + $0xd8c] ss:$16 sps:$4 sm:$0xff]  }
 0x665   : > { %5006 = vmatprep.subr.bf16.mxu1 %v10855_v36  ;;  %5178 = vmatprep.subr.bf16.mxu0 %v10858_v28  ;;  %v3250_v35 = vld [vmem:[#allocation3 + $0x20] sm:$0xfe]  ;;  %v10928_v28 = vld [vmem:[#allocation15 + $0xd88] ss:$16 sps:$4 sm:$0xff]  }
 0x666   : > { %v10925_v36 = vld [vmem:[#allocation15 + $0xd80] ss:$16 sps:$4 sm:$0xff]  }
 0x667   : > { %4996 = vmatmul.mubr.bf16.vlgmr.msra.gmra.mrb[20].mxu1 %v13286_v11  ;;  %5168 = vmatmul.mubr.bf16.vlgmr.msra.gmra.mrb[20].mxu0 %v13286_v11  ;;  %v10876_v11 = vld [vmem:[#allocation15 + $0xc6c] ss:$16 sps:$4 sm:$0xff]  }
 0x668   : > { %5007 = vmatpush1.bf16.msra.mxu1 %v10853_v47  ;;  %5038 = vmatprep.mubr.bf16.mxu1 %v13292_v3  ;;  %v10933_v47 = vld [vmem:[#allocation15 + $0xda4] ss:$16 sps:$4 sm:$0xff]  }
 0x669   : > { %5179 = vmatpush1.bf16.msra.mxu0 %v10856_v59  ;;  %5210 = vmatprep.mubr.bf16.mxu0 %v13292_v3  ;;  %v10882_v3 = vld [vmem:[#allocation15 + $0xc8c] ss:$16 sps:$4 sm:$0xff]   ;;  %v3253_v59 = vld [vmem:[#allocation3 + $0x38] sm:$0xfe] }
 0x66a   : > { %5008 = vmatprep.subr.bf16.mxu1 %v10861_v0  ;;  %5180 = vmatprep.subr.bf16.mxu0 %v10864_v27  ;;  %v10936_v0 = vld [vmem:[#allocation15 + $0xdac] ss:$16 sps:$4 sm:$0xff]   ;;  %v3266_v27 = vpack.c.bf16 %v13294_v34, %v3250_v35  ;;  %v10940_v34 = vld [vmem:[#allocation15 + $0xdc8] ss:$16 sps:$4 sm:$0xff]  }
 0x66b   : > { %v10978_v35 = vld [vmem:[#allocation15 + $0xe8c] ss:$16 sps:$4 sm:$0xff]  }
 0x66c   : > { %5009 = vmatpush1.bf16.msra.mxu1 %v10859_v17  ;;  %v10931_v17 = vld [vmem:[#allocation15 + $0xda0] ss:$16 sps:$4 sm:$0xff]  }
 0x66d   : > { %5181 = vmatpush1.bf16.msra.mxu0 %v10862_v19  ;;  %5010 = vmatprep.subr.bf16.mxu1 %v10867_v55  ;;  %v3269_v19 = vpack.c.bf16 %v13296_v39, %v3253_v59  ;;  %v10934_v55 = vld [vmem:[#allocation15 + $0xda8] ss:$16 sps:$4 sm:$0xff]   ;;  %v10984_v59 = vld [vmem:[#allocation15 + $0xeac] ss:$16 sps:$4 sm:$0xff]  }
 0x66e   : > { %5182 = vmatprep.subr.bf16.mxu0 %v10870_v2  ;;  %v10939_v2 = vld [vmem:[#allocation15 + $0xdc4] ss:$16 sps:$4 sm:$0xff]  }
 0x670   : > { %5011 = vmatpush1.bf16.msra.mxu1 %v10865_v14  ;;  %v3258_v14 = vld [vmem:[#allocation3 + $0xa0] sm:$0x1] }
 0x671   : > { %5183 = vmatpush1.bf16.msra.mxu0 %v10868_v18  ;;  %5012 = vmatprep.subr.bf16.mxu1 %v10873_v20  ;;  %v10942_v18 = vld [vmem:[#allocation15 + $0xdcc] ss:$16 sps:$4 sm:$0xff]   ;;  %v3587_v20 = vshll.u32 %v3266_v27, 16 }
 0x672   : > { %5184 = vmatprep.subr.bf16.mxu0 %v10876_v11  ;;  %v3261_v11 = vld [vmem:[#allocation3 + $0xb8] sm:$0x1] }
 0x673   : > { %v3589_v39 = vrot.slane %v3587_v20, 1  ;;  %v10991_v20 = vld [vmem:[#allocation15 + $0xee0] ss:$16 sps:$4 sm:$0xff]  }
 0x674   : > { %5013 = vmatpush1.bf16.msra.mxu1 %v10871_v4  ;;  %v10937_v4 = vld [vmem:[#allocation15 + $0xdc0] ss:$16 sps:$4 sm:$0xff]  }
 0x675   : > { %5185 = vmatpush1.bf16.msra.mxu0 %v10874_v7  ;;  %5014 = vmatprep.subr.bf16.mxu1 %v10879_v21  ;;  %v3274_v7 = vpack.c.bf16 %v3258_v14, %v3258_v14  ;;  %v3623_v21 = vshll.u32 %v3269_v19, 16  ;;  %v10993_v14 = vld [vmem:[#allocation15 + $0xee4] ss:$16 sps:$4 sm:$0xff]  }
 0x676   : > { %5186 = vmatprep.subr.bf16.mxu0 %v10882_v3  ;;  %v10945_v3 = vld [vmem:[#allocation15 + $0xde4] ss:$16 sps:$4 sm:$0xff]  }
 0x678   : > { %5015 = vmatpush1.bf16.msra.mxu1 %v10877_v23  ;;  %v10948_v23 = vld [vmem:[#allocation15 + $0xdec] ss:$16 sps:$4 sm:$0xff]  }
 0x679   : > { %5187 = vmatpush1.bf16.msra.mxu0 %v10880_v16  ;;  %5016 = vmatprep.subr.bf16.mxu1 %v10885_v24  ;;  %v3277_v16 = vpack.c.bf16 %v3261_v11, %v3261_v11  ;;  %v10943_v24 = vld [vmem:[#allocation15 + $0xde0] ss:$16 sps:$4 sm:$0xff]   ;;  %v10994_v11 = vld [vmem:[#allocation15 + $0xee8] ss:$16 sps:$4 sm:$0xff]  }
 0x67a   : > { %5188 = vmatprep.subr.bf16.mxu0 %v10888_v57  ;;  %v3585_v57 = vshrl.u32 %v3266_v27, 16  ;;  %v10982_v27 = vld [vmem:[#allocation15 + $0xea8] ss:$16 sps:$4 sm:$0xff]  }
 0x67c   : > { %5017 = vmatpush1.bf16.msra.mxu1 %v10883_v52  ;;  %v3592_v52 = vshll.u32 %v3274_v7, 16  ;;  %v11002_v7 = vld [vmem:[#allocation15 + $0xf0c] ss:$16 sps:$4 sm:$0xff]  }
 0x67d   : > { %5189 = vmatpush1.bf16.msra.mxu0 %v10886_v31  ;;  %5018 = vmatprep.subr.bf16.mxu1 %v10891_v5  ;;  %v3625_v31 = vrot.slane %v3623_v21, 1  ;;  %v10946_v5 = vld [vmem:[#allocation15 + $0xde8] ss:$16 sps:$4 sm:$0xff]   ;;  %v10997_v21 = vld [vmem:[#allocation15 + $0xf00] ss:$16 sps:$4 sm:$0xff]  }
 0x67e   : > { %5190 = vmatprep.subr.bf16.mxu0 %v10894_v51  ;;  %v10951_v51 = vld [vmem:[#allocation15 + $0xe04] ss:$16 sps:$4 sm:$0xff]  }
 0x680   : > { %5019 = vmatpush1.bf16.msra.mxu1 %v10889_v60  ;;  %v3590_v60 = vor.u32 %v3589_v39, %v3585_v57  ;;  %v11003_v39 = vld [vmem:[#allocation15 + $0xf20] ss:$16 sps:$4 sm:$0xff]   ;;  %v11014_v57 = vld [vmem:[#allocation15 + $0xf4c] ss:$16 sps:$4 sm:$0xff]  }
 0x681   : > { %5191 = vmatpush1.bf16.msra.mxu0 %v10892_v32  ;;  %5020 = vmatprep.subr.bf16.mxu1 %v10897_v53  ;;  %v10954_v32 = vld [vmem:[#allocation15 + $0xe0c] ss:$16 sps:$4 sm:$0xff]   ;;  %v3621_v53 = vshrl.u32 %v3269_v19, 16 }
 0x682   : > { %5192 = vmatprep.subr.bf16.mxu0 %v10900_v6  ;;  %v3628_v6 = vshll.u32 %v3277_v16, 16  ;;  %v10990_v19 = vld [vmem:[#allocation15 + $0xecc] ss:$16 sps:$4 sm:$0xff]   ;;  %v11006_v16 = vld [vmem:[#allocation15 + $0xf28] ss:$16 sps:$4 sm:$0xff]  }
 0x684   : > { %5021 = vmatpush1.bf16.msra.mxu1 %v10895_v63  ;;  %v3594_v63 = vrot.slane %v3592_v52, 1  ;;  %v11009_v52 = vld [vmem:[#allocation15 + $0xf40] ss:$16 sps:$4 sm:$0xff]  }
 0x685   : > { %5193 = vmatpush1.bf16.msra.mxu0 %v10898_v1  ;;  %5022 = vmatprep.subr.bf16.mxu1 %v10903_v10  ;;  %v10949_v1 = vld [vmem:[#allocation15 + $0xe00] ss:$16 sps:$4 sm:$0xff]   ;;  %v3626_v10 = vor.u32 %v3625_v31, %v3621_v53  ;;  %v11012_v31 = vld [vmem:[#allocation15 + $0xf48] ss:$16 sps:$4 sm:$0xff]   ;;  %v11023_v53 = vld [vmem:[#allocation15 + $0xf84] ss:$16 sps:$4 sm:$0xff]  }
 0x686   : > { %5194 = vmatprep.subr.bf16.mxu0 %v10906_v40  ;;  %v10952_v40 = vld [vmem:[#allocation15 + $0xe08] ss:$16 sps:$4 sm:$0xff]  }
 0x688   : > { %5023 = vmatpush1.bf16.msra.mxu1 %v10901_v49  ;;  %v3595_v49 = vsel %vm3535_vm6, %v3590_v60, %v3594_v63  ;;  %v11015_v60 = vld [vmem:[#allocation15 + $0xf60] ss:$16 sps:$4 sm:$0xff]  }
 0x689   : > { %5195 = vmatpush1.bf16.msra.mxu0 %v10904_v58  ;;  %5024 = vmatprep.subr.bf16.mxu1 %v10909_v15  ;;  %v3630_v58 = vrot.slane %v3628_v6, 1  ;;  %v10957_v15 = vld [vmem:[#allocation15 + $0xe24] ss:$16 sps:$4 sm:$0xff]   ;;  %v11026_v6 = vld [vmem:[#allocation15 + $0xf8c] ss:$16 sps:$4 sm:$0xff]  }
 0x68a   : > { %5196 = vmatprep.subr.bf16.mxu0 %v10912_v29  ;;  %v10960_v29 = vld [vmem:[#allocation15 + $0xe2c] ss:$16 sps:$4 sm:$0xff]  }
 0x68b   : > { %v3252_v63 = vld [vmem:[#allocation3 + $0x30] sm:$0xfe] }
 0x68c   : > { %5025 = vmatpush1.bf16.msra.mxu1 %v10907_v37  ;;  %v3631_v37 = vsel %vm3535_vm6, %v3626_v10, %v3630_v58  ;;  %v11024_v10 = vld [vmem:[#allocation15 + $0xf88] ss:$16 sps:$4 sm:$0xff]   ;;  %v3268_v58 = vpack.c.bf16 %v13298_v30, %v3252_v63  ;;  %v11081_v63 = vld [vmem:[#allocation15 + $0xc0] ss:$16 sps:$4 sm:$0xff]  }
 0x68d   : > { %5197 = vmatpush1.bf16.msra.mxu0 %v10910_v50  ;;  %5026 = vmatprep.subr.bf16.mxu1 %v10915_v42  ;;  %v10955_v50 = vld [vmem:[#allocation15 + $0xe20] ss:$16 sps:$4 sm:$0xff]   ;;  %v10958_v42 = vld [vmem:[#allocation15 + $0xe28] ss:$16 sps:$4 sm:$0xff]  }
 0x68e   : > { %5198 = vmatprep.subr.bf16.mxu0 %v10918_v61  ;;  %v10963_v61 = vld [vmem:[#allocation15 + $0xe44] ss:$16 sps:$4 sm:$0xff]  }
 0x690   : > { %5027 = vmatpush1.bf16.msra.mxu1 %v10913_v48  ;;  %v10966_v48 = vld [vmem:[#allocation15 + $0xe4c] ss:$16 sps:$4 sm:$0xff]  }
 0x691   : > { %5199 = vmatpush1.bf16.msra.mxu0 %v10916_v12  ;;  %5028 = vmatprep.subr.bf16.mxu1 %v10921_v46  ;;  %v10961_v12 = vld [vmem:[#allocation15 + $0xe40] ss:$16 sps:$4 sm:$0xff]   ;;  %v10964_v46 = vld [vmem:[#allocation15 + $0xe48] ss:$16 sps:$4 sm:$0xff]  }
 0x692   : > { %5200 = vmatprep.subr.bf16.mxu0 %v10924_v54  ;;  %v10969_v54 = vld [vmem:[#allocation15 + $0xe64] ss:$16 sps:$4 sm:$0xff]  }
 0x694   : > { %5029 = vmatpush1.bf16.msra.mxu1 %v10919_v56  ;;  %v10972_v56 = vld [vmem:[#allocation15 + $0xe6c] ss:$16 sps:$4 sm:$0xff]  }
 0x695   : > { %5201 = vmatpush1.bf16.msra.mxu0 %v10922_v62  ;;  %5030 = vmatprep.subr.bf16.mxu1 %v10927_v45  ;;  %v10967_v62 = vld [vmem:[#allocation15 + $0xe60] ss:$16 sps:$4 sm:$0xff]   ;;  %v10970_v45 = vld [vmem:[#allocation15 + $0xe68] ss:$16 sps:$4 sm:$0xff]  }
 0x696   : > { %5202 = vmatprep.subr.bf16.mxu0 %v10930_v26  ;;  %v10975_v26 = vld [vmem:[#allocation15 + $0xe84] ss:$16 sps:$4 sm:$0xff]  }
 0x698   : > { %5031 = vmatpush1.bf16.msra.mxu1 %v10925_v36  ;;  %v10973_v36 = vld [vmem:[#allocation15 + $0xe80] ss:$16 sps:$4 sm:$0xff]  }
 0x699   : > { %5203 = vmatpush1.bf16.msra.mxu0 %v10928_v28  ;;  %5032 = vmatprep.subr.bf16.mxu1 %v10933_v47  ;;  %v10976_v28 = vld [vmem:[#allocation15 + $0xe88] ss:$16 sps:$4 sm:$0xff]   ;;  %v10981_v47 = vld [vmem:[#allocation15 + $0xea4] ss:$16 sps:$4 sm:$0xff]  }
 0x69a   : > { %5204 = vmatprep.subr.bf16.mxu0 %v10936_v0  ;;  %v10979_v0 = vld [vmem:[#allocation15 + $0xea0] ss:$16 sps:$4 sm:$0xff]  }
 0x69c   : > { %5033 = vmatpush1.bf16.msra.mxu1 %v10931_v17  ;;  %v10987_v17 = vld [vmem:[#allocation15 + $0xec4] ss:$16 sps:$4 sm:$0xff]  }
 0x69d   : > { %5205 = vmatpush1.bf16.msra.mxu0 %v10934_v55  ;;  %5034 = vmatprep.subr.bf16.mxu1 %v10939_v2  ;;  %v10985_v55 = vld [vmem:[#allocation15 + $0xec0] ss:$16 sps:$4 sm:$0xff]   ;;  %v10988_v2 = vld [vmem:[#allocation15 + $0xec8] ss:$16 sps:$4 sm:$0xff]  }
 0x69e   : > { %5206 = vmatprep.subr.bf16.mxu0 %v10942_v18  ;;  %v10996_v18 = vld [vmem:[#allocation15 + $0xeec] ss:$16 sps:$4 sm:$0xff]  }
 0x6a0   : > { %5035 = vmatpush1.bf16.msra.mxu1 %v10937_v4  ;;  %v10999_v4 = vld [vmem:[#allocation15 + $0xf04] ss:$16 sps:$4 sm:$0xff]  }
 0x6a1   : > { %5207 = vmatpush1.bf16.msra.mxu0 %v10940_v34  ;;  %5036 = vmatprep.subr.bf16.mxu1 %v10945_v3  ;;  %v11000_v34 = vld [vmem:[#allocation15 + $0xf08] ss:$16 sps:$4 sm:$0xff]   ;;  %v11005_v3 = vld [vmem:[#allocation15 + $0xf24] ss:$16 sps:$4 sm:$0xff]  }
 0x6a2   : > { %5208 = vmatprep.subr.bf16.mxu0 %v10948_v23  ;;  %v11008_v23 = vld [vmem:[#allocation15 + $0xf2c] ss:$16 sps:$4 sm:$0xff]  }
 0x6a4   : > { %5037 = vmatpush1.bf16.msra.mxu1 %v10943_v24  ;;  %v11011_v24 = vld [vmem:[#allocation15 + $0xf44] ss:$16 sps:$4 sm:$0xff]  }
 0x6a5   : > { %5209 = vmatpush1.bf16.msra.mxu0 %v10946_v5  ;;  %5049 = vmatprep.subr.bf16.mxu1 %v10951_v51  ;;  %v11017_v5 = vld [vmem:[#allocation15 + $0xf64] ss:$16 sps:$4 sm:$0xff]   ;;  %v11020_v51 = vld [vmem:[#allocation15 + $0xf6c] ss:$16 sps:$4 sm:$0xff]  }
 0x6a6   : > { %5221 = vmatprep.subr.bf16.mxu0 %v10954_v32  ;;  %v11018_v32 = vld [vmem:[#allocation15 + $0xf68] ss:$16 sps:$4 sm:$0xff]  }
 0x6a7   : > { %5039 = vmatmul.mubr.bf16.vlgmr.msra.gmra.mrb[20].mxu1 %v3595_v49 }
 0x6a8   : > { %5211 = vmatmul.mubr.bf16.vlgmr.msra.gmra.mrb[20].mxu0 %v3595_v49  ;;  %5050 = vmatpush1.bf16.msra.mxu1 %v10949_v1  ;;  %v11021_v1 = vld [vmem:[#allocation15 + $0xf80] ss:$16 sps:$4 sm:$0xff]   ;;  %v11032_v49 = vld [vmem:[#allocation15 + $0xfac] ss:$16 sps:$4 sm:$0xff]  }
 0x6a9   : > { %5081 = vmatprep.mubr.bf16.mxu1 %v3631_v37  ;;  %5222 = vmatpush1.bf16.msra.mxu0 %v10952_v40  ;;  %v11029_v40 = vld [vmem:[#allocation15 + $0xfa4] ss:$16 sps:$4 sm:$0xff]  }
 0x6aa   : > { %5253 = vmatprep.mubr.bf16.mxu0 %v3631_v37  ;;  %5051 = vmatprep.subr.bf16.mxu1 %v10957_v15  ;;  %v11027_v15 = vld [vmem:[#allocation15 + $0xfa0] ss:$16 sps:$4 sm:$0xff]   ;;  %v11035_v37 = vld [vmem:[#allocation15 + $0xfc4] ss:$16 sps:$4 sm:$0xff]  }
 0x6ab   : > { %5223 = vmatprep.subr.bf16.mxu0 %v10960_v29  ;;  %v11030_v29 = vld [vmem:[#allocation15 + $0xfa8] ss:$16 sps:$4 sm:$0xff]  }
 0x6ac   : > { %5052 = vmatpush1.bf16.msra.mxu1 %v10955_v50  ;;  %v3260_v50 = vld [vmem:[#allocation3 + $0xb0] sm:$0x1] }
 0x6ad   : > { %5224 = vmatpush1.bf16.msra.mxu0 %v10958_v42  ;;  %5053 = vmatprep.subr.bf16.mxu1 %v10963_v61  ;;  %v11038_v42 = vld [vmem:[#allocation15 + $0xfcc] ss:$16 sps:$4 sm:$0xff]   ;;  %v3611_v61 = vshll.u32 %v3268_v58, 16 }
 0x6ae   : > { %5225 = vmatprep.subr.bf16.mxu0 %v10966_v48  ;;  %v11033_v48 = vld [vmem:[#allocation15 + $0xfc0] ss:$16 sps:$4 sm:$0xff]  }
 0x6af   : > { %v3613_v30 = vrot.slane %v3611_v61, 1  ;;  %v11104_v61 = vld [vmem:[#allocation15 + $0x12c] ss:$16 sps:$4 sm:$0xff]  }
 0x6b0   : > { %5054 = vmatpush1.bf16.msra.mxu1 %v10961_v12  ;;  %v3276_v12 = vpack.c.bf16 %v3260_v50, %v3260_v50  ;;  %v11096_v50 = vld [vmem:[#allocation15 + $0x108] ss:$16 sps:$4 sm:$0xff]  }
 0x6b1   : > { %5226 = vmatpush1.bf16.msra.mxu0 %v10964_v46  ;;  %5055 = vmatprep.subr.bf16.mxu1 %v10969_v54  ;;  %v11036_v46 = vld [vmem:[#allocation15 + $0xfc8] ss:$16 sps:$4 sm:$0xff]   ;;  %v11041_v54 = vld [vmem:[#allocation15 + $0xfe4] ss:$16 sps:$4 sm:$0xff]  }
 0x6b2   : > { %5227 = vmatprep.subr.bf16.mxu0 %v10972_v56  ;;  %v11044_v56 = vld [vmem:[#allocation15 + $0xfec] ss:$16 sps:$4 sm:$0xff]  }
 0x6b4   : > { %5056 = vmatpush1.bf16.msra.mxu1 %v10967_v62  ;;  %v11039_v62 = vld [vmem:[#allocation15 + $0xfe0] ss:$16 sps:$4 sm:$0xff]  }
 0x6b5   : > { %5228 = vmatpush1.bf16.msra.mxu0 %v10970_v45  ;;  %5057 = vmatprep.subr.bf16.mxu1 %v10975_v26  ;;  %v3609_v45 = vshrl.u32 %v3268_v58, 16  ;;  %v3616_v26 = vshll.u32 %v3276_v12, 16  ;;  %v11090_v58 = vld [vmem:[#allocation15 + $0xe8] ss:$16 sps:$4 sm:$0xff]  }
 0x6b6   : > { %5229 = vmatprep.subr.bf16.mxu0 %v10978_v35  ;;  %v11042_v35 = vld [vmem:[#allocation15 + $0xfe8] ss:$16 sps:$4 sm:$0xff]  }
 0x6b7   : > { %v11102_v12 = vld [vmem:[#allocation15 + $0x128] ss:$16 sps:$4 sm:$0xff]  }
 0x6b8   : > { %5058 = vmatpush1.bf16.msra.mxu1 %v10973_v36  ;;  %v11047_v36 = vld [vmem:[#allocation15 + $0x4] ss:$16 sps:$4 sm:$0xff]  }
 0x6b9   : > { %5230 = vmatpush1.bf16.msra.mxu0 %v10976_v28  ;;  %5059 = vmatprep.subr.bf16.mxu1 %v10981_v47  ;;  %v3614_v28 = vor.u32 %v3613_v30, %v3609_v45  ;;  %v11050_v47 = vld [vmem:[#allocation15 + $0xc] ss:$16 sps:$4 sm:$0xff]   ;;  %v11108_v30 = vld [vmem:[#allocation15 + $0x148] ss:$16 sps:$4 sm:$0xff]  }
 0x6ba   : > { %5231 = vmatprep.subr.bf16.mxu0 %v10984_v59  ;;  %v3618_v59 = vrot.slane %v3616_v26, 1  ;;  %v11116_v45 = vld [vmem:[#allocation15 + $0x16c] ss:$16 sps:$4 sm:$0xff]   ;;  %v11111_v26 = vld [vmem:[#allocation15 + $0x160] ss:$16 sps:$4 sm:$0xff]  }
 0x6bc   : > { %5060 = vmatpush1.bf16.msra.mxu1 %v10979_v0  ;;  %v11045_v0 = vld [vmem:[#allocation15] ss:$16 sps:$4 sm:$0xff]  }
 0x6bd   : > { %5232 = vmatpush1.bf16.msra.mxu0 %v10982_v27  ;;  %5061 = vmatprep.subr.bf16.mxu1 %v10987_v17  ;;  %v2967_v27 = vld [vmem:[#allocation3 + $0x8] sm:$0xff] }
 0x6be   : > { %5233 = vmatprep.subr.bf16.mxu0 %v10990_v19  ;;  %v11048_v17 = vld [vmem:[#allocation15 + $0x8] ss:$16 sps:$4 sm:$0xff]   ;;  %v3619_v19 = vsel %vm3535_vm6, %v3614_v28, %v3618_v59  ;;  %v11122_v28 = vld [vmem:[#allocation15 + $0x18c] ss:$16 sps:$4 sm:$0xff]  }
 0x6bf   : > { %v11120_v59 = vld [vmem:[#allocation15 + $0x188] ss:$16 sps:$4 sm:$0xff]  }
 0x6c0   : > { %5062 = vmatpush1.bf16.msra.mxu1 %v10985_v55  ;;  %v11053_v55 = vld [vmem:[#allocation15 + $0x24] ss:$16 sps:$4 sm:$0xff]  }
 0x6c1   : > { %5234 = vmatpush1.bf16.msra.mxu0 %v10988_v2  ;;  %5063 = vmatprep.subr.bf16.mxu1 %v10993_v14  ;;  %v11851_v2 = vld [vmem:[#allocation3 + $0x48] sm:$0xff] }
 0x6c2   : > { %5235 = vmatprep.subr.bf16.mxu0 %v10996_v18  ;;  %v2983_v14 = vpack.c.bf16 %v11851_v2, %v2967_v27  ;;  %v11056_v18 = vld [vmem:[#allocation15 + $0x2c] ss:$16 sps:$4 sm:$0xff]  }
 0x6c3   : > { %v11128_v27 = vld [vmem:[#allocation15 + $0x1ac] ss:$16 sps:$4 sm:$0xff]  }
 0x6c4   : > { %5064 = vmatpush1.bf16.msra.mxu1 %v10991_v20  ;;  %v11051_v20 = vld [vmem:[#allocation15 + $0x20] ss:$16 sps:$4 sm:$0xff]   ;;  %v11134_v2 = vld [vmem:[#allocation15 + $0x1cc] ss:$16 sps:$4 sm:$0xff]  }
 0x6c5   : > { %5236 = vmatpush1.bf16.msra.mxu0 %v10994_v11  ;;  %5065 = vmatprep.subr.bf16.mxu1 %v10999_v4  ;;  %v11054_v11 = vld [vmem:[#allocation15 + $0x28] ss:$16 sps:$4 sm:$0xff]   ;;  %v11059_v4 = vld [vmem:[#allocation15 + $0x44] ss:$16 sps:$4 sm:$0xff]  }
 0x6c6   : > { %5237 = vmatprep.subr.bf16.mxu0 %v11002_v7  ;;  %v11062_v7 = vld [vmem:[#allocation15 + $0x4c] ss:$16 sps:$4 sm:$0xff]  }
 0x6c8   : > { %5066 = vmatpush1.bf16.msra.mxu1 %v10997_v21  ;;  %v11057_v21 = vld [vmem:[#allocation15 + $0x40] ss:$16 sps:$4 sm:$0xff]  }
 0x6c9   : > { %5238 = vmatpush1.bf16.msra.mxu0 %v11000_v34  ;;  %5067 = vmatprep.subr.bf16.mxu1 %v11005_v3  ;;  %v11060_v34 = vld [vmem:[#allocation15 + $0x48] ss:$16 sps:$4 sm:$0xff]   ;;  %v11065_v3 = vld [vmem:[#allocation15 + $0x64] ss:$16 sps:$4 sm:$0xff]  }
 0x6ca   : > { %5239 = vmatprep.subr.bf16.mxu0 %v11008_v23  ;;  %v11068_v23 = vld [vmem:[#allocation15 + $0x6c] ss:$16 sps:$4 sm:$0xff]  }
 0x6cc   : > { %5068 = vmatpush1.bf16.msra.mxu1 %v11003_v39  ;;  %v11063_v39 = vld [vmem:[#allocation15 + $0x60] ss:$16 sps:$4 sm:$0xff]  }
 0x6cd   : > { %5240 = vmatpush1.bf16.msra.mxu0 %v11006_v16  ;;  %5069 = vmatprep.subr.bf16.mxu1 %v11011_v24  ;;  %v11066_v16 = vld [vmem:[#allocation15 + $0x68] ss:$16 sps:$4 sm:$0xff]   ;;  %v11071_v24 = vld [vmem:[#allocation15 + $0x84] ss:$16 sps:$4 sm:$0xff]  }
 0x6ce   : > { %5241 = vmatprep.subr.bf16.mxu0 %v11014_v57  ;;  %v11074_v57 = vld [vmem:[#allocation15 + $0x8c] ss:$16 sps:$4 sm:$0xff]  }
 0x6d0   : > { %5070 = vmatpush1.bf16.msra.mxu1 %v11009_v52  ;;  %v11069_v52 = vld [vmem:[#allocation15 + $0x80] ss:$16 sps:$4 sm:$0xff]  }
 0x6d1   : > { %5242 = vmatpush1.bf16.msra.mxu0 %v11012_v31  ;;  %5071 = vmatprep.subr.bf16.mxu1 %v11017_v5  ;;  %v11072_v31 = vld [vmem:[#allocation15 + $0x88] ss:$16 sps:$4 sm:$0xff]   ;;  %v11077_v5 = vld [vmem:[#allocation15 + $0xa4] ss:$16 sps:$4 sm:$0xff]  }
 0x6d2   : > { %5243 = vmatprep.subr.bf16.mxu0 %v11020_v51  ;;  %v11080_v51 = vld [vmem:[#allocation15 + $0xac] ss:$16 sps:$4 sm:$0xff]  }
 0x6d4   : > { %5072 = vmatpush1.bf16.msra.mxu1 %v11015_v60  ;;  %v11075_v60 = vld [vmem:[#allocation15 + $0xa0] ss:$16 sps:$4 sm:$0xff]  }
 0x6d5   : > { %5244 = vmatpush1.bf16.msra.mxu0 %v11018_v32  ;;  %5073 = vmatprep.subr.bf16.mxu1 %v11023_v53  ;;  %v11078_v32 = vld [vmem:[#allocation15 + $0xa8] ss:$16 sps:$4 sm:$0xff]   ;;  %v11083_v53 = vld [vmem:[#allocation15 + $0xc4] ss:$16 sps:$4 sm:$0xff]  }
 0x6d6   : > { %5245 = vmatprep.subr.bf16.mxu0 %v11026_v6  ;;  %v11086_v6 = vld [vmem:[#allocation15 + $0xcc] ss:$16 sps:$4 sm:$0xff]  }
 0x6d8   : > { %5074 = vmatpush1.bf16.msra.mxu1 %v11021_v1  ;;  %v11084_v1 = vld [vmem:[#allocation15 + $0xc8] ss:$16 sps:$4 sm:$0xff]  }
 0x6d9   : > { %5246 = vmatpush1.bf16.msra.mxu0 %v11024_v10  ;;  %5075 = vmatprep.subr.bf16.mxu1 %v11029_v40  ;;  %v11089_v10 = vld [vmem:[#allocation15 + $0xe4] ss:$16 sps:$4 sm:$0xff]   ;;  %v11092_v40 = vld [vmem:[#allocation15 + $0xec] ss:$16 sps:$4 sm:$0xff]  }
 0x6da   : > { %5247 = vmatprep.subr.bf16.mxu0 %v11032_v49  ;;  %v11087_v49 = vld [vmem:[#allocation15 + $0xe0] ss:$16 sps:$4 sm:$0xff]  }
 0x6dc   : > { %5076 = vmatpush1.bf16.msra.mxu1 %v11027_v15  ;;  %v11095_v15 = vld [vmem:[#allocation15 + $0x104] ss:$16 sps:$4 sm:$0xff]  }
 0x6dd   : > { %5248 = vmatpush1.bf16.msra.mxu0 %v11030_v29  ;;  %5077 = vmatprep.subr.bf16.mxu1 %v11035_v37  ;;  %v11098_v29 = vld [vmem:[#allocation15 + $0x10c] ss:$16 sps:$4 sm:$0xff]   ;;  %v11093_v37 = vld [vmem:[#allocation15 + $0x100] ss:$16 sps:$4 sm:$0xff]  }
 0x6de   : > { %5249 = vmatprep.subr.bf16.mxu0 %v11038_v42  ;;  %v11101_v42 = vld [vmem:[#allocation15 + $0x124] ss:$16 sps:$4 sm:$0xff]  }
 0x6e0   : > { %5078 = vmatpush1.bf16.msra.mxu1 %v11033_v48  ;;  %v11099_v48 = vld [vmem:[#allocation15 + $0x120] ss:$16 sps:$4 sm:$0xff]  }
 0x6e1   : > { %5250 = vmatpush1.bf16.msra.mxu0 %v11036_v46  ;;  %5079 = vmatprep.subr.bf16.mxu1 %v11041_v54  ;;  %v11107_v46 = vld [vmem:[#allocation15 + $0x144] ss:$16 sps:$4 sm:$0xff]   ;;  %v11110_v54 = vld [vmem:[#allocation15 + $0x14c] ss:$16 sps:$4 sm:$0xff]  }
 0x6e2   : > { %5251 = vmatprep.subr.bf16.mxu0 %v11044_v56  ;;  %v11105_v56 = vld [vmem:[#allocation15 + $0x140] ss:$16 sps:$4 sm:$0xff]  }
 0x6e4   : > { %5080 = vmatpush1.bf16.msra.mxu1 %v11039_v62  ;;  %v11113_v62 = vld [vmem:[#allocation15 + $0x164] ss:$16 sps:$4 sm:$0xff]  }
 0x6e5   : > { %5252 = vmatpush1.bf16.msra.mxu0 %v11042_v35  ;;  %6544 = vmatprep.subr.bf16.mxu1 %v11047_v36  ;;  %v11114_v35 = vld [vmem:[#allocation15 + $0x168] ss:$16 sps:$4 sm:$0xff]   ;;  %v11119_v36 = vld [vmem:[#allocation15 + $0x184] ss:$16 sps:$4 sm:$0xff]  }
 0x6e6   : > { %6716 = vmatprep.subr.bf16.mxu0 %v11050_v47  ;;  %v11117_v47 = vld [vmem:[#allocation15 + $0x180] ss:$16 sps:$4 sm:$0xff]  }
 0x6e7   : > { %5082 = vmatmul.mubr.bf16.vlgmr.msra.gmra.mrb[20].mxu1 %v3619_v19 }
 0x6e8   : > { %5254 = vmatmul.mubr.bf16.vlgmr.msra.gmra.mrb[20].mxu0 %v3619_v19  ;;  %6545 = vmatpush1.bf16.msra.mxu1 %v11045_v0  ;;  %v11125_v0 = vld [vmem:[#allocation15 + $0x1a4] ss:$16 sps:$4 sm:$0xff]   ;;  %v11126_v19 = vld [vmem:[#allocation15 + $0x1a8] ss:$16 sps:$4 sm:$0xff]  }
 0x6e9   : > { %6576 = vmatprep.mubr.bf16.mxu1 %v2983_v14  ;;  %6717 = vmatpush1.bf16.msra.mxu0 %v11048_v17  ;;  %v11123_v17 = vld [vmem:[#allocation15 + $0x1a0] ss:$16 sps:$4 sm:$0xff]  }
 0x6ea   : > { %6748 = vmatprep.mubr.bf16.mxu0 %v2983_v14  ;;  %6546 = vmatprep.subr.bf16.mxu1 %v11053_v55  ;;  %v11131_v55 = vld [vmem:[#allocation15 + $0x1c4] ss:$16 sps:$4 sm:$0xff]   ;;  %v11129_v14 = vld [vmem:[#allocation15 + $0x1c0] ss:$16 sps:$4 sm:$0xff]  }
 0x6eb   : > { %6718 = vmatprep.subr.bf16.mxu0 %v11056_v18  ;;  %v11132_v18 = vld [vmem:[#allocation15 + $0x1c8] ss:$16 sps:$4 sm:$0xff]  }
 0x6ec   : > { %6547 = vmatpush1.bf16.msra.mxu1 %v11051_v20  ;;  %v11137_v20 = vld [vmem:[#allocation15 + $0x1e4] ss:$16 sps:$4 sm:$0xff]  }
 0x6ed   : > { %6719 = vmatpush1.bf16.msra.mxu0 %v11054_v11  ;;  %6548 = vmatprep.subr.bf16.mxu1 %v11059_v4  ;;  %v11140_v11 = vld [vmem:[#allocation15 + $0x1ec] ss:$16 sps:$4 sm:$0xff]   ;;  %v11135_v4 = vld [vmem:[#allocation15 + $0x1e0] ss:$16 sps:$4 sm:$0xff]  }
 0x6ee   : > { %6720 = vmatprep.subr.bf16.mxu0 %v11062_v7  ;;  %v11138_v7 = vld [vmem:[#allocation15 + $0x1e8] ss:$16 sps:$4 sm:$0xff]  }
 0x6f0   : > { %6549 = vmatpush1.bf16.msra.mxu1 %v11057_v21  ;;  %v11143_v21 = vld [vmem:[#allocation15 + $0x204] ss:$16 sps:$4 sm:$0xff]  }
 0x6f1   : > { %6721 = vmatpush1.bf16.msra.mxu0 %v11060_v34  ;;  %6550 = vmatprep.subr.bf16.mxu1 %v11065_v3  ;;  %v2966_v34 = vld [vmem:[#allocation3] sm:$0xff] }
 0x6f2   : > { %6722 = vmatprep.subr.bf16.mxu0 %v11068_v23  ;;  %v11146_v3 = vld [vmem:[#allocation15 + $0x20c] ss:$16 sps:$4 sm:$0xff]   ;;  %v11141_v23 = vld [vmem:[#allocation15 + $0x200] ss:$16 sps:$4 sm:$0xff]  }
 0x6f4   : > { %6551 = vmatpush1.bf16.msra.mxu1 %v11063_v39  ;;  %v2969_v39 = vld [vmem:[#allocation3 + $0x18] sm:$0xff] }
 0x6f5   : > { %6723 = vmatpush1.bf16.msra.mxu0 %v11066_v16  ;;  %6552 = vmatprep.subr.bf16.mxu1 %v11071_v24  ;;  %v11852_v16 = vld [vmem:[#allocation3 + $0x40] sm:$0xff] }
 0x6f6   : > { %6724 = vmatprep.subr.bf16.mxu0 %v11074_v57  ;;  %v2982_v24 = vpack.c.bf16 %v11852_v16, %v2966_v34  ;;  %v11144_v57 = vld [vmem:[#allocation15 + $0x208] ss:$16 sps:$4 sm:$0xff]   ;;  %v11218_v34 = vld [vmem:[#allocation15 + $0x38c] ss:$16 sps:$4 sm:$0xff]  }
 0x6f7   : > { %v11224_v16 = vld [vmem:[#allocation15 + $0x3ac] ss:$16 sps:$4 sm:$0xff]  }
 0x6f8   : > { %6553 = vmatpush1.bf16.msra.mxu1 %v11069_v52  ;;  %v11149_v52 = vld [vmem:[#allocation15 + $0x224] ss:$16 sps:$4 sm:$0xff]  }
 0x6f9   : > { %6725 = vmatpush1.bf16.msra.mxu0 %v11072_v31  ;;  %6554 = vmatprep.subr.bf16.mxu1 %v11077_v5  ;;  %v11853_v31 = vld [vmem:[#allocation3 + $0x58] sm:$0xff] }
 0x6fa   : > { %6726 = vmatprep.subr.bf16.mxu0 %v11080_v51  ;;  %v2985_v5 = vpack.c.bf16 %v11853_v31, %v2969_v39  ;;  %v11152_v51 = vld [vmem:[#allocation15 + $0x22c] ss:$16 sps:$4 sm:$0xff]   ;;  %v11221_v39 = vld [vmem:[#allocation15 + $0x3a4] ss:$16 sps:$4 sm:$0xff]  }
 0x6fb   : > { %v11230_v31 = vld [vmem:[#allocation15 + $0x3cc] ss:$16 sps:$4 sm:$0xff]  }
 0x6fc   : > { %6555 = vmatpush1.bf16.msra.mxu1 %v11075_v60  ;;  %v11147_v60 = vld [vmem:[#allocation15 + $0x220] ss:$16 sps:$4 sm:$0xff]  }
 0x6fd   : > { %6727 = vmatpush1.bf16.msra.mxu0 %v11078_v32  ;;  %6556 = vmatprep.subr.bf16.mxu1 %v11083_v53  ;;  %v11150_v32 = vld [vmem:[#allocation15 + $0x228] ss:$16 sps:$4 sm:$0xff]   ;;  %v11155_v53 = vld [vmem:[#allocation15 + $0x244] ss:$16 sps:$4 sm:$0xff]  }
 0x6fe   : > { %6728 = vmatprep.subr.bf16.mxu0 %v11086_v6  ;;  %v11158_v6 = vld [vmem:[#allocation15 + $0x24c] ss:$16 sps:$4 sm:$0xff]  }
 0x700   : > { %6557 = vmatpush1.bf16.msra.mxu1 %v11081_v63  ;;  %v11153_v63 = vld [vmem:[#allocation15 + $0x240] ss:$16 sps:$4 sm:$0xff]  }
 0x701   : > { %6729 = vmatpush1.bf16.msra.mxu0 %v11084_v1  ;;  %6558 = vmatprep.subr.bf16.mxu1 %v11089_v10  ;;  %v11156_v1 = vld [vmem:[#allocation15 + $0x248] ss:$16 sps:$4 sm:$0xff]   ;;  %v11161_v10 = vld [vmem:[#allocation15 + $0x264] ss:$16 sps:$4 sm:$0xff]  }
 0x702   : > { %6730 = vmatprep.subr.bf16.mxu0 %v11092_v40  ;;  %v11164_v40 = vld [vmem:[#allocation15 + $0x26c] ss:$16 sps:$4 sm:$0xff]  }
 0x704   : > { %6559 = vmatpush1.bf16.msra.mxu1 %v11087_v49  ;;  %v11159_v49 = vld [vmem:[#allocation15 + $0x260] ss:$16 sps:$4 sm:$0xff]  }
 0x705   : > { %6731 = vmatpush1.bf16.msra.mxu0 %v11090_v58  ;;  %6560 = vmatprep.subr.bf16.mxu1 %v11095_v15  ;;  %v11162_v58 = vld [vmem:[#allocation15 + $0x268] ss:$16 sps:$4 sm:$0xff]   ;;  %v11167_v15 = vld [vmem:[#allocation15 + $0x284] ss:$16 sps:$4 sm:$0xff]  }
 0x706   : > { %6732 = vmatprep.subr.bf16.mxu0 %v11098_v29  ;;  %v11170_v29 = vld [vmem:[#allocation15 + $0x28c] ss:$16 sps:$4 sm:$0xff]  }
 0x708   : > { %6561 = vmatpush1.bf16.msra.mxu1 %v11093_v37  ;;  %v11165_v37 = vld [vmem:[#allocation15 + $0x280] ss:$16 sps:$4 sm:$0xff]  }
 0x709   : > { %6733 = vmatpush1.bf16.msra.mxu0 %v11096_v50  ;;  %6562 = vmatprep.subr.bf16.mxu1 %v11101_v42  ;;  %v11168_v50 = vld [vmem:[#allocation15 + $0x288] ss:$16 sps:$4 sm:$0xff]   ;;  %v11173_v42 = vld [vmem:[#allocation15 + $0x2a4] ss:$16 sps:$4 sm:$0xff]  }
 0x70a   : > { %6734 = vmatprep.subr.bf16.mxu0 %v11104_v61  ;;  %v11176_v61 = vld [vmem:[#allocation15 + $0x2ac] ss:$16 sps:$4 sm:$0xff]  }
 0x70c   : > { %6563 = vmatpush1.bf16.msra.mxu1 %v11099_v48  ;;  %v11171_v48 = vld [vmem:[#allocation15 + $0x2a0] ss:$16 sps:$4 sm:$0xff]  }
 0x70d   : > { %6735 = vmatpush1.bf16.msra.mxu0 %v11102_v12  ;;  %6564 = vmatprep.subr.bf16.mxu1 %v11107_v46  ;;  %v11174_v12 = vld [vmem:[#allocation15 + $0x2a8] ss:$16 sps:$4 sm:$0xff]   ;;  %v11179_v46 = vld [vmem:[#allocation15 + $0x2c4] ss:$16 sps:$4 sm:$0xff]  }
 0x70e   : > { %6736 = vmatprep.subr.bf16.mxu0 %v11110_v54  ;;  %v11182_v54 = vld [vmem:[#allocation15 + $0x2cc] ss:$16 sps:$4 sm:$0xff]  }
 0x710   : > { %6565 = vmatpush1.bf16.msra.mxu1 %v11105_v56  ;;  %v11177_v56 = vld [vmem:[#allocation15 + $0x2c0] ss:$16 sps:$4 sm:$0xff]  }
 0x711   : > { %6737 = vmatpush1.bf16.msra.mxu0 %v11108_v30  ;;  %6566 = vmatprep.subr.bf16.mxu1 %v11113_v62  ;;  %v11180_v30 = vld [vmem:[#allocation15 + $0x2c8] ss:$16 sps:$4 sm:$0xff]   ;;  %v11185_v62 = vld [vmem:[#allocation15 + $0x2e4] ss:$16 sps:$4 sm:$0xff]  }
 0x712   : > { %6738 = vmatprep.subr.bf16.mxu0 %v11116_v45  ;;  %v11188_v45 = vld [vmem:[#allocation15 + $0x2ec] ss:$16 sps:$4 sm:$0xff]  }
 0x714   : > { %6567 = vmatpush1.bf16.msra.mxu1 %v11111_v26  ;;  %v11183_v26 = vld [vmem:[#allocation15 + $0x2e0] ss:$16 sps:$4 sm:$0xff]  }
 0x715   : > { %6739 = vmatpush1.bf16.msra.mxu0 %v11114_v35  ;;  %6568 = vmatprep.subr.bf16.mxu1 %v11119_v36  ;;  %v11186_v35 = vld [vmem:[#allocation15 + $0x2e8] ss:$16 sps:$4 sm:$0xff]   ;;  %v11191_v36 = vld [vmem:[#allocation15 + $0x304] ss:$16 sps:$4 sm:$0xff]  }
 0x716   : > { %6740 = vmatprep.subr.bf16.mxu0 %v11122_v28  ;;  %v11194_v28 = vld [vmem:[#allocation15 + $0x30c] ss:$16 sps:$4 sm:$0xff]  }
 0x718   : > { %6569 = vmatpush1.bf16.msra.mxu1 %v11117_v47  ;;  %v11189_v47 = vld [vmem:[#allocation15 + $0x300] ss:$16 sps:$4 sm:$0xff]  }
 0x719   : > { %6741 = vmatpush1.bf16.msra.mxu0 %v11120_v59  ;;  %6570 = vmatprep.subr.bf16.mxu1 %v11125_v0  ;;  %v11192_v59 = vld [vmem:[#allocation15 + $0x308] ss:$16 sps:$4 sm:$0xff]   ;;  %v11197_v0 = vld [vmem:[#allocation15 + $0x324] ss:$16 sps:$4 sm:$0xff]  }
 0x71a   : > { %6742 = vmatprep.subr.bf16.mxu0 %v11128_v27  ;;  %v11200_v27 = vld [vmem:[#allocation15 + $0x32c] ss:$16 sps:$4 sm:$0xff]  }
 0x71c   : > { %6571 = vmatpush1.bf16.msra.mxu1 %v11123_v17  ;;  %v11195_v17 = vld [vmem:[#allocation15 + $0x320] ss:$16 sps:$4 sm:$0xff]  }
 0x71d   : > { %6743 = vmatpush1.bf16.msra.mxu0 %v11126_v19  ;;  %6572 = vmatprep.subr.bf16.mxu1 %v11131_v55  ;;  %v11198_v19 = vld [vmem:[#allocation15 + $0x328] ss:$16 sps:$4 sm:$0xff]   ;;  %v11203_v55 = vld [vmem:[#allocation15 + $0x344] ss:$16 sps:$4 sm:$0xff]  }
 0x71e   : > { %6744 = vmatprep.subr.bf16.mxu0 %v11134_v2  ;;  %v11206_v2 = vld [vmem:[#allocation15 + $0x34c] ss:$16 sps:$4 sm:$0xff]  }
 0x720   : > { %6573 = vmatpush1.bf16.msra.mxu1 %v11129_v14  ;;  %v11201_v14 = vld [vmem:[#allocation15 + $0x340] ss:$16 sps:$4 sm:$0xff]  }
 0x721   : > { %6745 = vmatpush1.bf16.msra.mxu0 %v11132_v18  ;;  %6574 = vmatprep.subr.bf16.mxu1 %v11137_v20  ;;  %v11204_v18 = vld [vmem:[#allocation15 + $0x348] ss:$16 sps:$4 sm:$0xff]   ;;  %v11209_v20 = vld [vmem:[#allocation15 + $0x364] ss:$16 sps:$4 sm:$0xff]  }
 0x722   : > { %6746 = vmatprep.subr.bf16.mxu0 %v11140_v11  ;;  %v11212_v11 = vld [vmem:[#allocation15 + $0x36c] ss:$16 sps:$4 sm:$0xff]  }
 0x724   : > { %6575 = vmatpush1.bf16.msra.mxu1 %v11135_v4  ;;  %v11207_v4 = vld [vmem:[#allocation15 + $0x360] ss:$16 sps:$4 sm:$0xff]  }
 0x725   : > { %6747 = vmatpush1.bf16.msra.mxu0 %v11138_v7  ;;  %6587 = vmatprep.subr.bf16.mxu1 %v11143_v21  ;;  %v11210_v7 = vld [vmem:[#allocation15 + $0x368] ss:$16 sps:$4 sm:$0xff]   ;;  %v11215_v21 = vld [vmem:[#allocation15 + $0x384] ss:$16 sps:$4 sm:$0xff]  }
 0x726   : > { %6759 = vmatprep.subr.bf16.mxu0 %v11146_v3  ;;  %v11213_v3 = vld [vmem:[#allocation15 + $0x380] ss:$16 sps:$4 sm:$0xff]  }
 0x727   : > { %6577 = vmatmul.mubr.bf16.vlgmr.msra.gmra.mrb[20].mxu1 %v2982_v24 }
 0x728   : > { %6749 = vmatmul.mubr.bf16.vlgmr.msra.gmra.mrb[20].mxu0 %v2982_v24  ;;  %6588 = vmatpush1.bf16.msra.mxu1 %v11141_v23  ;;  %v11216_v23 = vld [vmem:[#allocation15 + $0x388] ss:$16 sps:$4 sm:$0xff]   ;;  %v11219_v24 = vld [vmem:[#allocation15 + $0x3a0] ss:$16 sps:$4 sm:$0xff]  }
 0x729   : > { %6619 = vmatprep.mubr.bf16.mxu1 %v2985_v5  ;;  %6760 = vmatpush1.bf16.msra.mxu0 %v11144_v57  ;;  %v11222_v57 = vld [vmem:[#allocation15 + $0x3a8] ss:$16 sps:$4 sm:$0xff]  }
 0x72a   : > { %6791 = vmatprep.mubr.bf16.mxu0 %v2985_v5  ;;  %6589 = vmatprep.subr.bf16.mxu1 %v11149_v52  ;;  %v11227_v52 = vld [vmem:[#allocation15 + $0x3c4] ss:$16 sps:$4 sm:$0xff]   ;;  %v11225_v5 = vld [vmem:[#allocation15 + $0x3c0] ss:$16 sps:$4 sm:$0xff]  }
 0x72b   : > { %6761 = vmatprep.subr.bf16.mxu0 %v11152_v51  ;;  %v11228_v51 = vld [vmem:[#allocation15 + $0x3c8] ss:$16 sps:$4 sm:$0xff]  }
 0x72c   : > { %6590 = vmatpush1.bf16.msra.mxu1 %v11147_v60  ;;  %v11233_v60 = vld [vmem:[#allocation15 + $0x3e4] ss:$16 sps:$4 sm:$0xff]  }
 0x72d   : > { %6762 = vmatpush1.bf16.msra.mxu0 %v11150_v32  ;;  %6591 = vmatprep.subr.bf16.mxu1 %v11155_v53  ;;  %v11236_v32 = vld [vmem:[#allocation15 + $0x3ec] ss:$16 sps:$4 sm:$0xff]   ;;  %v11231_v53 = vld [vmem:[#allocation15 + $0x3e0] ss:$16 sps:$4 sm:$0xff]  }
 0x72e   : > { %6763 = vmatprep.subr.bf16.mxu0 %v11158_v6  ;;  %v11234_v6 = vld [vmem:[#allocation15 + $0x3e8] ss:$16 sps:$4 sm:$0xff]  }
 0x730   : > { %6592 = vmatpush1.bf16.msra.mxu1 %v11153_v63  ;;  %v11239_v63 = vld [vmem:[#allocation15 + $0x404] ss:$16 sps:$4 sm:$0xff]  }
 0x731   : > { %6764 = vmatpush1.bf16.msra.mxu0 %v11156_v1  ;;  %6593 = vmatprep.subr.bf16.mxu1 %v11161_v10  ;;  %v2968_v1 = vld [vmem:[#allocation3 + $0x10] sm:$0xff] }
 0x732   : > { %6765 = vmatprep.subr.bf16.mxu0 %v11164_v40  ;;  %v11242_v10 = vld [vmem:[#allocation15 + $0x40c] ss:$16 sps:$4 sm:$0xff]   ;;  %v11237_v40 = vld [vmem:[#allocation15 + $0x400] ss:$16 sps:$4 sm:$0xff]  }
 0x734   : > { %6594 = vmatpush1.bf16.msra.mxu1 %v11159_v49  ;;  %v2971_v49 = vld [vmem:[#allocation3 + $0x28] sm:$0xff] }
 0x735   : > { %6766 = vmatpush1.bf16.msra.mxu0 %v11162_v58  ;;  %6595 = vmatprep.subr.bf16.mxu1 %v11167_v15  ;;  %v11854_v58 = vld [vmem:[#allocation3 + $0x50] sm:$0xff] }
 0x736   : > { %6767 = vmatprep.subr.bf16.mxu0 %v11170_v29  ;;  %v2984_v15 = vpack.c.bf16 %v11854_v58, %v2968_v1  ;;  %v11240_v29 = vld [vmem:[#allocation15 + $0x408] ss:$16 sps:$4 sm:$0xff]   ;;  %v11314_v1 = vld [vmem:[#allocation15 + $0x58c] ss:$16 sps:$4 sm:$0xff]  }
 0x737   : > { %v11320_v58 = vld [vmem:[#allocation15 + $0x5ac] ss:$16 sps:$4 sm:$0xff]  }
 0x738   : > { %6596 = vmatpush1.bf16.msra.mxu1 %v11165_v37  ;;  %v11245_v37 = vld [vmem:[#allocation15 + $0x424] ss:$16 sps:$4 sm:$0xff]  }
 0x739   : > { %6768 = vmatpush1.bf16.msra.mxu0 %v11168_v50  ;;  %6597 = vmatprep.subr.bf16.mxu1 %v11173_v42  ;;  %v11855_v50 = vld [vmem:[#allocation3 + $0x68] sm:$0xff] }
 0x73a   : > { %6769 = vmatprep.subr.bf16.mxu0 %v11176_v61  ;;  %v2987_v42 = vpack.c.bf16 %v11855_v50, %v2971_v49  ;;  %v11248_v61 = vld [vmem:[#allocation15 + $0x42c] ss:$16 sps:$4 sm:$0xff]   ;;  %v11317_v49 = vld [vmem:[#allocation15 + $0x5a4] ss:$16 sps:$4 sm:$0xff]  }
 0x73b   : > { %v11326_v50 = vld [vmem:[#allocation15 + $0x5cc] ss:$16 sps:$4 sm:$0xff]  }
 0x73c   : > { %6598 = vmatpush1.bf16.msra.mxu1 %v11171_v48  ;;  %v11243_v48 = vld [vmem:[#allocation15 + $0x420] ss:$16 sps:$4 sm:$0xff]  }
 0x73d   : > { %6770 = vmatpush1.bf16.msra.mxu0 %v11174_v12  ;;  %6599 = vmatprep.subr.bf16.mxu1 %v11179_v46  ;;  %v11246_v12 = vld [vmem:[#allocation15 + $0x428] ss:$16 sps:$4 sm:$0xff]   ;;  %v11251_v46 = vld [vmem:[#allocation15 + $0x444] ss:$16 sps:$4 sm:$0xff]  }
 0x73e   : > { %6771 = vmatprep.subr.bf16.mxu0 %v11182_v54  ;;  %v11254_v54 = vld [vmem:[#allocation15 + $0x44c] ss:$16 sps:$4 sm:$0xff]  }
 0x740   : > { %6600 = vmatpush1.bf16.msra.mxu1 %v11177_v56  ;;  %v11249_v56 = vld [vmem:[#allocation15 + $0x440] ss:$16 sps:$4 sm:$0xff]  }
 0x741   : > { %6772 = vmatpush1.bf16.msra.mxu0 %v11180_v30  ;;  %6601 = vmatprep.subr.bf16.mxu1 %v11185_v62  ;;  %v11252_v30 = vld [vmem:[#allocation15 + $0x448] ss:$16 sps:$4 sm:$0xff]   ;;  %v11257_v62 = vld [vmem:[#allocation15 + $0x464] ss:$16 sps:$4 sm:$0xff]  }
 0x742   : > { %6773 = vmatprep.subr.bf16.mxu0 %v11188_v45  ;;  %v11260_v45 = vld [vmem:[#allocation15 + $0x46c] ss:$16 sps:$4 sm:$0xff]  }
 0x744   : > { %6602 = vmatpush1.bf16.msra.mxu1 %v11183_v26  ;;  %v11255_v26 = vld [vmem:[#allocation15 + $0x460] ss:$16 sps:$4 sm:$0xff]  }
 0x745   : > { %6774 = vmatpush1.bf16.msra.mxu0 %v11186_v35  ;;  %6603 = vmatprep.subr.bf16.mxu1 %v11191_v36  ;;  %v11258_v35 = vld [vmem:[#allocation15 + $0x468] ss:$16 sps:$4 sm:$0xff]   ;;  %v11263_v36 = vld [vmem:[#allocation15 + $0x484] ss:$16 sps:$4 sm:$0xff]  }
 0x746   : > { %6775 = vmatprep.subr.bf16.mxu0 %v11194_v28  ;;  %v11266_v28 = vld [vmem:[#allocation15 + $0x48c] ss:$16 sps:$4 sm:$0xff]  }
 0x748   : > { %6604 = vmatpush1.bf16.msra.mxu1 %v11189_v47  ;;  %v11261_v47 = vld [vmem:[#allocation15 + $0x480] ss:$16 sps:$4 sm:$0xff]  }
 0x749   : > { %6776 = vmatpush1.bf16.msra.mxu0 %v11192_v59  ;;  %6605 = vmatprep.subr.bf16.mxu1 %v11197_v0  ;;  %v11264_v59 = vld [vmem:[#allocation15 + $0x488] ss:$16 sps:$4 sm:$0xff]   ;;  %v11269_v0 = vld [vmem:[#allocation15 + $0x4a4] ss:$16 sps:$4 sm:$0xff]  }
 0x74a   : > { %6777 = vmatprep.subr.bf16.mxu0 %v11200_v27  ;;  %v11272_v27 = vld [vmem:[#allocation15 + $0x4ac] ss:$16 sps:$4 sm:$0xff]  }
 0x74c   : > { %6606 = vmatpush1.bf16.msra.mxu1 %v11195_v17  ;;  %v11267_v17 = vld [vmem:[#allocation15 + $0x4a0] ss:$16 sps:$4 sm:$0xff]  }
 0x74d   : > { %6778 = vmatpush1.bf16.msra.mxu0 %v11198_v19  ;;  %6607 = vmatprep.subr.bf16.mxu1 %v11203_v55  ;;  %v11270_v19 = vld [vmem:[#allocation15 + $0x4a8] ss:$16 sps:$4 sm:$0xff]   ;;  %v11275_v55 = vld [vmem:[#allocation15 + $0x4c4] ss:$16 sps:$4 sm:$0xff]  }
 0x74e   : > { %6779 = vmatprep.subr.bf16.mxu0 %v11206_v2  ;;  %v11278_v2 = vld [vmem:[#allocation15 + $0x4cc] ss:$16 sps:$4 sm:$0xff]  }
 0x750   : > { %6608 = vmatpush1.bf16.msra.mxu1 %v11201_v14  ;;  %v11273_v14 = vld [vmem:[#allocation15 + $0x4c0] ss:$16 sps:$4 sm:$0xff]  }
 0x751   : > { %6780 = vmatpush1.bf16.msra.mxu0 %v11204_v18  ;;  %6609 = vmatprep.subr.bf16.mxu1 %v11209_v20  ;;  %v11276_v18 = vld [vmem:[#allocation15 + $0x4c8] ss:$16 sps:$4 sm:$0xff]   ;;  %v11281_v20 = vld [vmem:[#allocation15 + $0x4e4] ss:$16 sps:$4 sm:$0xff]  }
 0x752   : > { %6781 = vmatprep.subr.bf16.mxu0 %v11212_v11  ;;  %v11284_v11 = vld [vmem:[#allocation15 + $0x4ec] ss:$16 sps:$4 sm:$0xff]  }
 0x754   : > { %6610 = vmatpush1.bf16.msra.mxu1 %v11207_v4  ;;  %v11279_v4 = vld [vmem:[#allocation15 + $0x4e0] ss:$16 sps:$4 sm:$0xff]  }
 0x755   : > { %6782 = vmatpush1.bf16.msra.mxu0 %v11210_v7  ;;  %6611 = vmatprep.subr.bf16.mxu1 %v11215_v21  ;;  %v11282_v7 = vld [vmem:[#allocation15 + $0x4e8] ss:$16 sps:$4 sm:$0xff]   ;;  %v11287_v21 = vld [vmem:[#allocation15 + $0x504] ss:$16 sps:$4 sm:$0xff]  }
 0x756   : > { %6783 = vmatprep.subr.bf16.mxu0 %v11218_v34  ;;  %v11290_v34 = vld [vmem:[#allocation15 + $0x50c] ss:$16 sps:$4 sm:$0xff]  }
 0x758   : > { %6612 = vmatpush1.bf16.msra.mxu1 %v11213_v3  ;;  %v11285_v3 = vld [vmem:[#allocation15 + $0x500] ss:$16 sps:$4 sm:$0xff]  }
 0x759   : > { %6784 = vmatpush1.bf16.msra.mxu0 %v11216_v23  ;;  %6613 = vmatprep.subr.bf16.mxu1 %v11221_v39  ;;  %v11288_v23 = vld [vmem:[#allocation15 + $0x508] ss:$16 sps:$4 sm:$0xff]   ;;  %v11293_v39 = vld [vmem:[#allocation15 + $0x524] ss:$16 sps:$4 sm:$0xff]  }
 0x75a   : > { %6785 = vmatprep.subr.bf16.mxu0 %v11224_v16  ;;  %v11296_v16 = vld [vmem:[#allocation15 + $0x52c] ss:$16 sps:$4 sm:$0xff]  }
 0x75c   : > { %6614 = vmatpush1.bf16.msra.mxu1 %v11219_v24  ;;  %v11291_v24 = vld [vmem:[#allocation15 + $0x520] ss:$16 sps:$4 sm:$0xff]  }
 0x75d   : > { %6786 = vmatpush1.bf16.msra.mxu0 %v11222_v57  ;;  %6615 = vmatprep.subr.bf16.mxu1 %v11227_v52  ;;  %v11294_v57 = vld [vmem:[#allocation15 + $0x528] ss:$16 sps:$4 sm:$0xff]   ;;  %v11299_v52 = vld [vmem:[#allocation15 + $0x544] ss:$16 sps:$4 sm:$0xff]  }
 0x75e   : > { %6787 = vmatprep.subr.bf16.mxu0 %v11230_v31  ;;  %v11302_v31 = vld [vmem:[#allocation15 + $0x54c] ss:$16 sps:$4 sm:$0xff]  }
 0x760   : > { %6616 = vmatpush1.bf16.msra.mxu1 %v11225_v5  ;;  %v11297_v5 = vld [vmem:[#allocation15 + $0x540] ss:$16 sps:$4 sm:$0xff]  }
 0x761   : > { %6788 = vmatpush1.bf16.msra.mxu0 %v11228_v51  ;;  %6617 = vmatprep.subr.bf16.mxu1 %v11233_v60  ;;  %v11300_v51 = vld [vmem:[#allocation15 + $0x548] ss:$16 sps:$4 sm:$0xff]   ;;  %v11305_v60 = vld [vmem:[#allocation15 + $0x564] ss:$16 sps:$4 sm:$0xff]  }
 0x762   : > { %6789 = vmatprep.subr.bf16.mxu0 %v11236_v32  ;;  %v11308_v32 = vld [vmem:[#allocation15 + $0x56c] ss:$16 sps:$4 sm:$0xff]  }
 0x764   : > { %6618 = vmatpush1.bf16.msra.mxu1 %v11231_v53  ;;  %v11303_v53 = vld [vmem:[#allocation15 + $0x560] ss:$16 sps:$4 sm:$0xff]  }
 0x765   : > { %6790 = vmatpush1.bf16.msra.mxu0 %v11234_v6  ;;  %6630 = vmatprep.subr.bf16.mxu1 %v11239_v63  ;;  %v11306_v6 = vld [vmem:[#allocation15 + $0x568] ss:$16 sps:$4 sm:$0xff]   ;;  %v11311_v63 = vld [vmem:[#allocation15 + $0x584] ss:$16 sps:$4 sm:$0xff]  }
 0x766   : > { %6802 = vmatprep.subr.bf16.mxu0 %v11242_v10  ;;  %v11309_v10 = vld [vmem:[#allocation15 + $0x580] ss:$16 sps:$4 sm:$0xff]  }
 0x767   : > { %6620 = vmatmul.mubr.bf16.vlgmr.msra.gmra.mrb[20].mxu1 %v2984_v15 }
 0x768   : > { %6792 = vmatmul.mubr.bf16.vlgmr.msra.gmra.mrb[20].mxu0 %v2984_v15  ;;  %6631 = vmatpush1.bf16.msra.mxu1 %v11237_v40  ;;  %v11312_v40 = vld [vmem:[#allocation15 + $0x588] ss:$16 sps:$4 sm:$0xff]   ;;  %v11315_v15 = vld [vmem:[#allocation15 + $0x5a0] ss:$16 sps:$4 sm:$0xff]  }
 0x769   : > { %6662 = vmatprep.mubr.bf16.mxu1 %v2987_v42  ;;  %6803 = vmatpush1.bf16.msra.mxu0 %v11240_v29  ;;  %v11318_v29 = vld [vmem:[#allocation15 + $0x5a8] ss:$16 sps:$4 sm:$0xff]  }
 0x76a   : > { %6834 = vmatprep.mubr.bf16.mxu0 %v2987_v42  ;;  %6632 = vmatprep.subr.bf16.mxu1 %v11245_v37  ;;  %v11323_v37 = vld [vmem:[#allocation15 + $0x5c4] ss:$16 sps:$4 sm:$0xff]   ;;  %v11321_v42 = vld [vmem:[#allocation15 + $0x5c0] ss:$16 sps:$4 sm:$0xff]  }
 0x76b   : > { %6804 = vmatprep.subr.bf16.mxu0 %v11248_v61  ;;  %v11324_v61 = vld [vmem:[#allocation15 + $0x5c8] ss:$16 sps:$4 sm:$0xff]  }
 0x76c   : > { %6633 = vmatpush1.bf16.msra.mxu1 %v11243_v48  ;;  %v11329_v48 = vld [vmem:[#allocation15 + $0x5e4] ss:$16 sps:$4 sm:$0xff]  }
 0x76d   : > { %6805 = vmatpush1.bf16.msra.mxu0 %v11246_v12  ;;  %6634 = vmatprep.subr.bf16.mxu1 %v11251_v46  ;;  %v11332_v12 = vld [vmem:[#allocation15 + $0x5ec] ss:$16 sps:$4 sm:$0xff]   ;;  %v11327_v46 = vld [vmem:[#allocation15 + $0x5e0] ss:$16 sps:$4 sm:$0xff]  }
 0x76e   : > { %6806 = vmatprep.subr.bf16.mxu0 %v11254_v54  ;;  %v11330_v54 = vld [vmem:[#allocation15 + $0x5e8] ss:$16 sps:$4 sm:$0xff]  }
 0x770   : > { %6635 = vmatpush1.bf16.msra.mxu1 %v11249_v56  ;;  %v11335_v56 = vld [vmem:[#allocation15 + $0x604] ss:$16 sps:$4 sm:$0xff]  }
 0x771   : > { %6807 = vmatpush1.bf16.msra.mxu0 %v11252_v30  ;;  %6636 = vmatprep.subr.bf16.mxu1 %v11257_v62  ;;  %v2970_v30 = vld [vmem:[#allocation3 + $0x20] sm:$0xff] }
 0x772   : > { %6808 = vmatprep.subr.bf16.mxu0 %v11260_v45  ;;  %v11338_v62 = vld [vmem:[#allocation15 + $0x60c] ss:$16 sps:$4 sm:$0xff]   ;;  %v11333_v45 = vld [vmem:[#allocation15 + $0x600] ss:$16 sps:$4 sm:$0xff]  }
 0x774   : > { %6637 = vmatpush1.bf16.msra.mxu1 %v11255_v26  ;;  %v2973_v26 = vld [vmem:[#allocation3 + $0x38] sm:$0xff] }
 0x775   : > { %6809 = vmatpush1.bf16.msra.mxu0 %v11258_v35  ;;  %6638 = vmatprep.subr.bf16.mxu1 %v11263_v36  ;;  %v11856_v35 = vld [vmem:[#allocation3 + $0x60] sm:$0xff] }
 0x776   : > { %6810 = vmatprep.subr.bf16.mxu0 %v11266_v28  ;;  %v2986_v36 = vpack.c.bf16 %v11856_v35, %v2970_v30  ;;  %v11336_v28 = vld [vmem:[#allocation15 + $0x608] ss:$16 sps:$4 sm:$0xff]   ;;  %v11410_v30 = vld [vmem:[#allocation15 + $0x78c] ss:$16 sps:$4 sm:$0xff]  }
 0x777   : > { %v11416_v35 = vld [vmem:[#allocation15 + $0x7ac] ss:$16 sps:$4 sm:$0xff]  }
 0x778   : > { %6639 = vmatpush1.bf16.msra.mxu1 %v11261_v47  ;;  %v11341_v47 = vld [vmem:[#allocation15 + $0x624] ss:$16 sps:$4 sm:$0xff]  }
 0x779   : > { %6811 = vmatpush1.bf16.msra.mxu0 %v11264_v59  ;;  %6640 = vmatprep.subr.bf16.mxu1 %v11269_v0  ;;  %v11857_v59 = vld [vmem:[#allocation3 + $0x78] sm:$0xff] }
 0x77a   : > { %6812 = vmatprep.subr.bf16.mxu0 %v11272_v27  ;;  %v2989_v0 = vpack.c.bf16 %v11857_v59, %v2973_v26  ;;  %v11344_v27 = vld [vmem:[#allocation15 + $0x62c] ss:$16 sps:$4 sm:$0xff]   ;;  %v11413_v26 = vld [vmem:[#allocation15 + $0x7a4] ss:$16 sps:$4 sm:$0xff]  }
 0x77b   : > { %v11422_v59 = vld [vmem:[#allocation15 + $0x7cc] ss:$16 sps:$4 sm:$0xff]  }
 0x77c   : > { %6641 = vmatpush1.bf16.msra.mxu1 %v11267_v17  ;;  %v11339_v17 = vld [vmem:[#allocation15 + $0x620] ss:$16 sps:$4 sm:$0xff]  }
 0x77d   : > { %6813 = vmatpush1.bf16.msra.mxu0 %v11270_v19  ;;  %6642 = vmatprep.subr.bf16.mxu1 %v11275_v55  ;;  %v11342_v19 = vld [vmem:[#allocation15 + $0x628] ss:$16 sps:$4 sm:$0xff]   ;;  %v11347_v55 = vld [vmem:[#allocation15 + $0x644] ss:$16 sps:$4 sm:$0xff]  }
 0x77e   : > { %6814 = vmatprep.subr.bf16.mxu0 %v11278_v2  ;;  %v11350_v2 = vld [vmem:[#allocation15 + $0x64c] ss:$16 sps:$4 sm:$0xff]  }
 0x780   : > { %6643 = vmatpush1.bf16.msra.mxu1 %v11273_v14  ;;  %v11345_v14 = vld [vmem:[#allocation15 + $0x640] ss:$16 sps:$4 sm:$0xff]  }
 0x781   : > { %6815 = vmatpush1.bf16.msra.mxu0 %v11276_v18  ;;  %6644 = vmatprep.subr.bf16.mxu1 %v11281_v20  ;;  %v11348_v18 = vld [vmem:[#allocation15 + $0x648] ss:$16 sps:$4 sm:$0xff]   ;;  %v11353_v20 = vld [vmem:[#allocation15 + $0x664] ss:$16 sps:$4 sm:$0xff]  }
 0x782   : > { %6816 = vmatprep.subr.bf16.mxu0 %v11284_v11  ;;  %v11356_v11 = vld [vmem:[#allocation15 + $0x66c] ss:$16 sps:$4 sm:$0xff]  }
 0x784   : > { %6645 = vmatpush1.bf16.msra.mxu1 %v11279_v4  ;;  %v11351_v4 = vld [vmem:[#allocation15 + $0x660] ss:$16 sps:$4 sm:$0xff]  }
 0x785   : > { %6817 = vmatpush1.bf16.msra.mxu0 %v11282_v7  ;;  %6646 = vmatprep.subr.bf16.mxu1 %v11287_v21  ;;  %v11354_v7 = vld [vmem:[#allocation15 + $0x668] ss:$16 sps:$4 sm:$0xff]   ;;  %v11359_v21 = vld [vmem:[#allocation15 + $0x684] ss:$16 sps:$4 sm:$0xff]  }
 0x786   : > { %6818 = vmatprep.subr.bf16.mxu0 %v11290_v34  ;;  %v11362_v34 = vld [vmem:[#allocation15 + $0x68c] ss:$16 sps:$4 sm:$0xff]  }
 0x788   : > { %6647 = vmatpush1.bf16.msra.mxu1 %v11285_v3  ;;  %v11357_v3 = vld [vmem:[#allocation15 + $0x680] ss:$16 sps:$4 sm:$0xff]  }
 0x789   : > { %6819 = vmatpush1.bf16.msra.mxu0 %v11288_v23  ;;  %6648 = vmatprep.subr.bf16.mxu1 %v11293_v39  ;;  %v11360_v23 = vld [vmem:[#allocation15 + $0x688] ss:$16 sps:$4 sm:$0xff]   ;;  %v11365_v39 = vld [vmem:[#allocation15 + $0x6a4] ss:$16 sps:$4 sm:$0xff]  }
 0x78a   : > { %6820 = vmatprep.subr.bf16.mxu0 %v11296_v16  ;;  %v11368_v16 = vld [vmem:[#allocation15 + $0x6ac] ss:$16 sps:$4 sm:$0xff]  }
 0x78c   : > { %6649 = vmatpush1.bf16.msra.mxu1 %v11291_v24  ;;  %v11363_v24 = vld [vmem:[#allocation15 + $0x6a0] ss:$16 sps:$4 sm:$0xff]  }
 0x78d   : > { %6821 = vmatpush1.bf16.msra.mxu0 %v11294_v57  ;;  %6650 = vmatprep.subr.bf16.mxu1 %v11299_v52  ;;  %v11366_v57 = vld [vmem:[#allocation15 + $0x6a8] ss:$16 sps:$4 sm:$0xff]   ;;  %v11371_v52 = vld [vmem:[#allocation15 + $0x6c4] ss:$16 sps:$4 sm:$0xff]  }
 0x78e   : > { %6822 = vmatprep.subr.bf16.mxu0 %v11302_v31  ;;  %v11374_v31 = vld [vmem:[#allocation15 + $0x6cc] ss:$16 sps:$4 sm:$0xff]  }
 0x790   : > { %6651 = vmatpush1.bf16.msra.mxu1 %v11297_v5  ;;  %v11369_v5 = vld [vmem:[#allocation15 + $0x6c0] ss:$16 sps:$4 sm:$0xff]  }
 0x791   : > { %6823 = vmatpush1.bf16.msra.mxu0 %v11300_v51  ;;  %6652 = vmatprep.subr.bf16.mxu1 %v11305_v60  ;;  %v11372_v51 = vld [vmem:[#allocation15 + $0x6c8] ss:$16 sps:$4 sm:$0xff]   ;;  %v11377_v60 = vld [vmem:[#allocation15 + $0x6e4] ss:$16 sps:$4 sm:$0xff]  }
 0x792   : > { %6824 = vmatprep.subr.bf16.mxu0 %v11308_v32  ;;  %v11380_v32 = vld [vmem:[#allocation15 + $0x6ec] ss:$16 sps:$4 sm:$0xff]  }
 0x794   : > { %6653 = vmatpush1.bf16.msra.mxu1 %v11303_v53  ;;  %v11375_v53 = vld [vmem:[#allocation15 + $0x6e0] ss:$16 sps:$4 sm:$0xff]  }
 0x795   : > { %6825 = vmatpush1.bf16.msra.mxu0 %v11306_v6  ;;  %6654 = vmatprep.subr.bf16.mxu1 %v11311_v63  ;;  %v11378_v6 = vld [vmem:[#allocation15 + $0x6e8] ss:$16 sps:$4 sm:$0xff]   ;;  %v11383_v63 = vld [vmem:[#allocation15 + $0x704] ss:$16 sps:$4 sm:$0xff]  }
 0x796   : > { %6826 = vmatprep.subr.bf16.mxu0 %v11314_v1  ;;  %v11386_v1 = vld [vmem:[#allocation15 + $0x70c] ss:$16 sps:$4 sm:$0xff]  }
 0x798   : > { %6655 = vmatpush1.bf16.msra.mxu1 %v11309_v10  ;;  %v11381_v10 = vld [vmem:[#allocation15 + $0x700] ss:$16 sps:$4 sm:$0xff]  }
 0x799   : > { %6827 = vmatpush1.bf16.msra.mxu0 %v11312_v40  ;;  %6656 = vmatprep.subr.bf16.mxu1 %v11317_v49  ;;  %v11384_v40 = vld [vmem:[#allocation15 + $0x708] ss:$16 sps:$4 sm:$0xff]   ;;  %v11389_v49 = vld [vmem:[#allocation15 + $0x724] ss:$16 sps:$4 sm:$0xff]  }
 0x79a   : > { %6828 = vmatprep.subr.bf16.mxu0 %v11320_v58  ;;  %v11392_v58 = vld [vmem:[#allocation15 + $0x72c] ss:$16 sps:$4 sm:$0xff]  }
 0x79c   : > { %6657 = vmatpush1.bf16.msra.mxu1 %v11315_v15  ;;  %v11387_v15 = vld [vmem:[#allocation15 + $0x720] ss:$16 sps:$4 sm:$0xff]  }
 0x79d   : > { %6829 = vmatpush1.bf16.msra.mxu0 %v11318_v29  ;;  %6658 = vmatprep.subr.bf16.mxu1 %v11323_v37  ;;  %v11390_v29 = vld [vmem:[#allocation15 + $0x728] ss:$16 sps:$4 sm:$0xff]   ;;  %v11395_v37 = vld [vmem:[#allocation15 + $0x744] ss:$16 sps:$4 sm:$0xff]  }
 0x79e   : > { %6830 = vmatprep.subr.bf16.mxu0 %v11326_v50  ;;  %v11398_v50 = vld [vmem:[#allocation15 + $0x74c] ss:$16 sps:$4 sm:$0xff]  }
 0x7a0   : > { %6659 = vmatpush1.bf16.msra.mxu1 %v11321_v42  ;;  %v11393_v42 = vld [vmem:[#allocation15 + $0x740] ss:$16 sps:$4 sm:$0xff]  }
 0x7a1   : > { %6831 = vmatpush1.bf16.msra.mxu0 %v11324_v61  ;;  %6660 = vmatprep.subr.bf16.mxu1 %v11329_v48  ;;  %v11396_v61 = vld [vmem:[#allocation15 + $0x748] ss:$16 sps:$4 sm:$0xff]   ;;  %v11401_v48 = vld [vmem:[#allocation15 + $0x764] ss:$16 sps:$4 sm:$0xff]  }
 0x7a2   : > { %6832 = vmatprep.subr.bf16.mxu0 %v11332_v12  ;;  %v11404_v12 = vld [vmem:[#allocation15 + $0x76c] ss:$16 sps:$4 sm:$0xff]  }
 0x7a4   : > { %6661 = vmatpush1.bf16.msra.mxu1 %v11327_v46  ;;  %v11399_v46 = vld [vmem:[#allocation15 + $0x760] ss:$16 sps:$4 sm:$0xff]  }
 0x7a5   : > { %6833 = vmatpush1.bf16.msra.mxu0 %v11330_v54  ;;  %6673 = vmatprep.subr.bf16.mxu1 %v11335_v56  ;;  %v11402_v54 = vld [vmem:[#allocation15 + $0x768] ss:$16 sps:$4 sm:$0xff]   ;;  %v11407_v56 = vld [vmem:[#allocation15 + $0x784] ss:$16 sps:$4 sm:$0xff]  }
 0x7a6   : > { %6845 = vmatprep.subr.bf16.mxu0 %v11338_v62  ;;  %v11405_v62 = vld [vmem:[#allocation15 + $0x780] ss:$16 sps:$4 sm:$0xff]  }
 0x7a7   : > { %6663 = vmatmul.mubr.bf16.vlgmr.msra.gmra.mrb[20].mxu1 %v2986_v36 }
 0x7a8   : > { %6835 = vmatmul.mubr.bf16.vlgmr.msra.gmra.mrb[20].mxu0 %v2986_v36  ;;  %6674 = vmatpush1.bf16.msra.mxu1 %v11333_v45  ;;  %v11408_v45 = vld [vmem:[#allocation15 + $0x788] ss:$16 sps:$4 sm:$0xff]   ;;  %v11411_v36 = vld [vmem:[#allocation15 + $0x7a0] ss:$16 sps:$4 sm:$0xff]  }
 0x7a9   : > { %6705 = vmatprep.mubr.bf16.mxu1 %v2989_v0  ;;  %6846 = vmatpush1.bf16.msra.mxu0 %v11336_v28  ;;  %v11414_v28 = vld [vmem:[#allocation15 + $0x7a8] ss:$16 sps:$4 sm:$0xff]  }
 0x7aa   : > { %6877 = vmatprep.mubr.bf16.mxu0 %v2989_v0  ;;  %6675 = vmatprep.subr.bf16.mxu1 %v11341_v47  ;;  %v11419_v47 = vld [vmem:[#allocation15 + $0x7c4] ss:$16 sps:$4 sm:$0xff]   ;;  %v11417_v0 = vld [vmem:[#allocation15 + $0x7c0] ss:$16 sps:$4 sm:$0xff]  }
 0x7ab   : > { %6847 = vmatprep.subr.bf16.mxu0 %v11344_v27  ;;  %v6889_v27 = vld [vmem:[#allocation3 + $0x8] sm:$0xfc] }
 0x7ac   : > { %6676 = vmatpush1.bf16.msra.mxu1 %v11339_v17  ;;  %v11420_v17 = vld [vmem:[#allocation15 + $0x7c8] ss:$16 sps:$4 sm:$0xff]  }
 0x7ad   : > { %6848 = vmatpush1.bf16.msra.mxu0 %v11342_v19  ;;  %6677 = vmatprep.subr.bf16.mxu1 %v11347_v55  ;;  %v11425_v19 = vld [vmem:[#allocation15 + $0x7e4] ss:$16 sps:$4 sm:$0xff]  }
 0x7ae   : > { %6849 = vmatprep.subr.bf16.mxu0 %v11350_v2  ;;  %v6897_v55 = vld [vmem:[#allocation3 + $0x88] sm:$0x3]  ;;  %v11428_v2 = vld [vmem:[#allocation15 + $0x7ec] ss:$16 sps:$4 sm:$0xff]  }
 0x7b0   : > { %6678 = vmatpush1.bf16.msra.mxu1 %v11345_v14  ;;  %v11423_v14 = vld [vmem:[#allocation15 + $0x7e0] ss:$16 sps:$4 sm:$0xff]  }
 0x7b1   : > { %6850 = vmatpush1.bf16.msra.mxu0 %v11348_v18  ;;  %6679 = vmatprep.subr.bf16.mxu1 %v11353_v20  ;;  %v11858_v18 = vld [vmem:[#allocation3 + $0x48] sm:$0xff] }
 0x7b2   : > { %6851 = vmatprep.subr.bf16.mxu0 %v11356_v11  ;;  %v6905_v20 = vpack.c.bf16 %v11858_v18, %v6889_v27  ;;  %v6913_v11 = vpack.c.bf16 %v6897_v55, %v6897_v55  ;;  %v11483_v27 = vld [vmem:[#allocation15 + $0x1120] ss:$16 sps:$4 sm:$0xff]   ;;  %v11494_v55 = vld [vmem:[#allocation15 + $0x114c] ss:$16 sps:$4 sm:$0xff]   ;;  %v11497_v18 = vld [vmem:[#allocation15 + $0x1164] ss:$16 sps:$4 sm:$0xff]  }
 0x7b4   : > { %6680 = vmatpush1.bf16.msra.mxu1 %v11351_v4  ;;  %v11426_v4 = vld [vmem:[#allocation15 + $0x7e8] ss:$16 sps:$4 sm:$0xff]  }
 0x7b5   : > { %6852 = vmatpush1.bf16.msra.mxu0 %v11354_v7  ;;  %6681 = vmatprep.subr.bf16.mxu1 %v11359_v21  ;;  %v11431_v7 = vld [vmem:[#allocation15 + $0x1004] ss:$16 sps:$4 sm:$0xff]   ;;  %v2972_v21 = vld [vmem:[#allocation3 + $0x30] sm:$0xff] }
 0x7b6   : > { %6853 = vmatprep.subr.bf16.mxu0 %v11362_v34  ;;  %v11434_v34 = vld [vmem:[#allocation15 + $0x100c] ss:$16 sps:$4 sm:$0xff]  }
 0x7b8   : > { %6682 = vmatpush1.bf16.msra.mxu1 %v11357_v3  ;;  %v11429_v3 = vld [vmem:[#allocation15 + $0x1000] ss:$16 sps:$4 sm:$0xff]  }
 0x7b9   : > { %6854 = vmatpush1.bf16.msra.mxu0 %v11360_v23  ;;  %6683 = vmatprep.subr.bf16.mxu1 %v11365_v39  ;;  %v7197_v23 = vrot.slane %v6905_v20, 1  ;;  %v7198_v39 = vrot.slane %v6913_v11, 1  ;;  %v11500_v20 = vld [vmem:[#allocation15 + $0x116c] ss:$16 sps:$4 sm:$0xff]   ;;  %v11495_v11 = vld [vmem:[#allocation15 + $0x1160] ss:$16 sps:$4 sm:$0xff]  }
 0x7ba   : > { %6855 = vmatprep.subr.bf16.mxu0 %v11368_v16  ;;  %v11859_v16 = vld [vmem:[#allocation3 + $0x70] sm:$0xff] }
 0x7bc   : > { %6684 = vmatpush1.bf16.msra.mxu1 %v11363_v24  ;;  %v2988_v24 = vpack.c.bf16 %v11859_v16, %v2972_v21  ;;  %v11506_v21 = vld [vmem:[#allocation15 + $0x118c] ss:$16 sps:$4 sm:$0xff]   ;;  %v11507_v16 = vld [vmem:[#allocation15 + $0x11a0] ss:$16 sps:$4 sm:$0xff]  }
 0x7bd   : > { %6856 = vmatpush1.bf16.msra.mxu0 %v11366_v57  ;;  %6685 = vmatprep.subr.bf16.mxu1 %v11371_v52  ;;  %v11432_v57 = vld [vmem:[#allocation15 + $0x1008] ss:$16 sps:$4 sm:$0xff]   ;;  %v11437_v52 = vld [vmem:[#allocation15 + $0x1024] ss:$16 sps:$4 sm:$0xff]  }
 0x7be   : > { %6857 = vmatprep.subr.bf16.mxu0 %v11374_v31  ;;  %v11440_v31 = vld [vmem:[#allocation15 + $0x102c] ss:$16 sps:$4 sm:$0xff]  }
 0x7c0   : > { %6686 = vmatpush1.bf16.msra.mxu1 %v11369_v5  ;;  %v7199_v5 = vsel %vm7193_vm7, %v7197_v23, %v7198_v39  ;;  %v11509_v23 = vld [vmem:[#allocation15 + $0x11a4] ss:$16 sps:$4 sm:$0xff]   ;;  %v11512_v39 = vld [vmem:[#allocation15 + $0x11ac] ss:$16 sps:$4 sm:$0xff]  }
 0x7c1   : > { %6858 = vmatpush1.bf16.msra.mxu0 %v11372_v51  ;;  %6687 = vmatprep.subr.bf16.mxu1 %v11377_v60  ;;  %v11435_v51 = vld [vmem:[#allocation15 + $0x1020] ss:$16 sps:$4 sm:$0xff]   ;;  %v11438_v60 = vld [vmem:[#allocation15 + $0x1028] ss:$16 sps:$4 sm:$0xff]  }
 0x7c2   : > { %6859 = vmatprep.subr.bf16.mxu0 %v11380_v32  ;;  %v11443_v32 = vld [vmem:[#allocation15 + $0x1044] ss:$16 sps:$4 sm:$0xff]  }
 0x7c4   : > { %6688 = vmatpush1.bf16.msra.mxu1 %v11375_v53  ;;  %v11446_v53 = vld [vmem:[#allocation15 + $0x104c] ss:$16 sps:$4 sm:$0xff]  }
 0x7c5   : > { %6860 = vmatpush1.bf16.msra.mxu0 %v11378_v6  ;;  %6689 = vmatprep.subr.bf16.mxu1 %v11383_v63  ;;  %v11441_v6 = vld [vmem:[#allocation15 + $0x1040] ss:$16 sps:$4 sm:$0xff]   ;;  %v11444_v63 = vld [vmem:[#allocation15 + $0x1048] ss:$16 sps:$4 sm:$0xff]  }
 0x7c6   : > { %6861 = vmatprep.subr.bf16.mxu0 %v11386_v1  ;;  %v11449_v1 = vld [vmem:[#allocation15 + $0x1064] ss:$16 sps:$4 sm:$0xff]  }
 0x7c8   : > { %6690 = vmatpush1.bf16.msra.mxu1 %v11381_v10  ;;  %v11452_v10 = vld [vmem:[#allocation15 + $0x106c] ss:$16 sps:$4 sm:$0xff]  }
 0x7c9   : > { %6862 = vmatpush1.bf16.msra.mxu0 %v11384_v40  ;;  %6691 = vmatprep.subr.bf16.mxu1 %v11389_v49  ;;  %v11447_v40 = vld [vmem:[#allocation15 + $0x1060] ss:$16 sps:$4 sm:$0xff]   ;;  %v11450_v49 = vld [vmem:[#allocation15 + $0x1068] ss:$16 sps:$4 sm:$0xff]  }
 0x7ca   : > { %6863 = vmatprep.subr.bf16.mxu0 %v11392_v58  ;;  %v11455_v58 = vld [vmem:[#allocation15 + $0x1084] ss:$16 sps:$4 sm:$0xff]  }
 0x7cc   : > { %6692 = vmatpush1.bf16.msra.mxu1 %v11387_v15  ;;  %v11458_v15 = vld [vmem:[#allocation15 + $0x108c] ss:$16 sps:$4 sm:$0xff]  }
 0x7cd   : > { %6864 = vmatpush1.bf16.msra.mxu0 %v11390_v29  ;;  %6693 = vmatprep.subr.bf16.mxu1 %v11395_v37  ;;  %v11453_v29 = vld [vmem:[#allocation15 + $0x1080] ss:$16 sps:$4 sm:$0xff]   ;;  %v11456_v37 = vld [vmem:[#allocation15 + $0x1088] ss:$16 sps:$4 sm:$0xff]  }
 0x7ce   : > { %6865 = vmatprep.subr.bf16.mxu0 %v11398_v50  ;;  %v11461_v50 = vld [vmem:[#allocation15 + $0x10a4] ss:$16 sps:$4 sm:$0xff]  }
 0x7d0   : > { %6694 = vmatpush1.bf16.msra.mxu1 %v11393_v42  ;;  %v11464_v42 = vld [vmem:[#allocation15 + $0x10ac] ss:$16 sps:$4 sm:$0xff]  }
 0x7d1   : > { %6866 = vmatpush1.bf16.msra.mxu0 %v11396_v61  ;;  %6695 = vmatprep.subr.bf16.mxu1 %v11401_v48  ;;  %v11459_v61 = vld [vmem:[#allocation15 + $0x10a0] ss:$16 sps:$4 sm:$0xff]   ;;  %v11462_v48 = vld [vmem:[#allocation15 + $0x10a8] ss:$16 sps:$4 sm:$0xff]  }
 0x7d2   : > { %6867 = vmatprep.subr.bf16.mxu0 %v11404_v12  ;;  %v11467_v12 = vld [vmem:[#allocation15 + $0x10c4] ss:$16 sps:$4 sm:$0xff]  }
 0x7d4   : > { %6696 = vmatpush1.bf16.msra.mxu1 %v11399_v46  ;;  %v11470_v46 = vld [vmem:[#allocation15 + $0x10cc] ss:$16 sps:$4 sm:$0xff]  }
 0x7d5   : > { %6868 = vmatpush1.bf16.msra.mxu0 %v11402_v54  ;;  %6697 = vmatprep.subr.bf16.mxu1 %v11407_v56  ;;  %v11465_v54 = vld [vmem:[#allocation15 + $0x10c0] ss:$16 sps:$4 sm:$0xff]   ;;  %v11468_v56 = vld [vmem:[#allocation15 + $0x10c8] ss:$16 sps:$4 sm:$0xff]  }
 0x7d6   : > { %6869 = vmatprep.subr.bf16.mxu0 %v11410_v30  ;;  %v11473_v30 = vld [vmem:[#allocation15 + $0x10e4] ss:$16 sps:$4 sm:$0xff]  }
 0x7d8   : > { %6698 = vmatpush1.bf16.msra.mxu1 %v11405_v62  ;;  %v11476_v62 = vld [vmem:[#allocation15 + $0x10ec] ss:$16 sps:$4 sm:$0xff]  }
 0x7d9   : > { %6870 = vmatpush1.bf16.msra.mxu0 %v11408_v45  ;;  %6699 = vmatprep.subr.bf16.mxu1 %v11413_v26  ;;  %v11471_v45 = vld [vmem:[#allocation15 + $0x10e0] ss:$16 sps:$4 sm:$0xff]   ;;  %v11474_v26 = vld [vmem:[#allocation15 + $0x10e8] ss:$16 sps:$4 sm:$0xff]  }
 0x7da   : > { %6871 = vmatprep.subr.bf16.mxu0 %v11416_v35  ;;  %v11479_v35 = vld [vmem:[#allocation15 + $0x1104] ss:$16 sps:$4 sm:$0xff]  }
 0x7dc   : > { %6700 = vmatpush1.bf16.msra.mxu1 %v11411_v36  ;;  %v11482_v36 = vld [vmem:[#allocation15 + $0x110c] ss:$16 sps:$4 sm:$0xff]  }
 0x7dd   : > { %6872 = vmatpush1.bf16.msra.mxu0 %v11414_v28  ;;  %6701 = vmatprep.subr.bf16.mxu1 %v11419_v47  ;;  %v11477_v28 = vld [vmem:[#allocation15 + $0x1100] ss:$16 sps:$4 sm:$0xff]   ;;  %v11480_v47 = vld [vmem:[#allocation15 + $0x1108] ss:$16 sps:$4 sm:$0xff]  }
 0x7de   : > { %6873 = vmatprep.subr.bf16.mxu0 %v11422_v59  ;;  %v11485_v59 = vld [vmem:[#allocation15 + $0x1124] ss:$16 sps:$4 sm:$0xff]  }
 0x7e0   : > { %6702 = vmatpush1.bf16.msra.mxu1 %v11417_v0  ;;  %v11488_v0 = vld [vmem:[#allocation15 + $0x112c] ss:$16 sps:$4 sm:$0xff]  }
 0x7e1   : > { %6874 = vmatpush1.bf16.msra.mxu0 %v11420_v17  ;;  %6703 = vmatprep.subr.bf16.mxu1 %v11425_v19  ;;  %v11486_v17 = vld [vmem:[#allocation15 + $0x1128] ss:$16 sps:$4 sm:$0xff]   ;;  %v11491_v19 = vld [vmem:[#allocation15 + $0x1144] ss:$16 sps:$4 sm:$0xff]  }
 0x7e2   : > { %6875 = vmatprep.subr.bf16.mxu0 %v11428_v2  ;;  %v11489_v2 = vld [vmem:[#allocation15 + $0x1140] ss:$16 sps:$4 sm:$0xff]  }
 0x7e4   : > { %6704 = vmatpush1.bf16.msra.mxu1 %v11423_v14  ;;  %v11492_v14 = vld [vmem:[#allocation15 + $0x1148] ss:$16 sps:$4 sm:$0xff]  }
 0x7e5   : > { %6876 = vmatpush1.bf16.msra.mxu0 %v11426_v4  ;;  %8506 = vmatprep.subr.bf16.mxu1 %v11431_v7  ;;  %v11498_v4 = vld [vmem:[#allocation15 + $0x1168] ss:$16 sps:$4 sm:$0xff]   ;;  %v11503_v7 = vld [vmem:[#allocation15 + $0x1184] ss:$16 sps:$4 sm:$0xff]  }
 0x7e6   : > { %8678 = vmatprep.subr.bf16.mxu0 %v11434_v34  ;;  %v11501_v34 = vld [vmem:[#allocation15 + $0x1180] ss:$16 sps:$4 sm:$0xff]  }
 0x7e7   : > { %6706 = vmatmul.mubr.bf16.vlgmr.msra.gmra.mrb[20].mxu1 %v2988_v24 }
 0x7e8   : > { %6878 = vmatmul.mubr.bf16.vlgmr.msra.gmra.mrb[20].mxu0 %v2988_v24  ;;  %8507 = vmatpush1.bf16.msra.mxu1 %v11429_v3  ;;  %v11504_v3 = vld [vmem:[#allocation15 + $0x1188] ss:$16 sps:$4 sm:$0xff]  }
 0x7e9   : > { %8538 = vmatprep.mubr.bf16.mxu1 %v7199_v5  ;;  %8679 = vmatpush1.bf16.msra.mxu0 %v11432_v57  ;;  %v11510_v24 = vld [vmem:[#allocation15 + $0x11a8] ss:$16 sps:$4 sm:$0xff]   ;;  %v11515_v57 = vld [vmem:[#allocation15 + $0x11c4] ss:$16 sps:$4 sm:$0xff]  }
 0x7ea   : > { %8710 = vmatprep.mubr.bf16.mxu0 %v7199_v5  ;;  %8508 = vmatprep.subr.bf16.mxu1 %v11437_v52  ;;  %v11518_v52 = vld [vmem:[#allocation15 + $0x11cc] ss:$16 sps:$4 sm:$0xff]  }
 0x7eb   : > { %8680 = vmatprep.subr.bf16.mxu0 %v11440_v31  ;;  %v6888_v31 = vld [vmem:[#allocation3] sm:$0xfc]  ;;  %v6896_v5 = vld [vmem:[#allocation3 + $0x80] sm:$0x3] }
 0x7ec   : > { %8509 = vmatpush1.bf16.msra.mxu1 %v11435_v51  ;;  %v11513_v51 = vld [vmem:[#allocation15 + $0x11c0] ss:$16 sps:$4 sm:$0xff]  }
 0x7ed   : > { %8681 = vmatpush1.bf16.msra.mxu0 %v11438_v60  ;;  %8510 = vmatprep.subr.bf16.mxu1 %v11443_v32  ;;  %v11516_v60 = vld [vmem:[#allocation15 + $0x11c8] ss:$16 sps:$4 sm:$0xff]   ;;  %v11521_v32 = vld [vmem:[#allocation15 + $0x11e4] ss:$16 sps:$4 sm:$0xff]  }
 0x7ee   : > { %8682 = vmatprep.subr.bf16.mxu0 %v11446_v53  ;;  %v11524_v53 = vld [vmem:[#allocation15 + $0x11ec] ss:$16 sps:$4 sm:$0xff]  }
 0x7f0   : > { %8511 = vmatpush1.bf16.msra.mxu1 %v11441_v6  ;;  %v11860_v6 = vld [vmem:[#allocation3 + $0x40] sm:$0xff] }
 0x7f1   : > { %8683 = vmatpush1.bf16.msra.mxu0 %v11444_v63  ;;  %8512 = vmatprep.subr.bf16.mxu1 %v11449_v1  ;;  %v6904_v63 = vpack.c.bf16 %v11860_v6, %v6888_v31  ;;  %v6912_v1 = vpack.c.bf16 %v6896_v5, %v6896_v5  ;;  %v11590_v31 = vld [vmem:[#allocation15 + $0x134c] ss:$16 sps:$4 sm:$0xff]   ;;  %v11585_v5 = vld [vmem:[#allocation15 + $0x1340] ss:$16 sps:$4 sm:$0xff]   ;;  %v11594_v6 = vld [vmem:[#allocation15 + $0x1368] ss:$16 sps:$4 sm:$0xff]  }
 0x7f2   : > { %8684 = vmatprep.subr.bf16.mxu0 %v11452_v10  ;;  %v11519_v10 = vld [vmem:[#allocation15 + $0x11e0] ss:$16 sps:$4 sm:$0xff]  }
 0x7f4   : > { %8513 = vmatpush1.bf16.msra.mxu1 %v11447_v40  ;;  %v11522_v40 = vld [vmem:[#allocation15 + $0x11e8] ss:$16 sps:$4 sm:$0xff]  }
 0x7f5   : > { %8685 = vmatpush1.bf16.msra.mxu0 %v11450_v49  ;;  %8514 = vmatprep.subr.bf16.mxu1 %v11455_v58  ;;  %v11527_v49 = vld [vmem:[#allocation15 + $0x1204] ss:$16 sps:$4 sm:$0xff]   ;;  %v7194_v58 = vrot.slane %v6904_v63, 1 }
 0x7f6   : > { %8686 = vmatprep.subr.bf16.mxu0 %v11458_v15  ;;  %v7195_v15 = vrot.slane %v6912_v1, 1  ;;  %v11599_v63 = vld [vmem:[#allocation15 + $0x1384] ss:$16 sps:$4 sm:$0xff]   ;;  %v11602_v1 = vld [vmem:[#allocation15 + $0x138c] ss:$16 sps:$4 sm:$0xff]  }
 0x7f8   : > { %8515 = vmatpush1.bf16.msra.mxu1 %v11453_v29  ;;  %v11530_v29 = vld [vmem:[#allocation15 + $0x120c] ss:$16 sps:$4 sm:$0xff]  }
 0x7f9   : > { %8687 = vmatpush1.bf16.msra.mxu0 %v11456_v37  ;;  %8516 = vmatprep.subr.bf16.mxu1 %v11461_v50  ;;  %v11525_v37 = vld [vmem:[#allocation15 + $0x1200] ss:$16 sps:$4 sm:$0xff]   ;;  %v11528_v50 = vld [vmem:[#allocation15 + $0x1208] ss:$16 sps:$4 sm:$0xff]  }
 0x7fa   : > { %8688 = vmatprep.subr.bf16.mxu0 %v11464_v42  ;;  %v7196_v42 = vsel %vm7193_vm7, %v7194_v58, %v7195_v15  ;;  %v11608_v58 = vld [vmem:[#allocation15 + $0x13ac] ss:$16 sps:$4 sm:$0xff]   ;;  %v11603_v15 = vld [vmem:[#allocation15 + $0x13a0] ss:$16 sps:$4 sm:$0xff]  }
 0x7fc   : > { %8517 = vmatpush1.bf16.msra.mxu1 %v11459_v61  ;;  %v11533_v61 = vld [vmem:[#allocation15 + $0x1224] ss:$16 sps:$4 sm:$0xff]  }
 0x7fd   : > { %8689 = vmatpush1.bf16.msra.mxu0 %v11462_v48  ;;  %8518 = vmatprep.subr.bf16.mxu1 %v11467_v12  ;;  %v11536_v48 = vld [vmem:[#allocation15 + $0x122c] ss:$16 sps:$4 sm:$0xff]   ;;  %v11531_v12 = vld [vmem:[#allocation15 + $0x1220] ss:$16 sps:$4 sm:$0xff]  }
 0x7fe   : > { %8690 = vmatprep.subr.bf16.mxu0 %v11470_v46  ;;  %v11534_v46 = vld [vmem:[#allocation15 + $0x1228] ss:$16 sps:$4 sm:$0xff]  }
 0x800   : > { %8519 = vmatpush1.bf16.msra.mxu1 %v11465_v54  ;;  %v11539_v54 = vld [vmem:[#allocation15 + $0x1244] ss:$16 sps:$4 sm:$0xff]  }
 0x801   : > { %8691 = vmatpush1.bf16.msra.mxu0 %v11468_v56  ;;  %8520 = vmatprep.subr.bf16.mxu1 %v11473_v30  ;;  %v11542_v56 = vld [vmem:[#allocation15 + $0x124c] ss:$16 sps:$4 sm:$0xff]   ;;  %v11537_v30 = vld [vmem:[#allocation15 + $0x1240] ss:$16 sps:$4 sm:$0xff]  }
 0x802   : > { %8692 = vmatprep.subr.bf16.mxu0 %v11476_v62  ;;  %v11540_v62 = vld [vmem:[#allocation15 + $0x1248] ss:$16 sps:$4 sm:$0xff]  }
 0x804   : > { %8521 = vmatpush1.bf16.msra.mxu1 %v11471_v45  ;;  %v11545_v45 = vld [vmem:[#allocation15 + $0x1264] ss:$16 sps:$4 sm:$0xff]  }
 0x805   : > { %8693 = vmatpush1.bf16.msra.mxu0 %v11474_v26  ;;  %8522 = vmatprep.subr.bf16.mxu1 %v11479_v35  ;;  %v11548_v26 = vld [vmem:[#allocation15 + $0x126c] ss:$16 sps:$4 sm:$0xff]   ;;  %v11543_v35 = vld [vmem:[#allocation15 + $0x1260] ss:$16 sps:$4 sm:$0xff]  }
 0x806   : > { %8694 = vmatprep.subr.bf16.mxu0 %v11482_v36  ;;  %v11546_v36 = vld [vmem:[#allocation15 + $0x1268] ss:$16 sps:$4 sm:$0xff]  }
 0x808   : > { %8523 = vmatpush1.bf16.msra.mxu1 %v11477_v28  ;;  %v11551_v28 = vld [vmem:[#allocation15 + $0x1284] ss:$16 sps:$4 sm:$0xff]  }
 0x809   : > { %8695 = vmatpush1.bf16.msra.mxu0 %v11480_v47  ;;  %8524 = vmatprep.subr.bf16.mxu1 %v11485_v59  ;;  %v11554_v47 = vld [vmem:[#allocation15 + $0x128c] ss:$16 sps:$4 sm:$0xff]   ;;  %v11552_v59 = vld [vmem:[#allocation15 + $0x1288] ss:$16 sps:$4 sm:$0xff]  }
 0x80a   : > { %8696 = vmatprep.subr.bf16.mxu0 %v11488_v0  ;;  %v11557_v0 = vld [vmem:[#allocation15 + $0x12a4] ss:$16 sps:$4 sm:$0xff]  }
 0x80c   : > { %8525 = vmatpush1.bf16.msra.mxu1 %v11483_v27  ;;  %v11560_v27 = vld [vmem:[#allocation15 + $0x12ac] ss:$16 sps:$4 sm:$0xff]  }
 0x80d   : > { %8697 = vmatpush1.bf16.msra.mxu0 %v11486_v17  ;;  %8526 = vmatprep.subr.bf16.mxu1 %v11491_v19  ;;  %v11555_v17 = vld [vmem:[#allocation15 + $0x12a0] ss:$16 sps:$4 sm:$0xff]   ;;  %v11558_v19 = vld [vmem:[#allocation15 + $0x12a8] ss:$16 sps:$4 sm:$0xff]  }
 0x80e   : > { %8698 = vmatprep.subr.bf16.mxu0 %v11494_v55  ;;  %v11563_v55 = vld [vmem:[#allocation15 + $0x12c4] ss:$16 sps:$4 sm:$0xff]  }
 0x810   : > { %8527 = vmatpush1.bf16.msra.mxu1 %v11489_v2  ;;  %v11566_v2 = vld [vmem:[#allocation15 + $0x12cc] ss:$16 sps:$4 sm:$0xff]  }
 0x811   : > { %8699 = vmatpush1.bf16.msra.mxu0 %v11492_v14  ;;  %8528 = vmatprep.subr.bf16.mxu1 %v11497_v18  ;;  %v11561_v14 = vld [vmem:[#allocation15 + $0x12c0] ss:$16 sps:$4 sm:$0xff]   ;;  %v11564_v18 = vld [vmem:[#allocation15 + $0x12c8] ss:$16 sps:$4 sm:$0xff]  }
 0x812   : > { %8700 = vmatprep.subr.bf16.mxu0 %v11500_v20  ;;  %v11569_v20 = vld [vmem:[#allocation15 + $0x12e4] ss:$16 sps:$4 sm:$0xff]  }
 0x814   : > { %8529 = vmatpush1.bf16.msra.mxu1 %v11495_v11  ;;  %v11572_v11 = vld [vmem:[#allocation15 + $0x12ec] ss:$16 sps:$4 sm:$0xff]  }
 0x815   : > { %8701 = vmatpush1.bf16.msra.mxu0 %v11498_v4  ;;  %8530 = vmatprep.subr.bf16.mxu1 %v11503_v7  ;;  %v11567_v4 = vld [vmem:[#allocation15 + $0x12e0] ss:$16 sps:$4 sm:$0xff]   ;;  %v11570_v7 = vld [vmem:[#allocation15 + $0x12e8] ss:$16 sps:$4 sm:$0xff]  }
 0x816   : > { %8702 = vmatprep.subr.bf16.mxu0 %v11506_v21  ;;  %v11575_v21 = vld [vmem:[#allocation15 + $0x1304] ss:$16 sps:$4 sm:$0xff]  }
 0x818   : > { %8531 = vmatpush1.bf16.msra.mxu1 %v11501_v34  ;;  %v11578_v34 = vld [vmem:[#allocation15 + $0x130c] ss:$16 sps:$4 sm:$0xff]  }
 0x819   : > { %8703 = vmatpush1.bf16.msra.mxu0 %v11504_v3  ;;  %8532 = vmatprep.subr.bf16.mxu1 %v11509_v23  ;;  %v11573_v3 = vld [vmem:[#allocation15 + $0x1300] ss:$16 sps:$4 sm:$0xff]   ;;  %v11576_v23 = vld [vmem:[#allocation15 + $0x1308] ss:$16 sps:$4 sm:$0xff]  }
 0x81a   : > { %8704 = vmatprep.subr.bf16.mxu0 %v11512_v39  ;;  %v11581_v39 = vld [vmem:[#allocation15 + $0x1324] ss:$16 sps:$4 sm:$0xff]  }
 0x81c   : > { %8533 = vmatpush1.bf16.msra.mxu1 %v11507_v16  ;;  %v11584_v16 = vld [vmem:[#allocation15 + $0x132c] ss:$16 sps:$4 sm:$0xff]  }
 0x81d   : > { %8705 = vmatpush1.bf16.msra.mxu0 %v11510_v24  ;;  %8534 = vmatprep.subr.bf16.mxu1 %v11515_v57  ;;  %v11579_v24 = vld [vmem:[#allocation15 + $0x1320] ss:$16 sps:$4 sm:$0xff]   ;;  %v11582_v57 = vld [vmem:[#allocation15 + $0x1328] ss:$16 sps:$4 sm:$0xff]  }
 0x81e   : > { %8706 = vmatprep.subr.bf16.mxu0 %v11518_v52  ;;  %v11587_v52 = vld [vmem:[#allocation15 + $0x1344] ss:$16 sps:$4 sm:$0xff]  }
 0x820   : > { %8535 = vmatpush1.bf16.msra.mxu1 %v11513_v51  ;;  %v11588_v51 = vld [vmem:[#allocation15 + $0x1348] ss:$16 sps:$4 sm:$0xff]  }
 0x821   : > { %8707 = vmatpush1.bf16.msra.mxu0 %v11516_v60  ;;  %8536 = vmatprep.subr.bf16.mxu1 %v11521_v32  ;;  %v11593_v60 = vld [vmem:[#allocation15 + $0x1364] ss:$16 sps:$4 sm:$0xff]   ;;  %v11596_v32 = vld [vmem:[#allocation15 + $0x136c] ss:$16 sps:$4 sm:$0xff]  }
 0x822   : > { %8708 = vmatprep.subr.bf16.mxu0 %v11524_v53  ;;  %v11591_v53 = vld [vmem:[#allocation15 + $0x1360] ss:$16 sps:$4 sm:$0xff]  }
 0x824   : > { %8537 = vmatpush1.bf16.msra.mxu1 %v11519_v10  ;;  %v11597_v10 = vld [vmem:[#allocation15 + $0x1380] ss:$16 sps:$4 sm:$0xff]  }
 0x825   : > { %8709 = vmatpush1.bf16.msra.mxu0 %v11522_v40  ;;  %8549 = vmatprep.subr.bf16.mxu1 %v11527_v49  ;;  %v11600_v40 = vld [vmem:[#allocation15 + $0x1388] ss:$16 sps:$4 sm:$0xff]   ;;  %v11605_v49 = vld [vmem:[#allocation15 + $0x13a4] ss:$16 sps:$4 sm:$0xff]  }
 0x826   : > { %8721 = vmatprep.subr.bf16.mxu0 %v11530_v29  ;;  %v11606_v29 = vld [vmem:[#allocation15 + $0x13a8] ss:$16 sps:$4 sm:$0xff]  }
 0x827   : > { %8539 = vmatmul.mubr.bf16.vlgmr.msra.gmra.mrb[20].mxu1 %v7196_v42 }
 0x828   : > { %8711 = vmatmul.mubr.bf16.vlgmr.msra.gmra.mrb[20].mxu0 %v7196_v42  ;;  %8550 = vmatpush1.bf16.msra.mxu1 %v11525_v37  ;;  %v11611_v37 = vld [vmem:[#allocation15 + $0x13c4] ss:$16 sps:$4 sm:$0xff]   ;;  %v11609_v42 = vld [vmem:[#allocation15 + $0x13c0] ss:$16 sps:$4 sm:$0xff]  }
 0x829   : > { %8581 = vmatprep.mubr.bf16.mxu1 %v13301_v33  ;;  %8722 = vmatpush1.bf16.msra.mxu0 %v11528_v50  ;;  %v11614_v50 = vld [vmem:[#allocation15 + $0x13cc] ss:$16 sps:$4 sm:$0xff]  }
 0x82a   : > { %8753 = vmatprep.mubr.bf16.mxu0 %v13301_v33  ;;  %8551 = vmatprep.subr.bf16.mxu1 %v11533_v61  ;;  %v11549_v33 = vld [vmem:[#allocation15 + $0x1280] ss:$16 sps:$4 sm:$0xff]   ;;  %v11612_v61 = vld [vmem:[#allocation15 + $0x13c8] ss:$16 sps:$4 sm:$0xff]  }
 0x82b   : > { %8723 = vmatprep.subr.bf16.mxu0 %v11536_v48  ;;  %v11617_v48 = vld [vmem:[#allocation15 + $0x13e4] ss:$16 sps:$4 sm:$0xff]  }
 0x82c   : > { %8552 = vmatpush1.bf16.msra.mxu1 %v11531_v12  ;;  %v11620_v12 = vld [vmem:[#allocation15 + $0x13ec] ss:$16 sps:$4 sm:$0xff]  }
 0x82d   : > { %8724 = vmatpush1.bf16.msra.mxu0 %v11534_v46  ;;  %8553 = vmatprep.subr.bf16.mxu1 %v11539_v54  ;;  %v11615_v46 = vld [vmem:[#allocation15 + $0x13e0] ss:$16 sps:$4 sm:$0xff]   ;;  %v11618_v54 = vld [vmem:[#allocation15 + $0x13e8] ss:$16 sps:$4 sm:$0xff]  }
 0x82e   : > { %8725 = vmatprep.subr.bf16.mxu0 %v11542_v56  ;;  %v11623_v56 = vld [vmem:[#allocation15 + $0x1404] ss:$16 sps:$4 sm:$0xff]  }
 0x830   : > { %8554 = vmatpush1.bf16.msra.mxu1 %v11537_v30  ;;  %v11626_v30 = vld [vmem:[#allocation15 + $0x140c] ss:$16 sps:$4 sm:$0xff]  }
 0x831   : > { %8726 = vmatpush1.bf16.msra.mxu0 %v11540_v62  ;;  %8555 = vmatprep.subr.bf16.mxu1 %v11545_v45  ;;  %v11621_v62 = vld [vmem:[#allocation15 + $0x1400] ss:$16 sps:$4 sm:$0xff]   ;;  %v11624_v45 = vld [vmem:[#allocation15 + $0x1408] ss:$16 sps:$4 sm:$0xff]  }
 0x832   : > { %8727 = vmatprep.subr.bf16.mxu0 %v11548_v26  ;;  %v11629_v26 = vld [vmem:[#allocation15 + $0x1424] ss:$16 sps:$4 sm:$0xff]  }
 0x834   : > { %8556 = vmatpush1.bf16.msra.mxu1 %v11543_v35  ;;  %v11632_v35 = vld [vmem:[#allocation15 + $0x142c] ss:$16 sps:$4 sm:$0xff]  }
 0x835   : > { %8728 = vmatpush1.bf16.msra.mxu0 %v11546_v36  ;;  %8557 = vmatprep.subr.bf16.mxu1 %v11551_v28  ;;  %v11627_v36 = vld [vmem:[#allocation15 + $0x1420] ss:$16 sps:$4 sm:$0xff]   ;;  %v11630_v28 = vld [vmem:[#allocation15 + $0x1428] ss:$16 sps:$4 sm:$0xff]  }
 0x836   : > { %8729 = vmatprep.subr.bf16.mxu0 %v11554_v47  ;;  %v11635_v47 = vld [vmem:[#allocation15 + $0x1444] ss:$16 sps:$4 sm:$0xff]  }
 0x838   : > { %8558 = vmatpush1.bf16.msra.mxu1 %v11549_v33  ;;  %v11638_v33 = vld [vmem:[#allocation15 + $0x144c] ss:$16 sps:$4 sm:$0xff]  }
 0x839   : > { %8730 = vmatpush1.bf16.msra.mxu0 %v11552_v59  ;;  %8559 = vmatprep.subr.bf16.mxu1 %v11557_v0  ;;  %v11633_v59 = vld [vmem:[#allocation15 + $0x1440] ss:$16 sps:$4 sm:$0xff]   ;;  %v11636_v0 = vld [vmem:[#allocation15 + $0x1448] ss:$16 sps:$4 sm:$0xff]  }
 0x83a   : > { %8731 = vmatprep.subr.bf16.mxu0 %v11560_v27  ;;  %v11641_v27 = vld [vmem:[#allocation15 + $0x1464] ss:$16 sps:$4 sm:$0xff]  }
 0x83c   : > { %8560 = vmatpush1.bf16.msra.mxu1 %v11555_v17  ;;  %v11639_v17 = vld [vmem:[#allocation15 + $0x1460] ss:$16 sps:$4 sm:$0xff]  }
 0x83d   : > { %8732 = vmatpush1.bf16.msra.mxu0 %v11558_v19  ;;  %8561 = vmatprep.subr.bf16.mxu1 %v11563_v55  ;;  %v11642_v19 = vld [vmem:[#allocation15 + $0x1468] ss:$16 sps:$4 sm:$0xff]   ;;  %v11647_v55 = vld [vmem:[#allocation15 + $0x1484] ss:$16 sps:$4 sm:$0xff]  }
 0x83e   : > { %8733 = vmatprep.subr.bf16.mxu0 %v11566_v2  ;;  %v11650_v2 = vld [vmem:[#allocation15 + $0x148c] ss:$16 sps:$4 sm:$0xff]  }
 0x840   : > { %8562 = vmatpush1.bf16.msra.mxu1 %v11561_v14  ;;  %v11648_v14 = vld [vmem:[#allocation15 + $0x1488] ss:$16 sps:$4 sm:$0xff]  }
 0x841   : > { %8734 = vmatpush1.bf16.msra.mxu0 %v11564_v18  ;;  %8563 = vmatprep.subr.bf16.mxu1 %v11569_v20  ;;  %v11653_v18 = vld [vmem:[#allocation15 + $0x14a4] ss:$16 sps:$4 sm:$0xff]   ;;  %v11656_v20 = vld [vmem:[#allocation15 + $0x14ac] ss:$16 sps:$4 sm:$0xff]  }
 0x842   : > { %8735 = vmatprep.subr.bf16.mxu0 %v11572_v11  ;;  %v11651_v11 = vld [vmem:[#allocation15 + $0x14a0] ss:$16 sps:$4 sm:$0xff]  }
 0x844   : > { %8564 = vmatpush1.bf16.msra.mxu1 %v11567_v4  ;;  %v11654_v4 = vld [vmem:[#allocation15 + $0x14a8] ss:$16 sps:$4 sm:$0xff]  }
 0x845   : > { %8736 = vmatpush1.bf16.msra.mxu0 %v11570_v7  ;;  %8565 = vmatprep.subr.bf16.mxu1 %v11575_v21  ;;  %v11659_v7 = vld [vmem:[#allocation15 + $0x14c4] ss:$16 sps:$4 sm:$0xff]   ;;  %v11662_v21 = vld [vmem:[#allocation15 + $0x14cc] ss:$16 sps:$4 sm:$0xff]  }
 0x846   : > { %8737 = vmatprep.subr.bf16.mxu0 %v11578_v34  ;;  %v11657_v34 = vld [vmem:[#allocation15 + $0x14c0] ss:$16 sps:$4 sm:$0xff]  }
 0x848   : > { %8566 = vmatpush1.bf16.msra.mxu1 %v11573_v3  ;;  %v11660_v3 = vld [vmem:[#allocation15 + $0x14c8] ss:$16 sps:$4 sm:$0xff]  }
 0x849   : > { %8738 = vmatpush1.bf16.msra.mxu0 %v11576_v23  ;;  %8567 = vmatprep.subr.bf16.mxu1 %v11581_v39  ;;  %v11665_v23 = vld [vmem:[#allocation15 + $0x14e4] ss:$16 sps:$4 sm:$0xff]   ;;  %v11668_v39 = vld [vmem:[#allocation15 + $0x14ec] ss:$16 sps:$4 sm:$0xff]  }
 0x84a   : > { %8739 = vmatprep.subr.bf16.mxu0 %v11584_v16  ;;  %v11663_v16 = vld [vmem:[#allocation15 + $0x14e0] ss:$16 sps:$4 sm:$0xff]  }
 0x84c   : > { %8568 = vmatpush1.bf16.msra.mxu1 %v11579_v24  ;;  %v11666_v24 = vld [vmem:[#allocation15 + $0x14e8] ss:$16 sps:$4 sm:$0xff]  }
 0x84d   : > { %8740 = vmatpush1.bf16.msra.mxu0 %v11582_v57  ;;  %8569 = vmatprep.subr.bf16.mxu1 %v11587_v52  ;;  %v11671_v57 = vld [vmem:[#allocation15 + $0x1504] ss:$16 sps:$4 sm:$0xff]   ;;  %v11674_v52 = vld [vmem:[#allocation15 + $0x150c] ss:$16 sps:$4 sm:$0xff]  }
 0x84e   : > { %8741 = vmatprep.subr.bf16.mxu0 %v11590_v31  ;;  %v11669_v31 = vld [vmem:[#allocation15 + $0x1500] ss:$16 sps:$4 sm:$0xff]  }
 0x850   : > { %8570 = vmatpush1.bf16.msra.mxu1 %v11585_v5  ;;  %v11672_v5 = vld [vmem:[#allocation15 + $0x1508] ss:$16 sps:$4 sm:$0xff]  }
 0x851   : > { %8742 = vmatpush1.bf16.msra.mxu0 %v11588_v51  ;;  %8571 = vmatprep.subr.bf16.mxu1 %v11593_v60  ;;  %v11677_v51 = vld [vmem:[#allocation15 + $0x1524] ss:$16 sps:$4 sm:$0xff]   ;;  %v11680_v60 = vld [vmem:[#allocation15 + $0x152c] ss:$16 sps:$4 sm:$0xff]  }
 0x852   : > { %8743 = vmatprep.subr.bf16.mxu0 %v11596_v32  ;;  %v11675_v32 = vld [vmem:[#allocation15 + $0x1520] ss:$16 sps:$4 sm:$0xff]  }
 0x854   : > { %8572 = vmatpush1.bf16.msra.mxu1 %v11591_v53  ;;  %v11678_v53 = vld [vmem:[#allocation15 + $0x1528] ss:$16 sps:$4 sm:$0xff]  }
 0x855   : > { %8744 = vmatpush1.bf16.msra.mxu0 %v11594_v6  ;;  %8573 = vmatprep.subr.bf16.mxu1 %v11599_v63  ;;  %v11683_v6 = vld [vmem:[#allocation15 + $0x1544] ss:$16 sps:$4 sm:$0xff]   ;;  %v11686_v63 = vld [vmem:[#allocation15 + $0x154c] ss:$16 sps:$4 sm:$0xff]  }
 0x856   : > { %8745 = vmatprep.subr.bf16.mxu0 %v11602_v1  ;;  %v11681_v1 = vld [vmem:[#allocation15 + $0x1540] ss:$16 sps:$4 sm:$0xff]  }
 0x858   : > { %8574 = vmatpush1.bf16.msra.mxu1 %v11597_v10  ;;  %v11684_v10 = vld [vmem:[#allocation15 + $0x1548] ss:$16 sps:$4 sm:$0xff]  }
 0x859   : > { %8746 = vmatpush1.bf16.msra.mxu0 %v11600_v40  ;;  %8575 = vmatprep.subr.bf16.mxu1 %v11605_v49  ;;  %v11689_v40 = vld [vmem:[#allocation15 + $0x1564] ss:$16 sps:$4 sm:$0xff]   ;;  %v11692_v49 = vld [vmem:[#allocation15 + $0x156c] ss:$16 sps:$4 sm:$0xff]  }
 0x85a   : > { %8747 = vmatprep.subr.bf16.mxu0 %v11608_v58  ;;  %v11687_v58 = vld [vmem:[#allocation15 + $0x1560] ss:$16 sps:$4 sm:$0xff]  }
 0x85c   : > { %8576 = vmatpush1.bf16.msra.mxu1 %v11603_v15  ;;  %v11690_v15 = vld [vmem:[#allocation15 + $0x1568] ss:$16 sps:$4 sm:$0xff]  }
 0x85d   : > { %8748 = vmatpush1.bf16.msra.mxu0 %v11606_v29  ;;  %8577 = vmatprep.subr.bf16.mxu1 %v11611_v37  ;;  %v11695_v29 = vld [vmem:[#allocation15 + $0x1584] ss:$16 sps:$4 sm:$0xff]   ;;  %v11698_v37 = vld [vmem:[#allocation15 + $0x158c] ss:$16 sps:$4 sm:$0xff]  }
 0x85e   : > { %8749 = vmatprep.subr.bf16.mxu0 %v11614_v50  ;;  %v11693_v50 = vld [vmem:[#allocation15 + $0x1580] ss:$16 sps:$4 sm:$0xff]  }
 0x860   : > { %8578 = vmatpush1.bf16.msra.mxu1 %v11609_v42  ;;  %v11696_v42 = vld [vmem:[#allocation15 + $0x1588] ss:$16 sps:$4 sm:$0xff]  }
 0x861   : > { %8750 = vmatpush1.bf16.msra.mxu0 %v11612_v61  ;;  %8579 = vmatprep.subr.bf16.mxu1 %v11617_v48  ;;  %v11701_v61 = vld [vmem:[#allocation15 + $0x15a4] ss:$16 sps:$4 sm:$0xff]   ;;  %v11704_v48 = vld [vmem:[#allocation15 + $0x15ac] ss:$16 sps:$4 sm:$0xff]  }
 0x862   : > { %8751 = vmatprep.subr.bf16.mxu0 %v11620_v12  ;;  %v11699_v12 = vld [vmem:[#allocation15 + $0x15a0] ss:$16 sps:$4 sm:$0xff]  }
 0x864   : > { %8580 = vmatpush1.bf16.msra.mxu1 %v11615_v46  ;;  %v11702_v46 = vld [vmem:[#allocation15 + $0x15a8] ss:$16 sps:$4 sm:$0xff]  }
 0x865   : > { %8752 = vmatpush1.bf16.msra.mxu0 %v11618_v54  ;;  %8592 = vmatprep.subr.bf16.mxu1 %v11623_v56  ;;  %v11707_v54 = vld [vmem:[#allocation15 + $0x15c4] ss:$16 sps:$4 sm:$0xff]   ;;  %v11710_v56 = vld [vmem:[#allocation15 + $0x15cc] ss:$16 sps:$4 sm:$0xff]  }
 0x866   : > { %8764 = vmatprep.subr.bf16.mxu0 %v11626_v30  ;;  %v11705_v30 = vld [vmem:[#allocation15 + $0x15c0] ss:$16 sps:$4 sm:$0xff]  }
 0x867   : > { %8582 = vmatmul.mubr.bf16.vlgmr.msra.gmra.mrb[20].mxu1 %v13306_v38 }
 0x868   : > { %8754 = vmatmul.mubr.bf16.vlgmr.msra.gmra.mrb[20].mxu0 %v13306_v38  ;;  %8593 = vmatpush1.bf16.msra.mxu1 %v11621_v62  ;;  %v11644_v38 = vld [vmem:[#allocation15 + $0x146c] ss:$16 sps:$4 sm:$0xff]   ;;  %v11708_v62 = vld [vmem:[#allocation15 + $0x15c8] ss:$16 sps:$4 sm:$0xff]  }
 0x869   : > { %8624 = vmatprep.mubr.bf16.mxu1 %v13311_v8  ;;  %8765 = vmatpush1.bf16.msra.mxu0 %v11624_v45  ;;  %v11713_v45 = vld [vmem:[#allocation15 + $0x15e4] ss:$16 sps:$4 sm:$0xff]  }
 0x86a   : > { %8796 = vmatprep.mubr.bf16.mxu0 %v13311_v8  ;;  %8594 = vmatprep.subr.bf16.mxu1 %v11629_v26  ;;  %v11645_v8 = vld [vmem:[#allocation15 + $0x1480] ss:$16 sps:$4 sm:$0xff]   ;;  %v11716_v26 = vld [vmem:[#allocation15 + $0x15ec] ss:$16 sps:$4 sm:$0xff]  }
 0x86b   : > { %8766 = vmatprep.subr.bf16.mxu0 %v11632_v35  ;;  %v11711_v35 = vld [vmem:[#allocation15 + $0x15e0] ss:$16 sps:$4 sm:$0xff]  }
 0x86c   : > { %8595 = vmatpush1.bf16.msra.mxu1 %v11627_v36  ;;  %v11714_v36 = vld [vmem:[#allocation15 + $0x15e8] ss:$16 sps:$4 sm:$0xff]  }
 0x86d   : > { %8767 = vmatpush1.bf16.msra.mxu0 %v11630_v28  ;;  %8596 = vmatprep.subr.bf16.mxu1 %v11635_v47  ;;  %v11719_v28 = vld [vmem:[#allocation15 + $0x1604] ss:$16 sps:$4 sm:$0xff]   ;;  %v11722_v47 = vld [vmem:[#allocation15 + $0x160c] ss:$16 sps:$4 sm:$0xff]  }
 0x86e   : > { %8768 = vmatprep.subr.bf16.mxu0 %v11638_v33  ;;  %v11717_v33 = vld [vmem:[#allocation15 + $0x1600] ss:$16 sps:$4 sm:$0xff]  }
 0x870   : > { %8597 = vmatpush1.bf16.msra.mxu1 %v11633_v59  ;;  %v11720_v59 = vld [vmem:[#allocation15 + $0x1608] ss:$16 sps:$4 sm:$0xff]  }
 0x871   : > { %8769 = vmatpush1.bf16.msra.mxu0 %v11636_v0  ;;  %8598 = vmatprep.subr.bf16.mxu1 %v11641_v27  ;;  %v11725_v0 = vld [vmem:[#allocation15 + $0x1624] ss:$16 sps:$4 sm:$0xff]   ;;  %v11728_v27 = vld [vmem:[#allocation15 + $0x162c] ss:$16 sps:$4 sm:$0xff]  }
 0x872   : > { %8770 = vmatprep.subr.bf16.mxu0 %v11644_v38  ;;  %v11723_v38 = vld [vmem:[#allocation15 + $0x1620] ss:$16 sps:$4 sm:$0xff]  }
 0x874   : > { %8599 = vmatpush1.bf16.msra.mxu1 %v11639_v17  ;;  %v11726_v17 = vld [vmem:[#allocation15 + $0x1628] ss:$16 sps:$4 sm:$0xff]  }
 0x875   : > { %8771 = vmatpush1.bf16.msra.mxu0 %v11642_v19  ;;  %8600 = vmatprep.subr.bf16.mxu1 %v11647_v55  ;;  %v11731_v19 = vld [vmem:[#allocation15 + $0x1644] ss:$16 sps:$4 sm:$0xff]   ;;  %v11734_v55 = vld [vmem:[#allocation15 + $0x164c] ss:$16 sps:$4 sm:$0xff]  }
 0x876   : > { %8772 = vmatprep.subr.bf16.mxu0 %v11650_v2  ;;  %v11729_v2 = vld [vmem:[#allocation15 + $0x1640] ss:$16 sps:$4 sm:$0xff]  }
 0x878   : > { %8601 = vmatpush1.bf16.msra.mxu1 %v11645_v8  ;;  %v11732_v8 = vld [vmem:[#allocation15 + $0x1648] ss:$16 sps:$4 sm:$0xff]  }
 0x879   : > { %8773 = vmatpush1.bf16.msra.mxu0 %v11648_v14  ;;  %8602 = vmatprep.subr.bf16.mxu1 %v11653_v18  ;;  %v11737_v14 = vld [vmem:[#allocation15 + $0x1664] ss:$16 sps:$4 sm:$0xff]   ;;  %v11735_v18 = vld [vmem:[#allocation15 + $0x1660] ss:$16 sps:$4 sm:$0xff]  }
 0x87a   : > { %8774 = vmatprep.subr.bf16.mxu0 %v11656_v20  ;;  %v11738_v20 = vld [vmem:[#allocation15 + $0x1668] ss:$16 sps:$4 sm:$0xff]  }
 0x87c   : > { %8603 = vmatpush1.bf16.msra.mxu1 %v11651_v11  ;;  %v11743_v11 = vld [vmem:[#allocation15 + $0x1684] ss:$16 sps:$4 sm:$0xff]  }
 0x87d   : > { %8775 = vmatpush1.bf16.msra.mxu0 %v11654_v4  ;;  %8604 = vmatprep.subr.bf16.mxu1 %v11659_v7  ;;  %v11746_v4 = vld [vmem:[#allocation15 + $0x168c] ss:$16 sps:$4 sm:$0xff]   ;;  %v11744_v7 = vld [vmem:[#allocation15 + $0x1688] ss:$16 sps:$4 sm:$0xff]  }
 0x87e   : > { %8776 = vmatprep.subr.bf16.mxu0 %v11662_v21  ;;  %v11749_v21 = vld [vmem:[#allocation15 + $0x16a4] ss:$16 sps:$4 sm:$0xff]  }
 0x880   : > { %8605 = vmatpush1.bf16.msra.mxu1 %v11657_v34  ;;  %v11752_v34 = vld [vmem:[#allocation15 + $0x16ac] ss:$16 sps:$4 sm:$0xff]  }
 0x881   : > { %8777 = vmatpush1.bf16.msra.mxu0 %v11660_v3  ;;  %8606 = vmatprep.subr.bf16.mxu1 %v11665_v23  ;;  %v11747_v3 = vld [vmem:[#allocation15 + $0x16a0] ss:$16 sps:$4 sm:$0xff]   ;;  %v11750_v23 = vld [vmem:[#allocation15 + $0x16a8] ss:$16 sps:$4 sm:$0xff]  }
 0x882   : > { %8778 = vmatprep.subr.bf16.mxu0 %v11668_v39  ;;  %v11755_v39 = vld [vmem:[#allocation15 + $0x16c4] ss:$16 sps:$4 sm:$0xff]  }
 0x884   : > { %8607 = vmatpush1.bf16.msra.mxu1 %v11663_v16  ;;  %v11758_v16 = vld [vmem:[#allocation15 + $0x16cc] ss:$16 sps:$4 sm:$0xff]  }
 0x885   : > { %8779 = vmatpush1.bf16.msra.mxu0 %v11666_v24  ;;  %8608 = vmatprep.subr.bf16.mxu1 %v11671_v57  ;;  %v11753_v24 = vld [vmem:[#allocation15 + $0x16c0] ss:$16 sps:$4 sm:$0xff]   ;;  %v11756_v57 = vld [vmem:[#allocation15 + $0x16c8] ss:$16 sps:$4 sm:$0xff]  }
 0x886   : > { %8780 = vmatprep.subr.bf16.mxu0 %v11674_v52  ;;  %v11761_v52 = vld [vmem:[#allocation15 + $0x16e4] ss:$16 sps:$4 sm:$0xff]  }
 0x888   : > { %8609 = vmatpush1.bf16.msra.mxu1 %v11669_v31  ;;  %v11764_v31 = vld [vmem:[#allocation15 + $0x16ec] ss:$16 sps:$4 sm:$0xff]  }
 0x889   : > { %8781 = vmatpush1.bf16.msra.mxu0 %v11672_v5  ;;  %8610 = vmatprep.subr.bf16.mxu1 %v11677_v51  ;;  %v11759_v5 = vld [vmem:[#allocation15 + $0x16e0] ss:$16 sps:$4 sm:$0xff]   ;;  %v11762_v51 = vld [vmem:[#allocation15 + $0x16e8] ss:$16 sps:$4 sm:$0xff]  }
 0x88a   : > { %8782 = vmatprep.subr.bf16.mxu0 %v11680_v60  ;;  %v11767_v60 = vld [vmem:[#allocation15 + $0x1704] ss:$16 sps:$4 sm:$0xff]  }
 0x88c   : > { %8611 = vmatpush1.bf16.msra.mxu1 %v11675_v32  ;;  %v11770_v32 = vld [vmem:[#allocation15 + $0x170c] ss:$16 sps:$4 sm:$0xff]  }
 0x88d   : > { %8783 = vmatpush1.bf16.msra.mxu0 %v11678_v53  ;;  %8612 = vmatprep.subr.bf16.mxu1 %v11683_v6  ;;  %v11765_v53 = vld [vmem:[#allocation15 + $0x1700] ss:$16 sps:$4 sm:$0xff]   ;;  %v11768_v6 = vld [vmem:[#allocation15 + $0x1708] ss:$16 sps:$4 sm:$0xff]  }
 0x88e   : > { %8784 = vmatprep.subr.bf16.mxu0 %v11686_v63  ;;  %v11773_v63 = vld [vmem:[#allocation15 + $0x1724] ss:$16 sps:$4 sm:$0xff]  }
 0x890   : > { %8613 = vmatpush1.bf16.msra.mxu1 %v11681_v1  ;;  %v11776_v1 = vld [vmem:[#allocation15 + $0x172c] ss:$16 sps:$4 sm:$0xff]  }
 0x891   : > { %8785 = vmatpush1.bf16.msra.mxu0 %v11684_v10  ;;  %8614 = vmatprep.subr.bf16.mxu1 %v11689_v40  ;;  %v11771_v10 = vld [vmem:[#allocation15 + $0x1720] ss:$16 sps:$4 sm:$0xff]   ;;  %v11774_v40 = vld [vmem:[#allocation15 + $0x1728] ss:$16 sps:$4 sm:$0xff]  }
 0x892   : > { %8786 = vmatprep.subr.bf16.mxu0 %v11692_v49  ;;  %v11779_v49 = vld [vmem:[#allocation15 + $0x1744] ss:$16 sps:$4 sm:$0xff]  }
 0x894   : > { %8615 = vmatpush1.bf16.msra.mxu1 %v11687_v58  ;;  %v11782_v58 = vld [vmem:[#allocation15 + $0x174c] ss:$16 sps:$4 sm:$0xff]  }
 0x895   : > { %8787 = vmatpush1.bf16.msra.mxu0 %v11690_v15  ;;  %8616 = vmatprep.subr.bf16.mxu1 %v11695_v29  ;;  %v11777_v15 = vld [vmem:[#allocation15 + $0x1740] ss:$16 sps:$4 sm:$0xff]   ;;  %v11780_v29 = vld [vmem:[#allocation15 + $0x1748] ss:$16 sps:$4 sm:$0xff]  }
 0x896   : > { %8788 = vmatprep.subr.bf16.mxu0 %v11698_v37  ;;  %v11785_v37 = vld [vmem:[#allocation15 + $0x1764] ss:$16 sps:$4 sm:$0xff]  }
 0x898   : > { %8617 = vmatpush1.bf16.msra.mxu1 %v11693_v50  ;;  %v11788_v50 = vld [vmem:[#allocation15 + $0x176c] ss:$16 sps:$4 sm:$0xff]  }
 0x899   : > { %8789 = vmatpush1.bf16.msra.mxu0 %v11696_v42  ;;  %8618 = vmatprep.subr.bf16.mxu1 %v11701_v61  ;;  %v11783_v42 = vld [vmem:[#allocation15 + $0x1760] ss:$16 sps:$4 sm:$0xff]   ;;  %v11786_v61 = vld [vmem:[#allocation15 + $0x1768] ss:$16 sps:$4 sm:$0xff]  }
 0x89a   : > { %8790 = vmatprep.subr.bf16.mxu0 %v11704_v48  ;;  %v11791_v48 = vld [vmem:[#allocation15 + $0x1784] ss:$16 sps:$4 sm:$0xff]  }
 0x89c   : > { %8619 = vmatpush1.bf16.msra.mxu1 %v11699_v12  ;;  %v11794_v12 = vld [vmem:[#allocation15 + $0x178c] ss:$16 sps:$4 sm:$0xff]  }
 0x89d   : > { %8791 = vmatpush1.bf16.msra.mxu0 %v11702_v46  ;;  %8620 = vmatprep.subr.bf16.mxu1 %v11707_v54  ;;  %v11789_v46 = vld [vmem:[#allocation15 + $0x1780] ss:$16 sps:$4 sm:$0xff]   ;;  %v11792_v54 = vld [vmem:[#allocation15 + $0x1788] ss:$16 sps:$4 sm:$0xff]  }
 0x89e   : > { %8792 = vmatprep.subr.bf16.mxu0 %v11710_v56  ;;  %v11797_v56 = vld [vmem:[#allocation15 + $0x17a4] ss:$16 sps:$4 sm:$0xff]  }
 0x8a0   : > { %8621 = vmatpush1.bf16.msra.mxu1 %v11705_v30  ;;  %v11800_v30 = vld [vmem:[#allocation15 + $0x17ac] ss:$16 sps:$4 sm:$0xff]  }
 0x8a1   : > { %8793 = vmatpush1.bf16.msra.mxu0 %v11708_v62  ;;  %8622 = vmatprep.subr.bf16.mxu1 %v11713_v45  ;;  %v11795_v62 = vld [vmem:[#allocation15 + $0x17a0] ss:$16 sps:$4 sm:$0xff]   ;;  %v11798_v45 = vld [vmem:[#allocation15 + $0x17a8] ss:$16 sps:$4 sm:$0xff]  }
 0x8a2   : > { %8794 = vmatprep.subr.bf16.mxu0 %v11716_v26  ;;  %v11803_v26 = vld [vmem:[#allocation15 + $0x17c4] ss:$16 sps:$4 sm:$0xff]  }
 0x8a4   : > { %8623 = vmatpush1.bf16.msra.mxu1 %v11711_v35  ;;  %v11806_v35 = vld [vmem:[#allocation15 + $0x17cc] ss:$16 sps:$4 sm:$0xff]  }
 0x8a5   : > { %8795 = vmatpush1.bf16.msra.mxu0 %v11714_v36  ;;  %8635 = vmatprep.subr.bf16.mxu1 %v11719_v28  ;;  %v11801_v36 = vld [vmem:[#allocation15 + $0x17c0] ss:$16 sps:$4 sm:$0xff]   ;;  %v11804_v28 = vld [vmem:[#allocation15 + $0x17c8] ss:$16 sps:$4 sm:$0xff]  }
 0x8a6   : > { %8807 = vmatprep.subr.bf16.mxu0 %v11722_v47  ;;  %v11809_v47 = vld [vmem:[#allocation15 + $0x17e4] ss:$16 sps:$4 sm:$0xff]  }
 0x8a7   : > { %8625 = vmatmul.mubr.bf16.vlgmr.msra.gmra.mrb[20].mxu1 %v13314_v22 }
 0x8a8   : > { %8797 = vmatmul.mubr.bf16.vlgmr.msra.gmra.mrb[20].mxu0 %v13314_v22  ;;  %8636 = vmatpush1.bf16.msra.mxu1 %v11717_v33  ;;  %v11740_v22 = vld [vmem:[#allocation15 + $0x166c] ss:$16 sps:$4 sm:$0xff]  }
 0x8a9   : > { %8667 = vmatprep.mubr.bf16.mxu1 %v13317_v25  ;;  %8808 = vmatpush1.bf16.msra.mxu0 %v11720_v59  ;;  %v11812_v33 = vld [vmem:[#allocation15 + $0x17ec] ss:$16 sps:$4 sm:$0xff]   ;;  %v11807_v59 = vld [vmem:[#allocation15 + $0x17e0] ss:$16 sps:$4 sm:$0xff]  }
 0x8aa   : > { %8839 = vmatprep.mubr.bf16.mxu0 %v13317_v25  ;;  %8637 = vmatprep.subr.bf16.mxu1 %v11725_v0  ;;  %v11741_v25 = vld [vmem:[#allocation15 + $0x1680] ss:$16 sps:$4 sm:$0xff]   ;;  %v11810_v0 = vld [vmem:[#allocation15 + $0x17e8] ss:$16 sps:$4 sm:$0xff]  }
 0x8ab   : > { %8809 = vmatprep.subr.bf16.mxu0 %v11728_v27  ;;  %v8858_v27 = vld [vmem:[#allocation16] sm:$0xf] }
 0x8ac   : > { %8638 = vmatpush1.bf16.msra.mxu1 %v11723_v38  ;;  %v8888_v38 = vld [vmem:[#allocation18] sm:$0xf] }
 0x8ad   : > { %8810 = vmatpush1.bf16.msra.mxu0 %v11726_v17  ;;  %8639 = vmatprep.subr.bf16.mxu1 %v11731_v19  ;;  %v8863_v17 = vrot.slane %v8858_v27, %v12636_v13  ;;  %v8871_v19 = vrot.slane %v8858_v27, %v12876_v41 }
 0x8ae   : > { %8811 = vmatprep.subr.bf16.mxu0 %v11734_v55  ;;  %v8867_v55 = vrot.slane %v8858_v27, %v12881_v43 }
 0x8b0   : > { %8640 = vmatpush1.bf16.msra.mxu1 %v11729_v2  ;;  %v8893_v2 = vrot.slane %v8888_v38, %v12636_v13 }
 0x8b1   : > { %8812 = vmatpush1.bf16.msra.mxu0 %v11732_v8  ;;  %8641 = vmatprep.subr.bf16.mxu1 %v11737_v14  ;;  %v8875_v8 = vrot.slane %v8858_v27, %v12884_v44 }
 0x8b2   : > { %8813 = vmatprep.subr.bf16.mxu0 %v11740_v22  ;;  %v8901_v22 = vrot.slane %v8888_v38, %v12876_v41 }
 0x8b4   : > { %8642 = vmatpush1.bf16.msra.mxu1 %v11735_v18  ;;  %v8897_v18 = vrot.slane %v8888_v38, %v12881_v43 }
 0x8b5   : > { %8814 = vmatpush1.bf16.msra.mxu0 %v11738_v20  ;;  %8643 = vmatprep.subr.bf16.mxu1 %v11743_v11 }
 0x8b6   : > { %8815 = vmatprep.subr.bf16.mxu0 %v11746_v4  ;;  %v8905_v4 = vrot.slane %v8888_v38, %v12884_v44 }
 0x8b8   : > { %8644 = vmatpush1.bf16.msra.mxu1 %v11741_v25 }
 0x8b9   : > { %8816 = vmatpush1.bf16.msra.mxu0 %v11744_v7  ;;  %8645 = vmatprep.subr.bf16.mxu1 %v11749_v21 }
 0x8ba   : > { %8817 = vmatprep.subr.bf16.mxu0 %v11752_v34 }
 0x8bc   : > { %8646 = vmatpush1.bf16.msra.mxu1 %v11747_v3 }
 0x8bd   : > { %8818 = vmatpush1.bf16.msra.mxu0 %v11750_v23  ;;  %8647 = vmatprep.subr.bf16.mxu1 %v11755_v39 }
 0x8be   : > { %8819 = vmatprep.subr.bf16.mxu0 %v11758_v16 }
 0x8c0   : > { %8648 = vmatpush1.bf16.msra.mxu1 %v11753_v24 }
 0x8c1   : > { %8820 = vmatpush1.bf16.msra.mxu0 %v11756_v57  ;;  %8649 = vmatprep.subr.bf16.mxu1 %v11761_v52 }
 0x8c2   : > { %8821 = vmatprep.subr.bf16.mxu0 %v11764_v31 }
 0x8c4   : > { %8650 = vmatpush1.bf16.msra.mxu1 %v11759_v5 }
 0x8c5   : > { %8822 = vmatpush1.bf16.msra.mxu0 %v11762_v51  ;;  %8651 = vmatprep.subr.bf16.mxu1 %v11767_v60 }
 0x8c6   : > { %8823 = vmatprep.subr.bf16.mxu0 %v11770_v32 }
 0x8c8   : > { %8652 = vmatpush1.bf16.msra.mxu1 %v11765_v53 }
 0x8c9   : > { %8824 = vmatpush1.bf16.msra.mxu0 %v11768_v6  ;;  %8653 = vmatprep.subr.bf16.mxu1 %v11773_v63 }
 0x8ca   : > { %8825 = vmatprep.subr.bf16.mxu0 %v11776_v1 }
 0x8cc   : > { %8654 = vmatpush1.bf16.msra.mxu1 %v11771_v10 }
 0x8cd   : > { %8826 = vmatpush1.bf16.msra.mxu0 %v11774_v40  ;;  %8655 = vmatprep.subr.bf16.mxu1 %v11779_v49 }
 0x8ce   : > { %8827 = vmatprep.subr.bf16.mxu0 %v11782_v58 }
 0x8d0   : > { %8656 = vmatpush1.bf16.msra.mxu1 %v11777_v15 }
 0x8d1   : > { %8828 = vmatpush1.bf16.msra.mxu0 %v11780_v29  ;;  %8657 = vmatprep.subr.bf16.mxu1 %v11785_v37 }
 0x8d2   : > { %8829 = vmatprep.subr.bf16.mxu0 %v11788_v50 }
 0x8d4   : > { %8658 = vmatpush1.bf16.msra.mxu1 %v11783_v42 }
 0x8d5   : > { %8830 = vmatpush1.bf16.msra.mxu0 %v11786_v61  ;;  %8659 = vmatprep.subr.bf16.mxu1 %v11791_v48 }
 0x8d6   : > { %8831 = vmatprep.subr.bf16.mxu0 %v11794_v12 }
 0x8d8   : > { %8660 = vmatpush1.bf16.msra.mxu1 %v11789_v46 }
 0x8d9   : > { %8832 = vmatpush1.bf16.msra.mxu0 %v11792_v54  ;;  %8661 = vmatprep.subr.bf16.mxu1 %v11797_v56 }
 0x8da   : > { %8833 = vmatprep.subr.bf16.mxu0 %v11800_v30 }
 0x8dc   : > { %8662 = vmatpush1.bf16.msra.mxu1 %v11795_v62 }
 0x8dd   : > { %8834 = vmatpush1.bf16.msra.mxu0 %v11798_v45  ;;  %8663 = vmatprep.subr.bf16.mxu1 %v11803_v26 }
 0x8de   : > { %8835 = vmatprep.subr.bf16.mxu0 %v11806_v35 }
 0x8e0   : > { %8664 = vmatpush1.bf16.msra.mxu1 %v11801_v36 }
 0x8e1   : > { %8836 = vmatpush1.bf16.msra.mxu0 %v11804_v28  ;;  %8665 = vmatprep.subr.bf16.mxu1 %v11809_v47 }
 0x8e2   : > { %8837 = vmatprep.subr.bf16.mxu0 %v11812_v33 }
 0x8e4   : > { %8666 = vmatpush1.bf16.msra.mxu1 %v11807_v59 }
 0x8e5   : > { %8838 = vmatpush1.bf16.msra.mxu0 %v11810_v0 }
 0x8e7   : > { %8668 = vmatmul.mubr.bf16.vlgmr.msra.gmra.mrb[20].mxu1 %v13320_v9 }
 0x8e8   : > { %8840 = vmatmul.mubr.bf16.vlgmr.msra.gmra.mrb[20].mxu0 %v13320_v9 }
 0x9ba   : > { %v8669_v14 = vpop.f32.mrb[20].mxu1 }
 0x9bb   : > { %v8880_v20 = vmul.f32 %v8863_v17, %v8669_v14  ;;  %v8841_v9 = vpop.f32.mrb[20].mxu0  ;;  %v8671_v11 = vpop.f32.mrb[21].mxu1 }
 0x9bc   : > { %v8882_v25 = vmul.f32 %v8871_v19, %v8841_v9  ;;  %v8881_v7 = vmul.f32 %v8867_v55, %v8671_v11  ;;  %v8843_v21 = vpop.f32.mrb[21].mxu0  ;;  %v8673_v34 = vpop.f32.mrb[22].mxu1 }
 0x9bd   : > { %v8910_v3 = vadd.f32 %v8893_v2, %v8880_v20  ;;  %v8883_v13 = vmul.f32 %v8875_v8, %v8843_v21  ;;  %v8884_v23 = vmul.f32 %v8863_v17, %v8673_v34  ;;  %v8845_v39 = vpop.f32.mrb[22].mxu0  ;;  %v8675_v16 = vpop.f32.mrb[23].mxu1 }
 0x9be   : > { %v8912_v41 = vadd.f32 %v8901_v22, %v8882_v25  ;;  %v8911_v43 = vadd.f32 %v8897_v18, %v8881_v7  ;;  %v8886_v24 = vmul.f32 %v8871_v19, %v8845_v39  ;;  %v8885_v57 = vmul.f32 %v8867_v55, %v8675_v16  ;;  %v8847_v44 = vpop.f32.mrb[23].mxu0 }
 0x9bf   : > { %v8918_v52 = vmax.f32 %v8910_v3, 0.0  ;;  %v8913_v31 = vadd.f32 %v8905_v4, %v8883_v13  ;;  %v8914_v5 = vadd.f32 %v8893_v2, %v8884_v23  ;;  %v8887_v51 = vmul.f32 %v8875_v8, %v8847_v44 }
 0x9c0   : > { %v8920_v60 = vmax.f32 %v8912_v41, 0.0  ;;  %v8919_v32 = vmax.f32 %v8911_v43, 0.0  ;;  %v8916_v53 = vadd.f32 %v8901_v22, %v8886_v24  ;;  %v8915_v6 = vadd.f32 %v8897_v18, %v8885_v57 }
 0x9c1   : > { %8926 = vst [vmem:[%s13355_s26] sm:$0xff] %v8918_v52  ;;  %v8921_v63 = vmax.f32 %v8913_v31, 0.0  ;;  %v8922_v1 = vmax.f32 %v8914_v5, 0.0  ;;  %v8917_v10 = vadd.f32 %v8905_v4, %v8887_v51 }
 0x9c2   : > { %8928 = vst [vmem:[%s13355_s26 + $0x10] sm:$0xff] %v8920_v60  ;;  %8927 = vst [vmem:[%s13355_s26 + $0x8] sm:$0xff] %v8919_v32  ;;  %v8924_v40 = vmax.f32 %v8916_v53, 0.0  ;;  %v8923_v49 = vmax.f32 %v8915_v6, 0.0 }
 0x9c3   : > { %8929 = vst [vmem:[%s13355_s26 + $0x18] sm:$0xff] %v8921_v63  ;;  %8930 = vst [vmem:[%s13355_s26 + $0x20] sm:$0xff] %v8922_v1  ;;  %v8925_v58 = vmax.f32 %v8917_v10, 0.0 }
 0x9c4   : > { %8932 = vst [vmem:[%s13355_s26 + $0x30] sm:$0xff] %v8924_v40  ;;  %8931 = vst [vmem:[%s13355_s26 + $0x28] sm:$0xff] %v8923_v49 }
 0x9c5   : > { %8933 = vst [vmem:[%s13355_s26 + $0x38] sm:$0xff] %v8925_v58 }
 0x9c6   : > { %12128 = shalt.err (!%p12125_p0)
}
 0x9c7   : > { %s12129_s2 = scalar_lea.hbm %s13367_s11, 1024  ;;  %s12133_s23 = scalar_lea.hbm %s13461_s21, 2048 }
 0x9c8   : > { %p12130_p2 = scmp.ne.s32.totalorder %s13367_s11, %s12129_s2  ;;  %p12134_p11 = scmp.lt.u32.totalorder %s13367_s11, %s13461_s21 }
 0x9c9   : > { %p12135_p6 = scmp.lt.u32.totalorder %s12133_s23, %s12129_s2  ;;  %p12137_p5 = scmp.lt.u32.totalorder %s12129_s2, %s13367_s11 }
 0x9ca   : > { %p12131_p9 = pnand %p12130_p2, %p13462_p7 }
 0x9cb   : > { %p12136_p12 = por %p12135_p6, %p12134_p11 }
 0x9cc   : > { %p12132_p10 = pneg %p12131_p9 }
 0x9cd   : > { %p12138_p4 = por %p12137_p5, %p12136_p12 }
 0x9cf   : > { %p12139_p1 = pnand %p12138_p4, %p12132_p10 }
 0x9d1   : > { %12142 = shalt.err (!%p12139_p1)
}
 0x9d2   : > { %s12221_s14 = smov 512   ;;  %s12222_s1 = smov 32  }
 0x9d3   : > { %10554 = dma.vmem_to_hbm [thread:$0]  (%p13462_p7), %s13360_s28, 1024, %s13367_s11, %s8935_s30, %s12221_s14, %s12221_s14, %s12222_s1  }
 0x9d4 PF: > { %s8963_s12 = sand.u32 1, %s12185_s17   ;;  %p13463_p3 = scmp.ne.s32.totalorder %s13448_s27, 0 }
 0x9d5   : > { %p13464_p8 = scmp.ge.s32.totalorder %s12197_s20, 2  ;;  %s8964_s2 = scalar_lea.sflag [#allocation6], %s8963_s12 }
 0x9d7   : > { %p10586_p13 = pnand %p13464_p8, %p13463_p3 }
 0x9d9   : > { %12180 = dma.done.wait (!%p10586_p13), %s8964_s2, 1024  }
 0x9da   : > { %12182 = vsyncadd (!%p10586_p13), %s8964_s2, 4294966272  ;;  %p28_p0 = scmp.ge.s32.totalorder %s12488_s29, 4   ;;  %s13465_s17 = smov %s12189_s18 }
 0x9db   : > { %s13466_s18 = smov %s12193_s19  ;;  %s13467_s19 = smov %s12499_s13 }
 0x9dc   : > { %s13468_s20 = smov %s12488_s29  ;;  %30 = sbr.rel (!%p28_p0) target bundleno = 15 (0xf), region = 146 }
 0x9e3   :  { %8969 = vsyncpa [#allocation5], 1 }
 0x9e4   :  { %8971 = vsyncpa [#allocation5 + $0x1], 1 }
 0x9e5   :  { %8972 = vsyncpa [#allocation8], 1 }
 0x9e6   :  { %8973 = vsyncpa [#allocation11], 1 }
 0x9e7   :  { %8974 = vsyncpa [#allocation14], 1 }
 0x9e8   :  { %8975 = vsyncpa [#allocation17], 1 }
 0x9e9   :  { %8976 = vsyncpa [#allocation6], 1 }
 0x9ea   :  { %8978 = vsyncpa [#allocation6 + $0x1], 1 }

</bundles_post_ra>
